<compile_context>
chip_gen: v6e
topology: v6e:2x2x1
jax: 0.10.0
libtpu: 0.0.40
codegen_flags: <defaults>
</compile_context>

<pallas_src>
import functools

import numpy as np
import jax
import jax.numpy as jnp
from jax.experimental import pallas as pl
from jax.experimental.pallas import tpu as pltpu


# 3x3 conv tap offsets in (kh, kw) row-major order (matches torch weight[:, :, kh, kw]).
_OFFSETS = tuple((oh, ow) for oh in (-1, 0, 1) for ow in (-1, 0, 1))


def _attention_stage3_kernel(
    x_ref, sel_ref,
    bn1_s_ref, bn1_b_ref, w1_ref,
    bn2_s_ref, bn2_b_ref, w2_ref,
    bn3_s_ref, bn3_b_ref, w3_ref,
    bnA_s_ref, bnA_b_ref, wA_ref,
    bnB_s_ref, bnB_b_ref, wB_ref,
    o_ref,
    *, n_lanes: int,
):
    """Entire AttentionModule_stage3 forward for one image-group; activations are (C, L)."""
    L = n_lanes

    def mm(w_t, x_v):
        # bf16 operands on the MXU, f32 accumulation.
        return jnp.dot(w_t.astype(jnp.bfloat16), x_v.astype(jnp.bfloat16),
                       preferred_element_type=jnp.float32)

    def bn_relu(x_v, s, b):
        # inference BatchNorm folded to per-channel (scale, shift), then ReLU (f32).
        return jnp.maximum(x_v * s + b, 0.0)

    def conv3x3(h_v, i):
        # ONE tap-gather matmul against the precomputed (L, 9L) 0/1 selection
        # matrix: taps[:, t*L:(t+1)*L] == h shifted by tap t (zero "same" pad,
        # block-diagonal per packed image so no cross-image leakage).
        taps = jnp.dot(h_v.astype(jnp.bfloat16), sel_ref[...],
                       preferred_element_type=jnp.float32)        # (Cb, 9L)
        taps = taps.astype(jnp.bfloat16)   # exact: entries are copies of bf16 h
        parts = [
            jnp.dot(w2_ref[i, t], taps[:, t * L:(t + 1) * L],
                    preferred_element_type=jnp.float32)           # (Cb, L)
            for t in range(9)
        ]
        # balanced add tree (shorter dependency chain than a serial 8-add chain).
        while len(parts) > 1:
            nxt = [parts[k] + parts[k + 1] for k in range(0, len(parts) - 1, 2)]
            if len(parts) % 2:
                nxt.append(parts[-1])
            parts = nxt
        return parts[0]

    def residual_block(x_v, i):
        # pre-activation bottleneck, identity shortcut (Cin == Cout, stride 1).
        h1 = bn_relu(x_v, bn1_s_ref[i], bn1_b_ref[i])
        t1 = mm(w1_ref[i], h1)                         # (Cb, L)
        h2 = bn_relu(t1, bn2_s_ref[i], bn2_b_ref[i])
        t2 = conv3x3(h2, i)                            # (Cb, L)
        h3 = bn_relu(t2, bn3_s_ref[i], bn3_b_ref[i])
        return mm(w3_ref[i], h3) + x_v                 # (C, L)

    x = x_ref[...].astype(jnp.float32)                 # (C, L)

    x = residual_block(x, 0)                           # first_residual_blocks
    trunk = residual_block(residual_block(x, 1), 2)    # trunk_branches
    mid = residual_block(residual_block(x, 3), 4)      # middle_2r_blocks

    # conv1_1_blocks: BN, ReLU, 1x1, BN, ReLU, 1x1, Sigmoid; then (1 + mask) * trunk
    g = bn_relu(mid, bnA_s_ref[...], bnA_b_ref[...])
    g = mm(wA_ref[...], g)
    g = bn_relu(g, bnB_s_ref[...], bnB_b_ref[...])
    logits = mm(wB_ref[...], g)
    soft = pl.reciprocal(1.0 + jnp.exp(-logits), approx=True)   # sigmoid: EUP exp + EUP rcp
    gated = (1.0 + soft) * trunk

    out = residual_block(gated, 5)                     # last_blocks
    o_ref[...] = out.astype(o_ref.dtype)               # lane-dense, unmasked store


def _pick_group(n: int, hw: int) -> int:
    """Smallest divisor of n whose packed lane width reaches 128.

    Reaching 128 lanes gives unmasked stores / full MXU columns; picking the
    SMALLEST such divisor keeps as many grid steps as possible so v7x's two
    TensorCores can both work.  Falls back to packing the whole batch.
    """
    for g in range(1, n + 1):
        if n % g == 0 and g * hw >= 128:
            return g
    return n


def _build_sel_cat(img_h: int, img_w: int, group: int) -> jnp.ndarray:
    """(L, 9L) bf16 tap-selection matrix, block-diagonal per packed image.

    Column index = t*L + g*HW + m (tap, image, destination pixel); entry is 1
    iff the source pixel of destination m under tap t is in-bounds ("same"
    zero padding) and belongs to the same image g.
    """
    hw = img_h * img_w
    src = np.arange(hw)[:, None]          # source pixel m'
    dst = np.arange(hw)[None, :]          # destination pixel m
    row, col = dst // img_w, dst % img_w
    eye_g = np.eye(group, dtype=np.float32)
    blocks = []
    for oh, ow in _OFFSETS:
        shift = oh * img_w + ow
        inside = ((row + oh >= 0) & (row + oh < img_h) &
                  (col + ow >= 0) & (col + ow < img_w))
        sel = ((src == dst + shift) & inside).astype(np.float32)   # (HW, HW)
        blocks.append(np.kron(eye_g, sel))                          # (L, L)
    return jnp.asarray(np.concatenate(blocks, axis=1), dtype=jnp.bfloat16)


def attention_module_stage3(x_nchw, params):
    """x_nchw: (N, C, H, W) float32 (PyTorch layout).  Returns (N, C, H, W)."""
    n, c, h, w = x_nchw.shape
    assert c % 4 == 0, "bottleneck width must divide channels"
    hw = h * w
    g = _pick_group(n, hw)
    groups = n // g
    L = g * hw

    # pack g images into the lane axis: (N,C,H,W) -> (groups, C, g*HW)
    xp = (x_nchw.astype(jnp.float32)
          .reshape(groups, g, c, hw)
          .transpose(0, 2, 1, 3)
          .reshape(groups, c, L))

    sel_cat = _build_sel_cat(h, w, g)          # (L, 9L) bf16 host-built constant

    arg_order = ("bn1_s", "bn1_b", "w1",
                 "bn2_s", "bn2_b", "w2",
                 "bn3_s", "bn3_b", "w3",
                 "bnA_s", "bnA_b", "wA",
                 "bnB_s", "bnB_b", "wB")
    args = [params[k] for k in arg_order]

    # One grid step per image-group.  sel_cat and the parameters are whole-array
    # blocks revisited every step (small, stay VMEM-resident).
    in_specs = [
        pl.BlockSpec((None, c, L), lambda i: (i, 0, 0)),
        pl.BlockSpec(sel_cat.shape, lambda i: (0, 0)),
    ]
    for a in args:
        in_specs.append(pl.BlockSpec(a.shape, lambda i, _nd=a.ndim: (0,) * _nd))

    # Advisory cost estimate for XLA's scheduler.
    cb = c // 4
    per_block_flops = (2 * cb * c * L          # 1x1 reduce
                       + 2 * cb * L * 9 * L    # tap-gather matmul
                       + 9 * 2 * cb * cb * L   # per-tap weight matmuls
                       + 2 * c * cb * L)       # 1x1 expand
    flops = groups * (6 * per_block_flops + 2 * (2 * c * c * L))
    transcendentals = groups * c * L           # sigmoid exp
    bytes_accessed = int(
        groups * c * L * 4 * 2                 # x in + out (f32)
        + sel_cat.size * 2                     # bf16 selection matrix
        + sum(int(np.prod(a.shape)) * a.dtype.itemsize for a in args))

    out = pl.pallas_call(
        functools.partial(_attention_stage3_kernel, n_lanes=L),
        out_shape=jax.ShapeDtypeStruct((groups, c, L), jnp.float32),
        grid=(groups,),
        in_specs=in_specs,
        out_specs=pl.BlockSpec((None, c, L), lambda i: (i, 0, 0)),
        compiler_params=pltpu.CompilerParams(
            dimension_semantics=("parallel",),   # shard image-groups across TCs on v7x
        ),
        cost_estimate=pl.CostEstimate(
            flops=int(flops),
            transcendentals=int(transcendentals),
            bytes_accessed=bytes_accessed),
    )(xp, sel_cat, *args)

    # unpack the lane axis back to (N, C, H, W)
    return (out.reshape(groups, c, g, hw)
               .transpose(0, 2, 1, 3)
               .reshape(n, c, h, w))


# ----------------------------------------------------------------------------
# Deterministic parameter init (inference-mode BN folded into scale/shift)
# ----------------------------------------------------------------------------

def _fold_bn(key, prefix, ch):
    k1, k2, k3, k4 = jax.random.split(key, 4)
    shape = prefix + (ch, 1)                       # column vectors: broadcast over lanes
    gamma = 1.0 + 0.1 * jax.random.normal(k1, shape, jnp.float32)
    beta = 0.1 * jax.random.normal(k2, shape, jnp.float32)
    mean = 0.1 * jax.random.normal(k3, shape, jnp.float32)
    var = jnp.abs(jax.random.normal(k4, shape, jnp.float32)) + 0.5
    scale = gamma / jnp.sqrt(var + 1e-5)
    shift = beta - mean * scale
    return scale, shift


def init_params(key, c, n_blocks=6):
    """Blocks 0..5 = first, trunk0, trunk1, mid0, mid1, last; plus the 1x1 gate.

    1x1 conv weights are (Cout, Cin) (== torch weight[:, :, 0, 0]); the 3x3 conv
    weight is (block, tap, Cout, Cin), taps in (kh, kw) row-major order.  Conv
    weights are bf16 (MXU operands); BN scale/shift stay f32.
    """
    cb = c // 4
    ks = jax.random.split(key, 10)
    bn1_s, bn1_b = _fold_bn(ks[0], (n_blocks,), c)
    bn2_s, bn2_b = _fold_bn(ks[1], (n_blocks,), cb)
    bn3_s, bn3_b = _fold_bn(ks[2], (n_blocks,), cb)
    w1 = (0.2 * jax.random.normal(ks[3], (n_blocks, cb, c))).astype(jnp.bfloat16)
    w2 = (0.2 * jax.random.normal(ks[4], (n_blocks, 9, cb, cb))).astype(jnp.bfloat16)
    w3 = (0.2 * jax.random.normal(ks[5], (n_blocks, c, cb))).astype(jnp.bfloat16)
    bnA_s, bnA_b = _fold_bn(ks[6], (), c)
    bnB_s, bnB_b = _fold_bn(ks[7], (), c)
    wA = (0.2 * jax.random.normal(ks[8], (c, c))).astype(jnp.bfloat16)
    wB = (0.2 * jax.random.normal(ks[9], (c, c))).astype(jnp.bfloat16)
    return dict(bn1_s=bn1_s, bn1_b=bn1_b, w1=w1,
                bn2_s=bn2_s, bn2_b=bn2_b, w2=w2,
                bn3_s=bn3_s, bn3_b=bn3_b, w3=w3,
                bnA_s=bnA_s, bnA_b=bnA_b, wA=wA,
                bnB_s=bnB_s, bnB_b=bnB_b, wB=wB)


if __name__ == "__main__":
    key = jax.random.PRNGKey(0)
    k_x, k_p = jax.random.split(key)

    # stage-3 operates at size=(8, 8); C divisible by 4.  N=4 -> G=2 packed
    # images per step (128 lanes) and a 2-step parallel grid (both v7x TCs busy).
    N, C, H, W = 4, 16, 8, 8
    x = jax.random.normal(k_x, (N, C, H, W), jnp.float32)   # NCHW (PyTorch convention)
    params = init_params(k_p, C)

    fwd = jax.jit(functools.partial(attention_module_stage3, params=params))
    out = fwd(x)
    jax.block_until_ready(out)
    assert out.shape == (N, C, H, W), out.shape
    assert bool(jnp.all(jnp.isfinite(out)))
    print("KERNEL_OK")
</pallas_src>

<mosaic_0001>
module attributes {stable_mosaic.version = 11 : i64} {
  func.func @_attention_stage3_kernel(%arg0: i32, %arg1: memref<1x16x128xf32, #tpu.memory_space<vmem>>, %arg2: memref<128x1152xbf16, #tpu.memory_space<vmem>>, %arg3: memref<6x16x1xf32, #tpu.memory_space<vmem>>, %arg4: memref<6x16x1xf32, #tpu.memory_space<vmem>>, %arg5: memref<6x4x16xbf16, #tpu.memory_space<vmem>>, %arg6: memref<6x4x1xf32, #tpu.memory_space<vmem>>, %arg7: memref<6x4x1xf32, #tpu.memory_space<vmem>>, %arg8: memref<6x9x4x4xbf16, #tpu.memory_space<vmem>>, %arg9: memref<6x4x1xf32, #tpu.memory_space<vmem>>, %arg10: memref<6x4x1xf32, #tpu.memory_space<vmem>>, %arg11: memref<6x16x4xbf16, #tpu.memory_space<vmem>>, %arg12: memref<16x1xf32, #tpu.memory_space<vmem>>, %arg13: memref<16x1xf32, #tpu.memory_space<vmem>>, %arg14: memref<16x16xbf16, #tpu.memory_space<vmem>>, %arg15: memref<16x1xf32, #tpu.memory_space<vmem>>, %arg16: memref<16x1xf32, #tpu.memory_space<vmem>>, %arg17: memref<16x16xbf16, #tpu.memory_space<vmem>>, %arg18: memref<1x16x128xf32, #tpu.memory_space<vmem>>) attributes {dimension_semantics = [#tpu.dimension_semantics<parallel>], iteration_bounds = array<i64: 2>, scalar_prefetch = 0 : i64, scratch_operands = 0 : i64, tpu.core_type = #tpu.core_type<tc>, window_params = [{transform_indices = @transform_0, window_bounds = array<i64: 1, 16, 128>}, {pipeline_mode = #tpu.pipeline_mode<synchronous>, transform_indices = @transform_1, window_bounds = array<i64: 128, 1152>}, {pipeline_mode = #tpu.pipeline_mode<synchronous>, transform_indices = @transform_2, window_bounds = array<i64: 6, 16, 1>}, {pipeline_mode = #tpu.pipeline_mode<synchronous>, transform_indices = @transform_3, window_bounds = array<i64: 6, 16, 1>}, {pipeline_mode = #tpu.pipeline_mode<synchronous>, transform_indices = @transform_4, window_bounds = array<i64: 6, 4, 16>}, {pipeline_mode = #tpu.pipeline_mode<synchronous>, transform_indices = @transform_5, window_bounds = array<i64: 6, 4, 1>}, {pipeline_mode = #tpu.pipeline_mode<synchronous>, transform_indices = @transform_6, window_bounds = array<i64: 6, 4, 1>}, {pipeline_mode = #tpu.pipeline_mode<synchronous>, transform_indices = @transform_7, window_bounds = array<i64: 6, 9, 4, 4>}, {pipeline_mode = #tpu.pipeline_mode<synchronous>, transform_indices = @transform_8, window_bounds = array<i64: 6, 4, 1>}, {pipeline_mode = #tpu.pipeline_mode<synchronous>, transform_indices = @transform_9, window_bounds = array<i64: 6, 4, 1>}, {pipeline_mode = #tpu.pipeline_mode<synchronous>, transform_indices = @transform_10, window_bounds = array<i64: 6, 16, 4>}, {pipeline_mode = #tpu.pipeline_mode<synchronous>, transform_indices = @transform_11, window_bounds = array<i64: 16, 1>}, {pipeline_mode = #tpu.pipeline_mode<synchronous>, transform_indices = @transform_12, window_bounds = array<i64: 16, 1>}, {pipeline_mode = #tpu.pipeline_mode<synchronous>, transform_indices = @transform_13, window_bounds = array<i64: 16, 16>}, {pipeline_mode = #tpu.pipeline_mode<synchronous>, transform_indices = @transform_14, window_bounds = array<i64: 16, 1>}, {pipeline_mode = #tpu.pipeline_mode<synchronous>, transform_indices = @transform_15, window_bounds = array<i64: 16, 1>}, {pipeline_mode = #tpu.pipeline_mode<synchronous>, transform_indices = @transform_16, window_bounds = array<i64: 16, 16>}, {transform_indices = @transform_17, window_bounds = array<i64: 1, 16, 128>}]} {
    %c0 = arith.constant 0 : index
    %c0_0 = arith.constant 0 : index
    %c0_1 = arith.constant 0 : index
    %0 = vector.load %arg1[%c0, %c0_0, %c0_1] : memref<1x16x128xf32, #tpu.memory_space<vmem>>, vector<1x16x128xf32>
    %1 = vector.shape_cast %0 : vector<1x16x128xf32> to vector<16x128xf32>
    %c0_2 = arith.constant 0 : index
    %c0_3 = arith.constant 0 : index
    %c0_4 = arith.constant 0 : index
    %2 = vector.load %arg3[%c0_2, %c0_3, %c0_4] : memref<6x16x1xf32, #tpu.memory_space<vmem>>, vector<1x16x1xf32>
    %3 = vector.shape_cast %2 : vector<1x16x1xf32> to vector<16x1xf32>
    %c0_5 = arith.constant 0 : index
    %c0_6 = arith.constant 0 : index
    %c0_7 = arith.constant 0 : index
    %4 = vector.load %arg4[%c0_5, %c0_6, %c0_7] : memref<6x16x1xf32, #tpu.memory_space<vmem>>, vector<1x16x1xf32>
    %5 = vector.shape_cast %4 : vector<1x16x1xf32> to vector<16x1xf32>
    %6 = vector.broadcast %3 : vector<16x1xf32> to vector<16x128xf32>
    %7 = arith.mulf %1, %6 : vector<16x128xf32>
    %8 = vector.broadcast %5 : vector<16x1xf32> to vector<16x128xf32>
    %9 = arith.addf %7, %8 : vector<16x128xf32>
    %cst = arith.constant 0.000000e+00 : f32
    %10 = vector.broadcast %cst : f32 to vector<16x128xf32>
    %11 = arith.maximumf %9, %10 : vector<16x128xf32>
    %c0_8 = arith.constant 0 : index
    %c0_9 = arith.constant 0 : index
    %c0_10 = arith.constant 0 : index
    %12 = vector.load %arg5[%c0_8, %c0_9, %c0_10] : memref<6x4x16xbf16, #tpu.memory_space<vmem>>, vector<1x4x16xbf16>
    %13 = vector.shape_cast %12 : vector<1x4x16xbf16> to vector<4x16xbf16>
    %14 = arith.truncf %11 : vector<16x128xf32> to vector<16x128xbf16>
    %cst_11 = arith.constant dense<0.000000e+00> : vector<4x128xf32>
    %15 = tpu.matmul %13, %14, %cst_11 {dimension_numbers = #tpu.dot_dimension_numbers<[1], [0], [0], [1], [0, 0, 1, 1], [], []>} : vector<4x16xbf16>, vector<16x128xbf16>, vector<4x128xf32> -> vector<4x128xf32>
    %c0_12 = arith.constant 0 : index
    %c0_13 = arith.constant 0 : index
    %c0_14 = arith.constant 0 : index
    %16 = vector.load %arg6[%c0_12, %c0_13, %c0_14] : memref<6x4x1xf32, #tpu.memory_space<vmem>>, vector<1x4x1xf32>
    %17 = vector.shape_cast %16 : vector<1x4x1xf32> to vector<4x1xf32>
    %c0_15 = arith.constant 0 : index
    %c0_16 = arith.constant 0 : index
    %c0_17 = arith.constant 0 : index
    %18 = vector.load %arg7[%c0_15, %c0_16, %c0_17] : memref<6x4x1xf32, #tpu.memory_space<vmem>>, vector<1x4x1xf32>
    %19 = vector.shape_cast %18 : vector<1x4x1xf32> to vector<4x1xf32>
    %20 = vector.broadcast %17 : vector<4x1xf32> to vector<4x128xf32>
    %21 = arith.mulf %15, %20 : vector<4x128xf32>
    %22 = vector.broadcast %19 : vector<4x1xf32> to vector<4x128xf32>
    %23 = arith.addf %21, %22 : vector<4x128xf32>
    %cst_18 = arith.constant 0.000000e+00 : f32
    %24 = vector.broadcast %cst_18 : f32 to vector<4x128xf32>
    %25 = arith.maximumf %23, %24 : vector<4x128xf32>
    %26 = arith.truncf %25 : vector<4x128xf32> to vector<4x128xbf16>
    %c0_19 = arith.constant 0 : index
    %c0_20 = arith.constant 0 : index
    %27 = vector.load %arg2[%c0_19, %c0_20] : memref<128x1152xbf16, #tpu.memory_space<vmem>>, vector<128x1152xbf16>
    %cst_21 = arith.constant dense<0.000000e+00> : vector<4x1152xf32>
    %28 = tpu.matmul %26, %27, %cst_21 {dimension_numbers = #tpu.dot_dimension_numbers<[1], [0], [0], [1], [0, 0, 1, 1], [], []>} : vector<4x128xbf16>, vector<128x1152xbf16>, vector<4x1152xf32> -> vector<4x1152xf32>
    %29 = arith.truncf %28 : vector<4x1152xf32> to vector<4x1152xbf16>
    %c0_22 = arith.constant 0 : index
    %c0_23 = arith.constant 0 : index
    %c0_24 = arith.constant 0 : index
    %c0_25 = arith.constant 0 : index
    %30 = vector.load %arg8[%c0_22, %c0_23, %c0_24, %c0_25] : memref<6x9x4x4xbf16, #tpu.memory_space<vmem>>, vector<1x1x4x4xbf16>
    %31 = vector.shape_cast %30 : vector<1x1x4x4xbf16> to vector<4x4xbf16>
    %32 = vector.extract_strided_slice %29 {offsets = [0, 0], sizes = [4, 128], strides = [1, 1]} : vector<4x1152xbf16> to vector<4x128xbf16>
    %cst_26 = arith.constant dense<0.000000e+00> : vector<4x128xf32>
    %33 = tpu.matmul %31, %32, %cst_26 {dimension_numbers = #tpu.dot_dimension_numbers<[1], [0], [0], [1], [0, 0, 1, 1], [], []>} : vector<4x4xbf16>, vector<4x128xbf16>, vector<4x128xf32> -> vector<4x128xf32>
    %c0_27 = arith.constant 0 : index
    %c1 = arith.constant 1 : index
    %c0_28 = arith.constant 0 : index
    %c0_29 = arith.constant 0 : index
    %34 = vector.load %arg8[%c0_27, %c1, %c0_28, %c0_29] : memref<6x9x4x4xbf16, #tpu.memory_space<vmem>>, vector<1x1x4x4xbf16>
    %35 = vector.shape_cast %34 : vector<1x1x4x4xbf16> to vector<4x4xbf16>
    %36 = vector.extract_strided_slice %29 {offsets = [0, 128], sizes = [4, 128], strides = [1, 1]} : vector<4x1152xbf16> to vector<4x128xbf16>
    %cst_30 = arith.constant dense<0.000000e+00> : vector<4x128xf32>
    %37 = tpu.matmul %35, %36, %cst_30 {dimension_numbers = #tpu.dot_dimension_numbers<[1], [0], [0], [1], [0, 0, 1, 1], [], []>} : vector<4x4xbf16>, vector<4x128xbf16>, vector<4x128xf32> -> vector<4x128xf32>
    %c0_31 = arith.constant 0 : index
    %c2 = arith.constant 2 : index
    %c0_32 = arith.constant 0 : index
    %c0_33 = arith.constant 0 : index
    %38 = vector.load %arg8[%c0_31, %c2, %c0_32, %c0_33] : memref<6x9x4x4xbf16, #tpu.memory_space<vmem>>, vector<1x1x4x4xbf16>
    %39 = vector.shape_cast %38 : vector<1x1x4x4xbf16> to vector<4x4xbf16>
    %40 = vector.extract_strided_slice %29 {offsets = [0, 256], sizes = [4, 128], strides = [1, 1]} : vector<4x1152xbf16> to vector<4x128xbf16>
    %cst_34 = arith.constant dense<0.000000e+00> : vector<4x128xf32>
    %41 = tpu.matmul %39, %40, %cst_34 {dimension_numbers = #tpu.dot_dimension_numbers<[1], [0], [0], [1], [0, 0, 1, 1], [], []>} : vector<4x4xbf16>, vector<4x128xbf16>, vector<4x128xf32> -> vector<4x128xf32>
    %c0_35 = arith.constant 0 : index
    %c3 = arith.constant 3 : index
    %c0_36 = arith.constant 0 : index
    %c0_37 = arith.constant 0 : index
    %42 = vector.load %arg8[%c0_35, %c3, %c0_36, %c0_37] : memref<6x9x4x4xbf16, #tpu.memory_space<vmem>>, vector<1x1x4x4xbf16>
    %43 = vector.shape_cast %42 : vector<1x1x4x4xbf16> to vector<4x4xbf16>
    %44 = vector.extract_strided_slice %29 {offsets = [0, 384], sizes = [4, 128], strides = [1, 1]} : vector<4x1152xbf16> to vector<4x128xbf16>
    %cst_38 = arith.constant dense<0.000000e+00> : vector<4x128xf32>
    %45 = tpu.matmul %43, %44, %cst_38 {dimension_numbers = #tpu.dot_dimension_numbers<[1], [0], [0], [1], [0, 0, 1, 1], [], []>} : vector<4x4xbf16>, vector<4x128xbf16>, vector<4x128xf32> -> vector<4x128xf32>
    %c0_39 = arith.constant 0 : index
    %c4 = arith.constant 4 : index
    %c0_40 = arith.constant 0 : index
    %c0_41 = arith.constant 0 : index
    %46 = vector.load %arg8[%c0_39, %c4, %c0_40, %c0_41] : memref<6x9x4x4xbf16, #tpu.memory_space<vmem>>, vector<1x1x4x4xbf16>
    %47 = vector.shape_cast %46 : vector<1x1x4x4xbf16> to vector<4x4xbf16>
    %48 = vector.extract_strided_slice %29 {offsets = [0, 512], sizes = [4, 128], strides = [1, 1]} : vector<4x1152xbf16> to vector<4x128xbf16>
    %cst_42 = arith.constant dense<0.000000e+00> : vector<4x128xf32>
    %49 = tpu.matmul %47, %48, %cst_42 {dimension_numbers = #tpu.dot_dimension_numbers<[1], [0], [0], [1], [0, 0, 1, 1], [], []>} : vector<4x4xbf16>, vector<4x128xbf16>, vector<4x128xf32> -> vector<4x128xf32>
    %c0_43 = arith.constant 0 : index
    %c5 = arith.constant 5 : index
    %c0_44 = arith.constant 0 : index
    %c0_45 = arith.constant 0 : index
    %50 = vector.load %arg8[%c0_43, %c5, %c0_44, %c0_45] : memref<6x9x4x4xbf16, #tpu.memory_space<vmem>>, vector<1x1x4x4xbf16>
    %51 = vector.shape_cast %50 : vector<1x1x4x4xbf16> to vector<4x4xbf16>
    %52 = vector.extract_strided_slice %29 {offsets = [0, 640], sizes = [4, 128], strides = [1, 1]} : vector<4x1152xbf16> to vector<4x128xbf16>
    %cst_46 = arith.constant dense<0.000000e+00> : vector<4x128xf32>
    %53 = tpu.matmul %51, %52, %cst_46 {dimension_numbers = #tpu.dot_dimension_numbers<[1], [0], [0], [1], [0, 0, 1, 1], [], []>} : vector<4x4xbf16>, vector<4x128xbf16>, vector<4x128xf32> -> vector<4x128xf32>
    %c0_47 = arith.constant 0 : index
    %c6 = arith.constant 6 : index
    %c0_48 = arith.constant 0 : index
    %c0_49 = arith.constant 0 : index
    %54 = vector.load %arg8[%c0_47, %c6, %c0_48, %c0_49] : memref<6x9x4x4xbf16, #tpu.memory_space<vmem>>, vector<1x1x4x4xbf16>
    %55 = vector.shape_cast %54 : vector<1x1x4x4xbf16> to vector<4x4xbf16>
    %56 = vector.extract_strided_slice %29 {offsets = [0, 768], sizes = [4, 128], strides = [1, 1]} : vector<4x1152xbf16> to vector<4x128xbf16>
    %cst_50 = arith.constant dense<0.000000e+00> : vector<4x128xf32>
    %57 = tpu.matmul %55, %56, %cst_50 {dimension_numbers = #tpu.dot_dimension_numbers<[1], [0], [0], [1], [0, 0, 1, 1], [], []>} : vector<4x4xbf16>, vector<4x128xbf16>, vector<4x128xf32> -> vector<4x128xf32>
    %c0_51 = arith.constant 0 : index
    %c7 = arith.constant 7 : index
    %c0_52 = arith.constant 0 : index
    %c0_53 = arith.constant 0 : index
    %58 = vector.load %arg8[%c0_51, %c7, %c0_52, %c0_53] : memref<6x9x4x4xbf16, #tpu.memory_space<vmem>>, vector<1x1x4x4xbf16>
    %59 = vector.shape_cast %58 : vector<1x1x4x4xbf16> to vector<4x4xbf16>
    %60 = vector.extract_strided_slice %29 {offsets = [0, 896], sizes = [4, 128], strides = [1, 1]} : vector<4x1152xbf16> to vector<4x128xbf16>
    %cst_54 = arith.constant dense<0.000000e+00> : vector<4x128xf32>
    %61 = tpu.matmul %59, %60, %cst_54 {dimension_numbers = #tpu.dot_dimension_numbers<[1], [0], [0], [1], [0, 0, 1, 1], [], []>} : vector<4x4xbf16>, vector<4x128xbf16>, vector<4x128xf32> -> vector<4x128xf32>
    %c0_55 = arith.constant 0 : index
    %c8 = arith.constant 8 : index
    %c0_56 = arith.constant 0 : index
    %c0_57 = arith.constant 0 : index
    %62 = vector.load %arg8[%c0_55, %c8, %c0_56, %c0_57] : memref<6x9x4x4xbf16, #tpu.memory_space<vmem>>, vector<1x1x4x4xbf16>
    %63 = vector.shape_cast %62 : vector<1x1x4x4xbf16> to vector<4x4xbf16>
    %64 = vector.extract_strided_slice %29 {offsets = [0, 1024], sizes = [4, 128], strides = [1, 1]} : vector<4x1152xbf16> to vector<4x128xbf16>
    %cst_58 = arith.constant dense<0.000000e+00> : vector<4x128xf32>
    %65 = tpu.matmul %63, %64, %cst_58 {dimension_numbers = #tpu.dot_dimension_numbers<[1], [0], [0], [1], [0, 0, 1, 1], [], []>} : vector<4x4xbf16>, vector<4x128xbf16>, vector<4x128xf32> -> vector<4x128xf32>
    %66 = arith.addf %33, %37 : vector<4x128xf32>
    %67 = arith.addf %41, %45 : vector<4x128xf32>
    %68 = arith.addf %49, %53 : vector<4x128xf32>
    %69 = arith.addf %57, %61 : vector<4x128xf32>
    %70 = arith.addf %66, %67 : vector<4x128xf32>
    %71 = arith.addf %68, %69 : vector<4x128xf32>
    %72 = arith.addf %70, %71 : vector<4x128xf32>
    %73 = arith.addf %72, %65 : vector<4x128xf32>
    %c0_59 = arith.constant 0 : index
    %c0_60 = arith.constant 0 : index
    %c0_61 = arith.constant 0 : index
    %74 = vector.load %arg9[%c0_59, %c0_60, %c0_61] : memref<6x4x1xf32, #tpu.memory_space<vmem>>, vector<1x4x1xf32>
    %75 = vector.shape_cast %74 : vector<1x4x1xf32> to vector<4x1xf32>
    %c0_62 = arith.constant 0 : index
    %c0_63 = arith.constant 0 : index
    %c0_64 = arith.constant 0 : index
    %76 = vector.load %arg10[%c0_62, %c0_63, %c0_64] : memref<6x4x1xf32, #tpu.memory_space<vmem>>, vector<1x4x1xf32>
    %77 = vector.shape_cast %76 : vector<1x4x1xf32> to vector<4x1xf32>
    %78 = vector.broadcast %75 : vector<4x1xf32> to vector<4x128xf32>
    %79 = arith.mulf %73, %78 : vector<4x128xf32>
    %80 = vector.broadcast %77 : vector<4x1xf32> to vector<4x128xf32>
    %81 = arith.addf %79, %80 : vector<4x128xf32>
    %cst_65 = arith.constant 0.000000e+00 : f32
    %82 = vector.broadcast %cst_65 : f32 to vector<4x128xf32>
    %83 = arith.maximumf %81, %82 : vector<4x128xf32>
    %c0_66 = arith.constant 0 : index
    %c0_67 = arith.constant 0 : index
    %c0_68 = arith.constant 0 : index
    %84 = vector.load %arg11[%c0_66, %c0_67, %c0_68] : memref<6x16x4xbf16, #tpu.memory_space<vmem>>, vector<1x16x4xbf16>
    %85 = vector.shape_cast %84 : vector<1x16x4xbf16> to vector<16x4xbf16>
    %86 = arith.truncf %83 : vector<4x128xf32> to vector<4x128xbf16>
    %cst_69 = arith.constant dense<0.000000e+00> : vector<16x128xf32>
    %87 = tpu.matmul %85, %86, %cst_69 {dimension_numbers = #tpu.dot_dimension_numbers<[1], [0], [0], [1], [0, 0, 1, 1], [], []>} : vector<16x4xbf16>, vector<4x128xbf16>, vector<16x128xf32> -> vector<16x128xf32>
    %88 = arith.addf %87, %1 : vector<16x128xf32>
    %c1_70 = arith.constant 1 : index
    %c0_71 = arith.constant 0 : index
    %c0_72 = arith.constant 0 : index
    %89 = vector.load %arg3[%c1_70, %c0_71, %c0_72] : memref<6x16x1xf32, #tpu.memory_space<vmem>>, vector<1x16x1xf32>
    %90 = vector.shape_cast %89 : vector<1x16x1xf32> to vector<16x1xf32>
    %c1_73 = arith.constant 1 : index
    %c0_74 = arith.constant 0 : index
    %c0_75 = arith.constant 0 : index
    %91 = vector.load %arg4[%c1_73, %c0_74, %c0_75] : memref<6x16x1xf32, #tpu.memory_space<vmem>>, vector<1x16x1xf32>
    %92 = vector.shape_cast %91 : vector<1x16x1xf32> to vector<16x1xf32>
    %93 = vector.broadcast %90 : vector<16x1xf32> to vector<16x128xf32>
    %94 = arith.mulf %88, %93 : vector<16x128xf32>
    %95 = vector.broadcast %92 : vector<16x1xf32> to vector<16x128xf32>
    %96 = arith.addf %94, %95 : vector<16x128xf32>
    %cst_76 = arith.constant 0.000000e+00 : f32
    %97 = vector.broadcast %cst_76 : f32 to vector<16x128xf32>
    %98 = arith.maximumf %96, %97 : vector<16x128xf32>
    %c1_77 = arith.constant 1 : index
    %c0_78 = arith.constant 0 : index
    %c0_79 = arith.constant 0 : index
    %99 = vector.load %arg5[%c1_77, %c0_78, %c0_79] : memref<6x4x16xbf16, #tpu.memory_space<vmem>>, vector<1x4x16xbf16>
    %100 = vector.shape_cast %99 : vector<1x4x16xbf16> to vector<4x16xbf16>
    %101 = arith.truncf %98 : vector<16x128xf32> to vector<16x128xbf16>
    %cst_80 = arith.constant dense<0.000000e+00> : vector<4x128xf32>
    %102 = tpu.matmul %100, %101, %cst_80 {dimension_numbers = #tpu.dot_dimension_numbers<[1], [0], [0], [1], [0, 0, 1, 1], [], []>} : vector<4x16xbf16>, vector<16x128xbf16>, vector<4x128xf32> -> vector<4x128xf32>
    %c1_81 = arith.constant 1 : index
    %c0_82 = arith.constant 0 : index
    %c0_83 = arith.constant 0 : index
    %103 = vector.load %arg6[%c1_81, %c0_82, %c0_83] : memref<6x4x1xf32, #tpu.memory_space<vmem>>, vector<1x4x1xf32>
    %104 = vector.shape_cast %103 : vector<1x4x1xf32> to vector<4x1xf32>
    %c1_84 = arith.constant 1 : index
    %c0_85 = arith.constant 0 : index
    %c0_86 = arith.constant 0 : index
    %105 = vector.load %arg7[%c1_84, %c0_85, %c0_86] : memref<6x4x1xf32, #tpu.memory_space<vmem>>, vector<1x4x1xf32>
    %106 = vector.shape_cast %105 : vector<1x4x1xf32> to vector<4x1xf32>
    %107 = vector.broadcast %104 : vector<4x1xf32> to vector<4x128xf32>
    %108 = arith.mulf %102, %107 : vector<4x128xf32>
    %109 = vector.broadcast %106 : vector<4x1xf32> to vector<4x128xf32>
    %110 = arith.addf %108, %109 : vector<4x128xf32>
    %cst_87 = arith.constant 0.000000e+00 : f32
    %111 = vector.broadcast %cst_87 : f32 to vector<4x128xf32>
    %112 = arith.maximumf %110, %111 : vector<4x128xf32>
    %113 = arith.truncf %112 : vector<4x128xf32> to vector<4x128xbf16>
    %c0_88 = arith.constant 0 : index
    %c0_89 = arith.constant 0 : index
    %114 = vector.load %arg2[%c0_88, %c0_89] : memref<128x1152xbf16, #tpu.memory_space<vmem>>, vector<128x1152xbf16>
    %cst_90 = arith.constant dense<0.000000e+00> : vector<4x1152xf32>
    %115 = tpu.matmul %113, %114, %cst_90 {dimension_numbers = #tpu.dot_dimension_numbers<[1], [0], [0], [1], [0, 0, 1, 1], [], []>} : vector<4x128xbf16>, vector<128x1152xbf16>, vector<4x1152xf32> -> vector<4x1152xf32>
    %116 = arith.truncf %115 : vector<4x1152xf32> to vector<4x1152xbf16>
    %c1_91 = arith.constant 1 : index
    %c0_92 = arith.constant 0 : index
    %c0_93 = arith.constant 0 : index
    %c0_94 = arith.constant 0 : index
    %117 = vector.load %arg8[%c1_91, %c0_92, %c0_93, %c0_94] : memref<6x9x4x4xbf16, #tpu.memory_space<vmem>>, vector<1x1x4x4xbf16>
    %118 = vector.shape_cast %117 : vector<1x1x4x4xbf16> to vector<4x4xbf16>
    %119 = vector.extract_strided_slice %116 {offsets = [0, 0], sizes = [4, 128], strides = [1, 1]} : vector<4x1152xbf16> to vector<4x128xbf16>
    %cst_95 = arith.constant dense<0.000000e+00> : vector<4x128xf32>
    %120 = tpu.matmul %118, %119, %cst_95 {dimension_numbers = #tpu.dot_dimension_numbers<[1], [0], [0], [1], [0, 0, 1, 1], [], []>} : vector<4x4xbf16>, vector<4x128xbf16>, vector<4x128xf32> -> vector<4x128xf32>
    %c1_96 = arith.constant 1 : index
    %c1_97 = arith.constant 1 : index
    %c0_98 = arith.constant 0 : index
    %c0_99 = arith.constant 0 : index
    %121 = vector.load %arg8[%c1_96, %c1_97, %c0_98, %c0_99] : memref<6x9x4x4xbf16, #tpu.memory_space<vmem>>, vector<1x1x4x4xbf16>
    %122 = vector.shape_cast %121 : vector<1x1x4x4xbf16> to vector<4x4xbf16>
    %123 = vector.extract_strided_slice %116 {offsets = [0, 128], sizes = [4, 128], strides = [1, 1]} : vector<4x1152xbf16> to vector<4x128xbf16>
    %cst_100 = arith.constant dense<0.000000e+00> : vector<4x128xf32>
    %124 = tpu.matmul %122, %123, %cst_100 {dimension_numbers = #tpu.dot_dimension_numbers<[1], [0], [0], [1], [0, 0, 1, 1], [], []>} : vector<4x4xbf16>, vector<4x128xbf16>, vector<4x128xf32> -> vector<4x128xf32>
    %c1_101 = arith.constant 1 : index
    %c2_102 = arith.constant 2 : index
    %c0_103 = arith.constant 0 : index
    %c0_104 = arith.constant 0 : index
    %125 = vector.load %arg8[%c1_101, %c2_102, %c0_103, %c0_104] : memref<6x9x4x4xbf16, #tpu.memory_space<vmem>>, vector<1x1x4x4xbf16>
    %126 = vector.shape_cast %125 : vector<1x1x4x4xbf16> to vector<4x4xbf16>
    %127 = vector.extract_strided_slice %116 {offsets = [0, 256], sizes = [4, 128], strides = [1, 1]} : vector<4x1152xbf16> to vector<4x128xbf16>
    %cst_105 = arith.constant dense<0.000000e+00> : vector<4x128xf32>
    %128 = tpu.matmul %126, %127, %cst_105 {dimension_numbers = #tpu.dot_dimension_numbers<[1], [0], [0], [1], [0, 0, 1, 1], [], []>} : vector<4x4xbf16>, vector<4x128xbf16>, vector<4x128xf32> -> vector<4x128xf32>
    %c1_106 = arith.constant 1 : index
    %c3_107 = arith.constant 3 : index
    %c0_108 = arith.constant 0 : index
    %c0_109 = arith.constant 0 : index
    %129 = vector.load %arg8[%c1_106, %c3_107, %c0_108, %c0_109] : memref<6x9x4x4xbf16, #tpu.memory_space<vmem>>, vector<1x1x4x4xbf16>
    %130 = vector.shape_cast %129 : vector<1x1x4x4xbf16> to vector<4x4xbf16>
    %131 = vector.extract_strided_slice %116 {offsets = [0, 384], sizes = [4, 128], strides = [1, 1]} : vector<4x1152xbf16> to vector<4x128xbf16>
    %cst_110 = arith.constant dense<0.000000e+00> : vector<4x128xf32>
    %132 = tpu.matmul %130, %131, %cst_110 {dimension_numbers = #tpu.dot_dimension_numbers<[1], [0], [0], [1], [0, 0, 1, 1], [], []>} : vector<4x4xbf16>, vector<4x128xbf16>, vector<4x128xf32> -> vector<4x128xf32>
    %c1_111 = arith.constant 1 : index
    %c4_112 = arith.constant 4 : index
    %c0_113 = arith.constant 0 : index
    %c0_114 = arith.constant 0 : index
    %133 = vector.load %arg8[%c1_111, %c4_112, %c0_113, %c0_114] : memref<6x9x4x4xbf16, #tpu.memory_space<vmem>>, vector<1x1x4x4xbf16>
    %134 = vector.shape_cast %133 : vector<1x1x4x4xbf16> to vector<4x4xbf16>
    %135 = vector.extract_strided_slice %116 {offsets = [0, 512], sizes = [4, 128], strides = [1, 1]} : vector<4x1152xbf16> to vector<4x128xbf16>
    %cst_115 = arith.constant dense<0.000000e+00> : vector<4x128xf32>
    %136 = tpu.matmul %134, %135, %cst_115 {dimension_numbers = #tpu.dot_dimension_numbers<[1], [0], [0], [1], [0, 0, 1, 1], [], []>} : vector<4x4xbf16>, vector<4x128xbf16>, vector<4x128xf32> -> vector<4x128xf32>
    %c1_116 = arith.constant 1 : index
    %c5_117 = arith.constant 5 : index
    %c0_118 = arith.constant 0 : index
    %c0_119 = arith.constant 0 : index
    %137 = vector.load %arg8[%c1_116, %c5_117, %c0_118, %c0_119] : memref<6x9x4x4xbf16, #tpu.memory_space<vmem>>, vector<1x1x4x4xbf16>
    %138 = vector.shape_cast %137 : vector<1x1x4x4xbf16> to vector<4x4xbf16>
    %139 = vector.extract_strided_slice %116 {offsets = [0, 640], sizes = [4, 128], strides = [1, 1]} : vector<4x1152xbf16> to vector<4x128xbf16>
    %cst_120 = arith.constant dense<0.000000e+00> : vector<4x128xf32>
    %140 = tpu.matmul %138, %139, %cst_120 {dimension_numbers = #tpu.dot_dimension_numbers<[1], [0], [0], [1], [0, 0, 1, 1], [], []>} : vector<4x4xbf16>, vector<4x128xbf16>, vector<4x128xf32> -> vector<4x128xf32>
    %c1_121 = arith.constant 1 : index
    %c6_122 = arith.constant 6 : index
    %c0_123 = arith.constant 0 : index
    %c0_124 = arith.constant 0 : index
    %141 = vector.load %arg8[%c1_121, %c6_122, %c0_123, %c0_124] : memref<6x9x4x4xbf16, #tpu.memory_space<vmem>>, vector<1x1x4x4xbf16>
    %142 = vector.shape_cast %141 : vector<1x1x4x4xbf16> to vector<4x4xbf16>
    %143 = vector.extract_strided_slice %116 {offsets = [0, 768], sizes = [4, 128], strides = [1, 1]} : vector<4x1152xbf16> to vector<4x128xbf16>
    %cst_125 = arith.constant dense<0.000000e+00> : vector<4x128xf32>
    %144 = tpu.matmul %142, %143, %cst_125 {dimension_numbers = #tpu.dot_dimension_numbers<[1], [0], [0], [1], [0, 0, 1, 1], [], []>} : vector<4x4xbf16>, vector<4x128xbf16>, vector<4x128xf32> -> vector<4x128xf32>
    %c1_126 = arith.constant 1 : index
    %c7_127 = arith.constant 7 : index
    %c0_128 = arith.constant 0 : index
    %c0_129 = arith.constant 0 : index
    %145 = vector.load %arg8[%c1_126, %c7_127, %c0_128, %c0_129] : memref<6x9x4x4xbf16, #tpu.memory_space<vmem>>, vector<1x1x4x4xbf16>
    %146 = vector.shape_cast %145 : vector<1x1x4x4xbf16> to vector<4x4xbf16>
    %147 = vector.extract_strided_slice %116 {offsets = [0, 896], sizes = [4, 128], strides = [1, 1]} : vector<4x1152xbf16> to vector<4x128xbf16>
    %cst_130 = arith.constant dense<0.000000e+00> : vector<4x128xf32>
    %148 = tpu.matmul %146, %147, %cst_130 {dimension_numbers = #tpu.dot_dimension_numbers<[1], [0], [0], [1], [0, 0, 1, 1], [], []>} : vector<4x4xbf16>, vector<4x128xbf16>, vector<4x128xf32> -> vector<4x128xf32>
    %c1_131 = arith.constant 1 : index
    %c8_132 = arith.constant 8 : index
    %c0_133 = arith.constant 0 : index
    %c0_134 = arith.constant 0 : index
    %149 = vector.load %arg8[%c1_131, %c8_132, %c0_133, %c0_134] : memref<6x9x4x4xbf16, #tpu.memory_space<vmem>>, vector<1x1x4x4xbf16>
    %150 = vector.shape_cast %149 : vector<1x1x4x4xbf16> to vector<4x4xbf16>
    %151 = vector.extract_strided_slice %116 {offsets = [0, 1024], sizes = [4, 128], strides = [1, 1]} : vector<4x1152xbf16> to vector<4x128xbf16>
    %cst_135 = arith.constant dense<0.000000e+00> : vector<4x128xf32>
    %152 = tpu.matmul %150, %151, %cst_135 {dimension_numbers = #tpu.dot_dimension_numbers<[1], [0], [0], [1], [0, 0, 1, 1], [], []>} : vector<4x4xbf16>, vector<4x128xbf16>, vector<4x128xf32> -> vector<4x128xf32>
    %153 = arith.addf %120, %124 : vector<4x128xf32>
    %154 = arith.addf %128, %132 : vector<4x128xf32>
    %155 = arith.addf %136, %140 : vector<4x128xf32>
    %156 = arith.addf %144, %148 : vector<4x128xf32>
    %157 = arith.addf %153, %154 : vector<4x128xf32>
    %158 = arith.addf %155, %156 : vector<4x128xf32>
    %159 = arith.addf %157, %158 : vector<4x128xf32>
    %160 = arith.addf %159, %152 : vector<4x128xf32>
    %c1_136 = arith.constant 1 : index
    %c0_137 = arith.constant 0 : index
    %c0_138 = arith.constant 0 : index
    %161 = vector.load %arg9[%c1_136, %c0_137, %c0_138] : memref<6x4x1xf32, #tpu.memory_space<vmem>>, vector<1x4x1xf32>
    %162 = vector.shape_cast %161 : vector<1x4x1xf32> to vector<4x1xf32>
    %c1_139 = arith.constant 1 : index
    %c0_140 = arith.constant 0 : index
    %c0_141 = arith.constant 0 : index
    %163 = vector.load %arg10[%c1_139, %c0_140, %c0_141] : memref<6x4x1xf32, #tpu.memory_space<vmem>>, vector<1x4x1xf32>
    %164 = vector.shape_cast %163 : vector<1x4x1xf32> to vector<4x1xf32>
    %165 = vector.broadcast %162 : vector<4x1xf32> to vector<4x128xf32>
    %166 = arith.mulf %160, %165 : vector<4x128xf32>
    %167 = vector.broadcast %164 : vector<4x1xf32> to vector<4x128xf32>
    %168 = arith.addf %166, %167 : vector<4x128xf32>
    %cst_142 = arith.constant 0.000000e+00 : f32
    %169 = vector.broadcast %cst_142 : f32 to vector<4x128xf32>
    %170 = arith.maximumf %168, %169 : vector<4x128xf32>
    %c1_143 = arith.constant 1 : index
    %c0_144 = arith.constant 0 : index
    %c0_145 = arith.constant 0 : index
    %171 = vector.load %arg11[%c1_143, %c0_144, %c0_145] : memref<6x16x4xbf16, #tpu.memory_space<vmem>>, vector<1x16x4xbf16>
    %172 = vector.shape_cast %171 : vector<1x16x4xbf16> to vector<16x4xbf16>
    %173 = arith.truncf %170 : vector<4x128xf32> to vector<4x128xbf16>
    %cst_146 = arith.constant dense<0.000000e+00> : vector<16x128xf32>
    %174 = tpu.matmul %172, %173, %cst_146 {dimension_numbers = #tpu.dot_dimension_numbers<[1], [0], [0], [1], [0, 0, 1, 1], [], []>} : vector<16x4xbf16>, vector<4x128xbf16>, vector<16x128xf32> -> vector<16x128xf32>
    %175 = arith.addf %174, %88 : vector<16x128xf32>
    %c2_147 = arith.constant 2 : index
    %c0_148 = arith.constant 0 : index
    %c0_149 = arith.constant 0 : index
    %176 = vector.load %arg3[%c2_147, %c0_148, %c0_149] : memref<6x16x1xf32, #tpu.memory_space<vmem>>, vector<1x16x1xf32>
    %177 = vector.shape_cast %176 : vector<1x16x1xf32> to vector<16x1xf32>
    %c2_150 = arith.constant 2 : index
    %c0_151 = arith.constant 0 : index
    %c0_152 = arith.constant 0 : index
    %178 = vector.load %arg4[%c2_150, %c0_151, %c0_152] : memref<6x16x1xf32, #tpu.memory_space<vmem>>, vector<1x16x1xf32>
    %179 = vector.shape_cast %178 : vector<1x16x1xf32> to vector<16x1xf32>
    %180 = vector.broadcast %177 : vector<16x1xf32> to vector<16x128xf32>
    %181 = arith.mulf %175, %180 : vector<16x128xf32>
    %182 = vector.broadcast %179 : vector<16x1xf32> to vector<16x128xf32>
    %183 = arith.addf %181, %182 : vector<16x128xf32>
    %cst_153 = arith.constant 0.000000e+00 : f32
    %184 = vector.broadcast %cst_153 : f32 to vector<16x128xf32>
    %185 = arith.maximumf %183, %184 : vector<16x128xf32>
    %c2_154 = arith.constant 2 : index
    %c0_155 = arith.constant 0 : index
    %c0_156 = arith.constant 0 : index
    %186 = vector.load %arg5[%c2_154, %c0_155, %c0_156] : memref<6x4x16xbf16, #tpu.memory_space<vmem>>, vector<1x4x16xbf16>
    %187 = vector.shape_cast %186 : vector<1x4x16xbf16> to vector<4x16xbf16>
    %188 = arith.truncf %185 : vector<16x128xf32> to vector<16x128xbf16>
    %cst_157 = arith.constant dense<0.000000e+00> : vector<4x128xf32>
    %189 = tpu.matmul %187, %188, %cst_157 {dimension_numbers = #tpu.dot_dimension_numbers<[1], [0], [0], [1], [0, 0, 1, 1], [], []>} : vector<4x16xbf16>, vector<16x128xbf16>, vector<4x128xf32> -> vector<4x128xf32>
    %c2_158 = arith.constant 2 : index
    %c0_159 = arith.constant 0 : index
    %c0_160 = arith.constant 0 : index
    %190 = vector.load %arg6[%c2_158, %c0_159, %c0_160] : memref<6x4x1xf32, #tpu.memory_space<vmem>>, vector<1x4x1xf32>
    %191 = vector.shape_cast %190 : vector<1x4x1xf32> to vector<4x1xf32>
    %c2_161 = arith.constant 2 : index
    %c0_162 = arith.constant 0 : index
    %c0_163 = arith.constant 0 : index
    %192 = vector.load %arg7[%c2_161, %c0_162, %c0_163] : memref<6x4x1xf32, #tpu.memory_space<vmem>>, vector<1x4x1xf32>
    %193 = vector.shape_cast %192 : vector<1x4x1xf32> to vector<4x1xf32>
    %194 = vector.broadcast %191 : vector<4x1xf32> to vector<4x128xf32>
    %195 = arith.mulf %189, %194 : vector<4x128xf32>
    %196 = vector.broadcast %193 : vector<4x1xf32> to vector<4x128xf32>
    %197 = arith.addf %195, %196 : vector<4x128xf32>
    %cst_164 = arith.constant 0.000000e+00 : f32
    %198 = vector.broadcast %cst_164 : f32 to vector<4x128xf32>
    %199 = arith.maximumf %197, %198 : vector<4x128xf32>
    %200 = arith.truncf %199 : vector<4x128xf32> to vector<4x128xbf16>
    %c0_165 = arith.constant 0 : index
    %c0_166 = arith.constant 0 : index
    %201 = vector.load %arg2[%c0_165, %c0_166] : memref<128x1152xbf16, #tpu.memory_space<vmem>>, vector<128x1152xbf16>
    %cst_167 = arith.constant dense<0.000000e+00> : vector<4x1152xf32>
    %202 = tpu.matmul %200, %201, %cst_167 {dimension_numbers = #tpu.dot_dimension_numbers<[1], [0], [0], [1], [0, 0, 1, 1], [], []>} : vector<4x128xbf16>, vector<128x1152xbf16>, vector<4x1152xf32> -> vector<4x1152xf32>
    %203 = arith.truncf %202 : vector<4x1152xf32> to vector<4x1152xbf16>
    %c2_168 = arith.constant 2 : index
    %c0_169 = arith.constant 0 : index
    %c0_170 = arith.constant 0 : index
    %c0_171 = arith.constant 0 : index
    %204 = vector.load %arg8[%c2_168, %c0_169, %c0_170, %c0_171] : memref<6x9x4x4xbf16, #tpu.memory_space<vmem>>, vector<1x1x4x4xbf16>
    %205 = vector.shape_cast %204 : vector<1x1x4x4xbf16> to vector<4x4xbf16>
    %206 = vector.extract_strided_slice %203 {offsets = [0, 0], sizes = [4, 128], strides = [1, 1]} : vector<4x1152xbf16> to vector<4x128xbf16>
    %cst_172 = arith.constant dense<0.000000e+00> : vector<4x128xf32>
    %207 = tpu.matmul %205, %206, %cst_172 {dimension_numbers = #tpu.dot_dimension_numbers<[1], [0], [0], [1], [0, 0, 1, 1], [], []>} : vector<4x4xbf16>, vector<4x128xbf16>, vector<4x128xf32> -> vector<4x128xf32>
    %c2_173 = arith.constant 2 : index
    %c1_174 = arith.constant 1 : index
    %c0_175 = arith.constant 0 : index
    %c0_176 = arith.constant 0 : index
    %208 = vector.load %arg8[%c2_173, %c1_174, %c0_175, %c0_176] : memref<6x9x4x4xbf16, #tpu.memory_space<vmem>>, vector<1x1x4x4xbf16>
    %209 = vector.shape_cast %208 : vector<1x1x4x4xbf16> to vector<4x4xbf16>
    %210 = vector.extract_strided_slice %203 {offsets = [0, 128], sizes = [4, 128], strides = [1, 1]} : vector<4x1152xbf16> to vector<4x128xbf16>
    %cst_177 = arith.constant dense<0.000000e+00> : vector<4x128xf32>
    %211 = tpu.matmul %209, %210, %cst_177 {dimension_numbers = #tpu.dot_dimension_numbers<[1], [0], [0], [1], [0, 0, 1, 1], [], []>} : vector<4x4xbf16>, vector<4x128xbf16>, vector<4x128xf32> -> vector<4x128xf32>
    %c2_178 = arith.constant 2 : index
    %c2_179 = arith.constant 2 : index
    %c0_180 = arith.constant 0 : index
    %c0_181 = arith.constant 0 : index
    %212 = vector.load %arg8[%c2_178, %c2_179, %c0_180, %c0_181] : memref<6x9x4x4xbf16, #tpu.memory_space<vmem>>, vector<1x1x4x4xbf16>
    %213 = vector.shape_cast %212 : vector<1x1x4x4xbf16> to vector<4x4xbf16>
    %214 = vector.extract_strided_slice %203 {offsets = [0, 256], sizes = [4, 128], strides = [1, 1]} : vector<4x1152xbf16> to vector<4x128xbf16>
    %cst_182 = arith.constant dense<0.000000e+00> : vector<4x128xf32>
    %215 = tpu.matmul %213, %214, %cst_182 {dimension_numbers = #tpu.dot_dimension_numbers<[1], [0], [0], [1], [0, 0, 1, 1], [], []>} : vector<4x4xbf16>, vector<4x128xbf16>, vector<4x128xf32> -> vector<4x128xf32>
    %c2_183 = arith.constant 2 : index
    %c3_184 = arith.constant 3 : index
    %c0_185 = arith.constant 0 : index
    %c0_186 = arith.constant 0 : index
    %216 = vector.load %arg8[%c2_183, %c3_184, %c0_185, %c0_186] : memref<6x9x4x4xbf16, #tpu.memory_space<vmem>>, vector<1x1x4x4xbf16>
    %217 = vector.shape_cast %216 : vector<1x1x4x4xbf16> to vector<4x4xbf16>
    %218 = vector.extract_strided_slice %203 {offsets = [0, 384], sizes = [4, 128], strides = [1, 1]} : vector<4x1152xbf16> to vector<4x128xbf16>
    %cst_187 = arith.constant dense<0.000000e+00> : vector<4x128xf32>
    %219 = tpu.matmul %217, %218, %cst_187 {dimension_numbers = #tpu.dot_dimension_numbers<[1], [0], [0], [1], [0, 0, 1, 1], [], []>} : vector<4x4xbf16>, vector<4x128xbf16>, vector<4x128xf32> -> vector<4x128xf32>
    %c2_188 = arith.constant 2 : index
    %c4_189 = arith.constant 4 : index
    %c0_190 = arith.constant 0 : index
    %c0_191 = arith.constant 0 : index
    %220 = vector.load %arg8[%c2_188, %c4_189, %c0_190, %c0_191] : memref<6x9x4x4xbf16, #tpu.memory_space<vmem>>, vector<1x1x4x4xbf16>
    %221 = vector.shape_cast %220 : vector<1x1x4x4xbf16> to vector<4x4xbf16>
    %222 = vector.extract_strided_slice %203 {offsets = [0, 512], sizes = [4, 128], strides = [1, 1]} : vector<4x1152xbf16> to vector<4x128xbf16>
    %cst_192 = arith.constant dense<0.000000e+00> : vector<4x128xf32>
    %223 = tpu.matmul %221, %222, %cst_192 {dimension_numbers = #tpu.dot_dimension_numbers<[1], [0], [0], [1], [0, 0, 1, 1], [], []>} : vector<4x4xbf16>, vector<4x128xbf16>, vector<4x128xf32> -> vector<4x128xf32>
    %c2_193 = arith.constant 2 : index
    %c5_194 = arith.constant 5 : index
    %c0_195 = arith.constant 0 : index
    %c0_196 = arith.constant 0 : index
    %224 = vector.load %arg8[%c2_193, %c5_194, %c0_195, %c0_196] : memref<6x9x4x4xbf16, #tpu.memory_space<vmem>>, vector<1x1x4x4xbf16>
    %225 = vector.shape_cast %224 : vector<1x1x4x4xbf16> to vector<4x4xbf16>
    %226 = vector.extract_strided_slice %203 {offsets = [0, 640], sizes = [4, 128], strides = [1, 1]} : vector<4x1152xbf16> to vector<4x128xbf16>
    %cst_197 = arith.constant dense<0.000000e+00> : vector<4x128xf32>
    %227 = tpu.matmul %225, %226, %cst_197 {dimension_numbers = #tpu.dot_dimension_numbers<[1], [0], [0], [1], [0, 0, 1, 1], [], []>} : vector<4x4xbf16>, vector<4x128xbf16>, vector<4x128xf32> -> vector<4x128xf32>
    %c2_198 = arith.constant 2 : index
    %c6_199 = arith.constant 6 : index
    %c0_200 = arith.constant 0 : index
    %c0_201 = arith.constant 0 : index
    %228 = vector.load %arg8[%c2_198, %c6_199, %c0_200, %c0_201] : memref<6x9x4x4xbf16, #tpu.memory_space<vmem>>, vector<1x1x4x4xbf16>
    %229 = vector.shape_cast %228 : vector<1x1x4x4xbf16> to vector<4x4xbf16>
    %230 = vector.extract_strided_slice %203 {offsets = [0, 768], sizes = [4, 128], strides = [1, 1]} : vector<4x1152xbf16> to vector<4x128xbf16>
    %cst_202 = arith.constant dense<0.000000e+00> : vector<4x128xf32>
    %231 = tpu.matmul %229, %230, %cst_202 {dimension_numbers = #tpu.dot_dimension_numbers<[1], [0], [0], [1], [0, 0, 1, 1], [], []>} : vector<4x4xbf16>, vector<4x128xbf16>, vector<4x128xf32> -> vector<4x128xf32>
    %c2_203 = arith.constant 2 : index
    %c7_204 = arith.constant 7 : index
    %c0_205 = arith.constant 0 : index
    %c0_206 = arith.constant 0 : index
    %232 = vector.load %arg8[%c2_203, %c7_204, %c0_205, %c0_206] : memref<6x9x4x4xbf16, #tpu.memory_space<vmem>>, vector<1x1x4x4xbf16>
    %233 = vector.shape_cast %232 : vector<1x1x4x4xbf16> to vector<4x4xbf16>
    %234 = vector.extract_strided_slice %203 {offsets = [0, 896], sizes = [4, 128], strides = [1, 1]} : vector<4x1152xbf16> to vector<4x128xbf16>
    %cst_207 = arith.constant dense<0.000000e+00> : vector<4x128xf32>
    %235 = tpu.matmul %233, %234, %cst_207 {dimension_numbers = #tpu.dot_dimension_numbers<[1], [0], [0], [1], [0, 0, 1, 1], [], []>} : vector<4x4xbf16>, vector<4x128xbf16>, vector<4x128xf32> -> vector<4x128xf32>
    %c2_208 = arith.constant 2 : index
    %c8_209 = arith.constant 8 : index
    %c0_210 = arith.constant 0 : index
    %c0_211 = arith.constant 0 : index
    %236 = vector.load %arg8[%c2_208, %c8_209, %c0_210, %c0_211] : memref<6x9x4x4xbf16, #tpu.memory_space<vmem>>, vector<1x1x4x4xbf16>
    %237 = vector.shape_cast %236 : vector<1x1x4x4xbf16> to vector<4x4xbf16>
    %238 = vector.extract_strided_slice %203 {offsets = [0, 1024], sizes = [4, 128], strides = [1, 1]} : vector<4x1152xbf16> to vector<4x128xbf16>
    %cst_212 = arith.constant dense<0.000000e+00> : vector<4x128xf32>
    %239 = tpu.matmul %237, %238, %cst_212 {dimension_numbers = #tpu.dot_dimension_numbers<[1], [0], [0], [1], [0, 0, 1, 1], [], []>} : vector<4x4xbf16>, vector<4x128xbf16>, vector<4x128xf32> -> vector<4x128xf32>
    %240 = arith.addf %207, %211 : vector<4x128xf32>
    %241 = arith.addf %215, %219 : vector<4x128xf32>
    %242 = arith.addf %223, %227 : vector<4x128xf32>
    %243 = arith.addf %231, %235 : vector<4x128xf32>
    %244 = arith.addf %240, %241 : vector<4x128xf32>
    %245 = arith.addf %242, %243 : vector<4x128xf32>
    %246 = arith.addf %244, %245 : vector<4x128xf32>
    %247 = arith.addf %246, %239 : vector<4x128xf32>
    %c2_213 = arith.constant 2 : index
    %c0_214 = arith.constant 0 : index
    %c0_215 = arith.constant 0 : index
    %248 = vector.load %arg9[%c2_213, %c0_214, %c0_215] : memref<6x4x1xf32, #tpu.memory_space<vmem>>, vector<1x4x1xf32>
    %249 = vector.shape_cast %248 : vector<1x4x1xf32> to vector<4x1xf32>
    %c2_216 = arith.constant 2 : index
    %c0_217 = arith.constant 0 : index
    %c0_218 = arith.constant 0 : index
    %250 = vector.load %arg10[%c2_216, %c0_217, %c0_218] : memref<6x4x1xf32, #tpu.memory_space<vmem>>, vector<1x4x1xf32>
    %251 = vector.shape_cast %250 : vector<1x4x1xf32> to vector<4x1xf32>
    %252 = vector.broadcast %249 : vector<4x1xf32> to vector<4x128xf32>
    %253 = arith.mulf %247, %252 : vector<4x128xf32>
    %254 = vector.broadcast %251 : vector<4x1xf32> to vector<4x128xf32>
    %255 = arith.addf %253, %254 : vector<4x128xf32>
    %cst_219 = arith.constant 0.000000e+00 : f32
    %256 = vector.broadcast %cst_219 : f32 to vector<4x128xf32>
    %257 = arith.maximumf %255, %256 : vector<4x128xf32>
    %c2_220 = arith.constant 2 : index
    %c0_221 = arith.constant 0 : index
    %c0_222 = arith.constant 0 : index
    %258 = vector.load %arg11[%c2_220, %c0_221, %c0_222] : memref<6x16x4xbf16, #tpu.memory_space<vmem>>, vector<1x16x4xbf16>
    %259 = vector.shape_cast %258 : vector<1x16x4xbf16> to vector<16x4xbf16>
    %260 = arith.truncf %257 : vector<4x128xf32> to vector<4x128xbf16>
    %cst_223 = arith.constant dense<0.000000e+00> : vector<16x128xf32>
    %261 = tpu.matmul %259, %260, %cst_223 {dimension_numbers = #tpu.dot_dimension_numbers<[1], [0], [0], [1], [0, 0, 1, 1], [], []>} : vector<16x4xbf16>, vector<4x128xbf16>, vector<16x128xf32> -> vector<16x128xf32>
    %262 = arith.addf %261, %175 : vector<16x128xf32>
    %c3_224 = arith.constant 3 : index
    %c0_225 = arith.constant 0 : index
    %c0_226 = arith.constant 0 : index
    %263 = vector.load %arg3[%c3_224, %c0_225, %c0_226] : memref<6x16x1xf32, #tpu.memory_space<vmem>>, vector<1x16x1xf32>
    %264 = vector.shape_cast %263 : vector<1x16x1xf32> to vector<16x1xf32>
    %c3_227 = arith.constant 3 : index
    %c0_228 = arith.constant 0 : index
    %c0_229 = arith.constant 0 : index
    %265 = vector.load %arg4[%c3_227, %c0_228, %c0_229] : memref<6x16x1xf32, #tpu.memory_space<vmem>>, vector<1x16x1xf32>
    %266 = vector.shape_cast %265 : vector<1x16x1xf32> to vector<16x1xf32>
    %267 = vector.broadcast %264 : vector<16x1xf32> to vector<16x128xf32>
    %268 = arith.mulf %88, %267 : vector<16x128xf32>
    %269 = vector.broadcast %266 : vector<16x1xf32> to vector<16x128xf32>
    %270 = arith.addf %268, %269 : vector<16x128xf32>
    %cst_230 = arith.constant 0.000000e+00 : f32
    %271 = vector.broadcast %cst_230 : f32 to vector<16x128xf32>
    %272 = arith.maximumf %270, %271 : vector<16x128xf32>
    %c3_231 = arith.constant 3 : index
    %c0_232 = arith.constant 0 : index
    %c0_233 = arith.constant 0 : index
    %273 = vector.load %arg5[%c3_231, %c0_232, %c0_233] : memref<6x4x16xbf16, #tpu.memory_space<vmem>>, vector<1x4x16xbf16>
    %274 = vector.shape_cast %273 : vector<1x4x16xbf16> to vector<4x16xbf16>
    %275 = arith.truncf %272 : vector<16x128xf32> to vector<16x128xbf16>
    %cst_234 = arith.constant dense<0.000000e+00> : vector<4x128xf32>
    %276 = tpu.matmul %274, %275, %cst_234 {dimension_numbers = #tpu.dot_dimension_numbers<[1], [0], [0], [1], [0, 0, 1, 1], [], []>} : vector<4x16xbf16>, vector<16x128xbf16>, vector<4x128xf32> -> vector<4x128xf32>
    %c3_235 = arith.constant 3 : index
    %c0_236 = arith.constant 0 : index
    %c0_237 = arith.constant 0 : index
    %277 = vector.load %arg6[%c3_235, %c0_236, %c0_237] : memref<6x4x1xf32, #tpu.memory_space<vmem>>, vector<1x4x1xf32>
    %278 = vector.shape_cast %277 : vector<1x4x1xf32> to vector<4x1xf32>
    %c3_238 = arith.constant 3 : index
    %c0_239 = arith.constant 0 : index
    %c0_240 = arith.constant 0 : index
    %279 = vector.load %arg7[%c3_238, %c0_239, %c0_240] : memref<6x4x1xf32, #tpu.memory_space<vmem>>, vector<1x4x1xf32>
    %280 = vector.shape_cast %279 : vector<1x4x1xf32> to vector<4x1xf32>
    %281 = vector.broadcast %278 : vector<4x1xf32> to vector<4x128xf32>
    %282 = arith.mulf %276, %281 : vector<4x128xf32>
    %283 = vector.broadcast %280 : vector<4x1xf32> to vector<4x128xf32>
    %284 = arith.addf %282, %283 : vector<4x128xf32>
    %cst_241 = arith.constant 0.000000e+00 : f32
    %285 = vector.broadcast %cst_241 : f32 to vector<4x128xf32>
    %286 = arith.maximumf %284, %285 : vector<4x128xf32>
    %287 = arith.truncf %286 : vector<4x128xf32> to vector<4x128xbf16>
    %c0_242 = arith.constant 0 : index
    %c0_243 = arith.constant 0 : index
    %288 = vector.load %arg2[%c0_242, %c0_243] : memref<128x1152xbf16, #tpu.memory_space<vmem>>, vector<128x1152xbf16>
    %cst_244 = arith.constant dense<0.000000e+00> : vector<4x1152xf32>
    %289 = tpu.matmul %287, %288, %cst_244 {dimension_numbers = #tpu.dot_dimension_numbers<[1], [0], [0], [1], [0, 0, 1, 1], [], []>} : vector<4x128xbf16>, vector<128x1152xbf16>, vector<4x1152xf32> -> vector<4x1152xf32>
    %290 = arith.truncf %289 : vector<4x1152xf32> to vector<4x1152xbf16>
    %c3_245 = arith.constant 3 : index
    %c0_246 = arith.constant 0 : index
    %c0_247 = arith.constant 0 : index
    %c0_248 = arith.constant 0 : index
    %291 = vector.load %arg8[%c3_245, %c0_246, %c0_247, %c0_248] : memref<6x9x4x4xbf16, #tpu.memory_space<vmem>>, vector<1x1x4x4xbf16>
    %292 = vector.shape_cast %291 : vector<1x1x4x4xbf16> to vector<4x4xbf16>
    %293 = vector.extract_strided_slice %290 {offsets = [0, 0], sizes = [4, 128], strides = [1, 1]} : vector<4x1152xbf16> to vector<4x128xbf16>
    %cst_249 = arith.constant dense<0.000000e+00> : vector<4x128xf32>
    %294 = tpu.matmul %292, %293, %cst_249 {dimension_numbers = #tpu.dot_dimension_numbers<[1], [0], [0], [1], [0, 0, 1, 1], [], []>} : vector<4x4xbf16>, vector<4x128xbf16>, vector<4x128xf32> -> vector<4x128xf32>
    %c3_250 = arith.constant 3 : index
    %c1_251 = arith.constant 1 : index
    %c0_252 = arith.constant 0 : index
    %c0_253 = arith.constant 0 : index
    %295 = vector.load %arg8[%c3_250, %c1_251, %c0_252, %c0_253] : memref<6x9x4x4xbf16, #tpu.memory_space<vmem>>, vector<1x1x4x4xbf16>
    %296 = vector.shape_cast %295 : vector<1x1x4x4xbf16> to vector<4x4xbf16>
    %297 = vector.extract_strided_slice %290 {offsets = [0, 128], sizes = [4, 128], strides = [1, 1]} : vector<4x1152xbf16> to vector<4x128xbf16>
    %cst_254 = arith.constant dense<0.000000e+00> : vector<4x128xf32>
    %298 = tpu.matmul %296, %297, %cst_254 {dimension_numbers = #tpu.dot_dimension_numbers<[1], [0], [0], [1], [0, 0, 1, 1], [], []>} : vector<4x4xbf16>, vector<4x128xbf16>, vector<4x128xf32> -> vector<4x128xf32>
    %c3_255 = arith.constant 3 : index
    %c2_256 = arith.constant 2 : index
    %c0_257 = arith.constant 0 : index
    %c0_258 = arith.constant 0 : index
    %299 = vector.load %arg8[%c3_255, %c2_256, %c0_257, %c0_258] : memref<6x9x4x4xbf16, #tpu.memory_space<vmem>>, vector<1x1x4x4xbf16>
    %300 = vector.shape_cast %299 : vector<1x1x4x4xbf16> to vector<4x4xbf16>
    %301 = vector.extract_strided_slice %290 {offsets = [0, 256], sizes = [4, 128], strides = [1, 1]} : vector<4x1152xbf16> to vector<4x128xbf16>
    %cst_259 = arith.constant dense<0.000000e+00> : vector<4x128xf32>
    %302 = tpu.matmul %300, %301, %cst_259 {dimension_numbers = #tpu.dot_dimension_numbers<[1], [0], [0], [1], [0, 0, 1, 1], [], []>} : vector<4x4xbf16>, vector<4x128xbf16>, vector<4x128xf32> -> vector<4x128xf32>
    %c3_260 = arith.constant 3 : index
    %c3_261 = arith.constant 3 : index
    %c0_262 = arith.constant 0 : index
    %c0_263 = arith.constant 0 : index
    %303 = vector.load %arg8[%c3_260, %c3_261, %c0_262, %c0_263] : memref<6x9x4x4xbf16, #tpu.memory_space<vmem>>, vector<1x1x4x4xbf16>
    %304 = vector.shape_cast %303 : vector<1x1x4x4xbf16> to vector<4x4xbf16>
    %305 = vector.extract_strided_slice %290 {offsets = [0, 384], sizes = [4, 128], strides = [1, 1]} : vector<4x1152xbf16> to vector<4x128xbf16>
    %cst_264 = arith.constant dense<0.000000e+00> : vector<4x128xf32>
    %306 = tpu.matmul %304, %305, %cst_264 {dimension_numbers = #tpu.dot_dimension_numbers<[1], [0], [0], [1], [0, 0, 1, 1], [], []>} : vector<4x4xbf16>, vector<4x128xbf16>, vector<4x128xf32> -> vector<4x128xf32>
    %c3_265 = arith.constant 3 : index
    %c4_266 = arith.constant 4 : index
    %c0_267 = arith.constant 0 : index
    %c0_268 = arith.constant 0 : index
    %307 = vector.load %arg8[%c3_265, %c4_266, %c0_267, %c0_268] : memref<6x9x4x4xbf16, #tpu.memory_space<vmem>>, vector<1x1x4x4xbf16>
    %308 = vector.shape_cast %307 : vector<1x1x4x4xbf16> to vector<4x4xbf16>
    %309 = vector.extract_strided_slice %290 {offsets = [0, 512], sizes = [4, 128], strides = [1, 1]} : vector<4x1152xbf16> to vector<4x128xbf16>
    %cst_269 = arith.constant dense<0.000000e+00> : vector<4x128xf32>
    %310 = tpu.matmul %308, %309, %cst_269 {dimension_numbers = #tpu.dot_dimension_numbers<[1], [0], [0], [1], [0, 0, 1, 1], [], []>} : vector<4x4xbf16>, vector<4x128xbf16>, vector<4x128xf32> -> vector<4x128xf32>
    %c3_270 = arith.constant 3 : index
    %c5_271 = arith.constant 5 : index
    %c0_272 = arith.constant 0 : index
    %c0_273 = arith.constant 0 : index
    %311 = vector.load %arg8[%c3_270, %c5_271, %c0_272, %c0_273] : memref<6x9x4x4xbf16, #tpu.memory_space<vmem>>, vector<1x1x4x4xbf16>
    %312 = vector.shape_cast %311 : vector<1x1x4x4xbf16> to vector<4x4xbf16>
    %313 = vector.extract_strided_slice %290 {offsets = [0, 640], sizes = [4, 128], strides = [1, 1]} : vector<4x1152xbf16> to vector<4x128xbf16>
    %cst_274 = arith.constant dense<0.000000e+00> : vector<4x128xf32>
    %314 = tpu.matmul %312, %313, %cst_274 {dimension_numbers = #tpu.dot_dimension_numbers<[1], [0], [0], [1], [0, 0, 1, 1], [], []>} : vector<4x4xbf16>, vector<4x128xbf16>, vector<4x128xf32> -> vector<4x128xf32>
    %c3_275 = arith.constant 3 : index
    %c6_276 = arith.constant 6 : index
    %c0_277 = arith.constant 0 : index
    %c0_278 = arith.constant 0 : index
    %315 = vector.load %arg8[%c3_275, %c6_276, %c0_277, %c0_278] : memref<6x9x4x4xbf16, #tpu.memory_space<vmem>>, vector<1x1x4x4xbf16>
    %316 = vector.shape_cast %315 : vector<1x1x4x4xbf16> to vector<4x4xbf16>
    %317 = vector.extract_strided_slice %290 {offsets = [0, 768], sizes = [4, 128], strides = [1, 1]} : vector<4x1152xbf16> to vector<4x128xbf16>
    %cst_279 = arith.constant dense<0.000000e+00> : vector<4x128xf32>
    %318 = tpu.matmul %316, %317, %cst_279 {dimension_numbers = #tpu.dot_dimension_numbers<[1], [0], [0], [1], [0, 0, 1, 1], [], []>} : vector<4x4xbf16>, vector<4x128xbf16>, vector<4x128xf32> -> vector<4x128xf32>
    %c3_280 = arith.constant 3 : index
    %c7_281 = arith.constant 7 : index
    %c0_282 = arith.constant 0 : index
    %c0_283 = arith.constant 0 : index
    %319 = vector.load %arg8[%c3_280, %c7_281, %c0_282, %c0_283] : memref<6x9x4x4xbf16, #tpu.memory_space<vmem>>, vector<1x1x4x4xbf16>
    %320 = vector.shape_cast %319 : vector<1x1x4x4xbf16> to vector<4x4xbf16>
    %321 = vector.extract_strided_slice %290 {offsets = [0, 896], sizes = [4, 128], strides = [1, 1]} : vector<4x1152xbf16> to vector<4x128xbf16>
    %cst_284 = arith.constant dense<0.000000e+00> : vector<4x128xf32>
    %322 = tpu.matmul %320, %321, %cst_284 {dimension_numbers = #tpu.dot_dimension_numbers<[1], [0], [0], [1], [0, 0, 1, 1], [], []>} : vector<4x4xbf16>, vector<4x128xbf16>, vector<4x128xf32> -> vector<4x128xf32>
    %c3_285 = arith.constant 3 : index
    %c8_286 = arith.constant 8 : index
    %c0_287 = arith.constant 0 : index
    %c0_288 = arith.constant 0 : index
    %323 = vector.load %arg8[%c3_285, %c8_286, %c0_287, %c0_288] : memref<6x9x4x4xbf16, #tpu.memory_space<vmem>>, vector<1x1x4x4xbf16>
    %324 = vector.shape_cast %323 : vector<1x1x4x4xbf16> to vector<4x4xbf16>
    %325 = vector.extract_strided_slice %290 {offsets = [0, 1024], sizes = [4, 128], strides = [1, 1]} : vector<4x1152xbf16> to vector<4x128xbf16>
    %cst_289 = arith.constant dense<0.000000e+00> : vector<4x128xf32>
    %326 = tpu.matmul %324, %325, %cst_289 {dimension_numbers = #tpu.dot_dimension_numbers<[1], [0], [0], [1], [0, 0, 1, 1], [], []>} : vector<4x4xbf16>, vector<4x128xbf16>, vector<4x128xf32> -> vector<4x128xf32>
    %327 = arith.addf %294, %298 : vector<4x128xf32>
    %328 = arith.addf %302, %306 : vector<4x128xf32>
    %329 = arith.addf %310, %314 : vector<4x128xf32>
    %330 = arith.addf %318, %322 : vector<4x128xf32>
    %331 = arith.addf %327, %328 : vector<4x128xf32>
    %332 = arith.addf %329, %330 : vector<4x128xf32>
    %333 = arith.addf %331, %332 : vector<4x128xf32>
    %334 = arith.addf %333, %326 : vector<4x128xf32>
    %c3_290 = arith.constant 3 : index
    %c0_291 = arith.constant 0 : index
    %c0_292 = arith.constant 0 : index
    %335 = vector.load %arg9[%c3_290, %c0_291, %c0_292] : memref<6x4x1xf32, #tpu.memory_space<vmem>>, vector<1x4x1xf32>
    %336 = vector.shape_cast %335 : vector<1x4x1xf32> to vector<4x1xf32>
    %c3_293 = arith.constant 3 : index
    %c0_294 = arith.constant 0 : index
    %c0_295 = arith.constant 0 : index
    %337 = vector.load %arg10[%c3_293, %c0_294, %c0_295] : memref<6x4x1xf32, #tpu.memory_space<vmem>>, vector<1x4x1xf32>
    %338 = vector.shape_cast %337 : vector<1x4x1xf32> to vector<4x1xf32>
    %339 = vector.broadcast %336 : vector<4x1xf32> to vector<4x128xf32>
    %340 = arith.mulf %334, %339 : vector<4x128xf32>
    %341 = vector.broadcast %338 : vector<4x1xf32> to vector<4x128xf32>
    %342 = arith.addf %340, %341 : vector<4x128xf32>
    %cst_296 = arith.constant 0.000000e+00 : f32
    %343 = vector.broadcast %cst_296 : f32 to vector<4x128xf32>
    %344 = arith.maximumf %342, %343 : vector<4x128xf32>
    %c3_297 = arith.constant 3 : index
    %c0_298 = arith.constant 0 : index
    %c0_299 = arith.constant 0 : index
    %345 = vector.load %arg11[%c3_297, %c0_298, %c0_299] : memref<6x16x4xbf16, #tpu.memory_space<vmem>>, vector<1x16x4xbf16>
    %346 = vector.shape_cast %345 : vector<1x16x4xbf16> to vector<16x4xbf16>
    %347 = arith.truncf %344 : vector<4x128xf32> to vector<4x128xbf16>
    %cst_300 = arith.constant dense<0.000000e+00> : vector<16x128xf32>
    %348 = tpu.matmul %346, %347, %cst_300 {dimension_numbers = #tpu.dot_dimension_numbers<[1], [0], [0], [1], [0, 0, 1, 1], [], []>} : vector<16x4xbf16>, vector<4x128xbf16>, vector<16x128xf32> -> vector<16x128xf32>
    %349 = arith.addf %348, %88 : vector<16x128xf32>
    %c4_301 = arith.constant 4 : index
    %c0_302 = arith.constant 0 : index
    %c0_303 = arith.constant 0 : index
    %350 = vector.load %arg3[%c4_301, %c0_302, %c0_303] : memref<6x16x1xf32, #tpu.memory_space<vmem>>, vector<1x16x1xf32>
    %351 = vector.shape_cast %350 : vector<1x16x1xf32> to vector<16x1xf32>
    %c4_304 = arith.constant 4 : index
    %c0_305 = arith.constant 0 : index
    %c0_306 = arith.constant 0 : index
    %352 = vector.load %arg4[%c4_304, %c0_305, %c0_306] : memref<6x16x1xf32, #tpu.memory_space<vmem>>, vector<1x16x1xf32>
    %353 = vector.shape_cast %352 : vector<1x16x1xf32> to vector<16x1xf32>
    %354 = vector.broadcast %351 : vector<16x1xf32> to vector<16x128xf32>
    %355 = arith.mulf %349, %354 : vector<16x128xf32>
    %356 = vector.broadcast %353 : vector<16x1xf32> to vector<16x128xf32>
    %357 = arith.addf %355, %356 : vector<16x128xf32>
    %cst_307 = arith.constant 0.000000e+00 : f32
    %358 = vector.broadcast %cst_307 : f32 to vector<16x128xf32>
    %359 = arith.maximumf %357, %358 : vector<16x128xf32>
    %c4_308 = arith.constant 4 : index
    %c0_309 = arith.constant 0 : index
    %c0_310 = arith.constant 0 : index
    %360 = vector.load %arg5[%c4_308, %c0_309, %c0_310] : memref<6x4x16xbf16, #tpu.memory_space<vmem>>, vector<1x4x16xbf16>
    %361 = vector.shape_cast %360 : vector<1x4x16xbf16> to vector<4x16xbf16>
    %362 = arith.truncf %359 : vector<16x128xf32> to vector<16x128xbf16>
    %cst_311 = arith.constant dense<0.000000e+00> : vector<4x128xf32>
    %363 = tpu.matmul %361, %362, %cst_311 {dimension_numbers = #tpu.dot_dimension_numbers<[1], [0], [0], [1], [0, 0, 1, 1], [], []>} : vector<4x16xbf16>, vector<16x128xbf16>, vector<4x128xf32> -> vector<4x128xf32>
    %c4_312 = arith.constant 4 : index
    %c0_313 = arith.constant 0 : index
    %c0_314 = arith.constant 0 : index
    %364 = vector.load %arg6[%c4_312, %c0_313, %c0_314] : memref<6x4x1xf32, #tpu.memory_space<vmem>>, vector<1x4x1xf32>
    %365 = vector.shape_cast %364 : vector<1x4x1xf32> to vector<4x1xf32>
    %c4_315 = arith.constant 4 : index
    %c0_316 = arith.constant 0 : index
    %c0_317 = arith.constant 0 : index
    %366 = vector.load %arg7[%c4_315, %c0_316, %c0_317] : memref<6x4x1xf32, #tpu.memory_space<vmem>>, vector<1x4x1xf32>
    %367 = vector.shape_cast %366 : vector<1x4x1xf32> to vector<4x1xf32>
    %368 = vector.broadcast %365 : vector<4x1xf32> to vector<4x128xf32>
    %369 = arith.mulf %363, %368 : vector<4x128xf32>
    %370 = vector.broadcast %367 : vector<4x1xf32> to vector<4x128xf32>
    %371 = arith.addf %369, %370 : vector<4x128xf32>
    %cst_318 = arith.constant 0.000000e+00 : f32
    %372 = vector.broadcast %cst_318 : f32 to vector<4x128xf32>
    %373 = arith.maximumf %371, %372 : vector<4x128xf32>
    %374 = arith.truncf %373 : vector<4x128xf32> to vector<4x128xbf16>
    %c0_319 = arith.constant 0 : index
    %c0_320 = arith.constant 0 : index
    %375 = vector.load %arg2[%c0_319, %c0_320] : memref<128x1152xbf16, #tpu.memory_space<vmem>>, vector<128x1152xbf16>
    %cst_321 = arith.constant dense<0.000000e+00> : vector<4x1152xf32>
    %376 = tpu.matmul %374, %375, %cst_321 {dimension_numbers = #tpu.dot_dimension_numbers<[1], [0], [0], [1], [0, 0, 1, 1], [], []>} : vector<4x128xbf16>, vector<128x1152xbf16>, vector<4x1152xf32> -> vector<4x1152xf32>
    %377 = arith.truncf %376 : vector<4x1152xf32> to vector<4x1152xbf16>
    %c4_322 = arith.constant 4 : index
    %c0_323 = arith.constant 0 : index
    %c0_324 = arith.constant 0 : index
    %c0_325 = arith.constant 0 : index
    %378 = vector.load %arg8[%c4_322, %c0_323, %c0_324, %c0_325] : memref<6x9x4x4xbf16, #tpu.memory_space<vmem>>, vector<1x1x4x4xbf16>
    %379 = vector.shape_cast %378 : vector<1x1x4x4xbf16> to vector<4x4xbf16>
    %380 = vector.extract_strided_slice %377 {offsets = [0, 0], sizes = [4, 128], strides = [1, 1]} : vector<4x1152xbf16> to vector<4x128xbf16>
    %cst_326 = arith.constant dense<0.000000e+00> : vector<4x128xf32>
    %381 = tpu.matmul %379, %380, %cst_326 {dimension_numbers = #tpu.dot_dimension_numbers<[1], [0], [0], [1], [0, 0, 1, 1], [], []>} : vector<4x4xbf16>, vector<4x128xbf16>, vector<4x128xf32> -> vector<4x128xf32>
    %c4_327 = arith.constant 4 : index
    %c1_328 = arith.constant 1 : index
    %c0_329 = arith.constant 0 : index
    %c0_330 = arith.constant 0 : index
    %382 = vector.load %arg8[%c4_327, %c1_328, %c0_329, %c0_330] : memref<6x9x4x4xbf16, #tpu.memory_space<vmem>>, vector<1x1x4x4xbf16>
    %383 = vector.shape_cast %382 : vector<1x1x4x4xbf16> to vector<4x4xbf16>
    %384 = vector.extract_strided_slice %377 {offsets = [0, 128], sizes = [4, 128], strides = [1, 1]} : vector<4x1152xbf16> to vector<4x128xbf16>
    %cst_331 = arith.constant dense<0.000000e+00> : vector<4x128xf32>
    %385 = tpu.matmul %383, %384, %cst_331 {dimension_numbers = #tpu.dot_dimension_numbers<[1], [0], [0], [1], [0, 0, 1, 1], [], []>} : vector<4x4xbf16>, vector<4x128xbf16>, vector<4x128xf32> -> vector<4x128xf32>
    %c4_332 = arith.constant 4 : index
    %c2_333 = arith.constant 2 : index
    %c0_334 = arith.constant 0 : index
    %c0_335 = arith.constant 0 : index
    %386 = vector.load %arg8[%c4_332, %c2_333, %c0_334, %c0_335] : memref<6x9x4x4xbf16, #tpu.memory_space<vmem>>, vector<1x1x4x4xbf16>
    %387 = vector.shape_cast %386 : vector<1x1x4x4xbf16> to vector<4x4xbf16>
    %388 = vector.extract_strided_slice %377 {offsets = [0, 256], sizes = [4, 128], strides = [1, 1]} : vector<4x1152xbf16> to vector<4x128xbf16>
    %cst_336 = arith.constant dense<0.000000e+00> : vector<4x128xf32>
    %389 = tpu.matmul %387, %388, %cst_336 {dimension_numbers = #tpu.dot_dimension_numbers<[1], [0], [0], [1], [0, 0, 1, 1], [], []>} : vector<4x4xbf16>, vector<4x128xbf16>, vector<4x128xf32> -> vector<4x128xf32>
    %c4_337 = arith.constant 4 : index
    %c3_338 = arith.constant 3 : index
    %c0_339 = arith.constant 0 : index
    %c0_340 = arith.constant 0 : index
    %390 = vector.load %arg8[%c4_337, %c3_338, %c0_339, %c0_340] : memref<6x9x4x4xbf16, #tpu.memory_space<vmem>>, vector<1x1x4x4xbf16>
    %391 = vector.shape_cast %390 : vector<1x1x4x4xbf16> to vector<4x4xbf16>
    %392 = vector.extract_strided_slice %377 {offsets = [0, 384], sizes = [4, 128], strides = [1, 1]} : vector<4x1152xbf16> to vector<4x128xbf16>
    %cst_341 = arith.constant dense<0.000000e+00> : vector<4x128xf32>
    %393 = tpu.matmul %391, %392, %cst_341 {dimension_numbers = #tpu.dot_dimension_numbers<[1], [0], [0], [1], [0, 0, 1, 1], [], []>} : vector<4x4xbf16>, vector<4x128xbf16>, vector<4x128xf32> -> vector<4x128xf32>
    %c4_342 = arith.constant 4 : index
    %c4_343 = arith.constant 4 : index
    %c0_344 = arith.constant 0 : index
    %c0_345 = arith.constant 0 : index
    %394 = vector.load %arg8[%c4_342, %c4_343, %c0_344, %c0_345] : memref<6x9x4x4xbf16, #tpu.memory_space<vmem>>, vector<1x1x4x4xbf16>
    %395 = vector.shape_cast %394 : vector<1x1x4x4xbf16> to vector<4x4xbf16>
    %396 = vector.extract_strided_slice %377 {offsets = [0, 512], sizes = [4, 128], strides = [1, 1]} : vector<4x1152xbf16> to vector<4x128xbf16>
    %cst_346 = arith.constant dense<0.000000e+00> : vector<4x128xf32>
    %397 = tpu.matmul %395, %396, %cst_346 {dimension_numbers = #tpu.dot_dimension_numbers<[1], [0], [0], [1], [0, 0, 1, 1], [], []>} : vector<4x4xbf16>, vector<4x128xbf16>, vector<4x128xf32> -> vector<4x128xf32>
    %c4_347 = arith.constant 4 : index
    %c5_348 = arith.constant 5 : index
    %c0_349 = arith.constant 0 : index
    %c0_350 = arith.constant 0 : index
    %398 = vector.load %arg8[%c4_347, %c5_348, %c0_349, %c0_350] : memref<6x9x4x4xbf16, #tpu.memory_space<vmem>>, vector<1x1x4x4xbf16>
    %399 = vector.shape_cast %398 : vector<1x1x4x4xbf16> to vector<4x4xbf16>
    %400 = vector.extract_strided_slice %377 {offsets = [0, 640], sizes = [4, 128], strides = [1, 1]} : vector<4x1152xbf16> to vector<4x128xbf16>
    %cst_351 = arith.constant dense<0.000000e+00> : vector<4x128xf32>
    %401 = tpu.matmul %399, %400, %cst_351 {dimension_numbers = #tpu.dot_dimension_numbers<[1], [0], [0], [1], [0, 0, 1, 1], [], []>} : vector<4x4xbf16>, vector<4x128xbf16>, vector<4x128xf32> -> vector<4x128xf32>
    %c4_352 = arith.constant 4 : index
    %c6_353 = arith.constant 6 : index
    %c0_354 = arith.constant 0 : index
    %c0_355 = arith.constant 0 : index
    %402 = vector.load %arg8[%c4_352, %c6_353, %c0_354, %c0_355] : memref<6x9x4x4xbf16, #tpu.memory_space<vmem>>, vector<1x1x4x4xbf16>
    %403 = vector.shape_cast %402 : vector<1x1x4x4xbf16> to vector<4x4xbf16>
    %404 = vector.extract_strided_slice %377 {offsets = [0, 768], sizes = [4, 128], strides = [1, 1]} : vector<4x1152xbf16> to vector<4x128xbf16>
    %cst_356 = arith.constant dense<0.000000e+00> : vector<4x128xf32>
    %405 = tpu.matmul %403, %404, %cst_356 {dimension_numbers = #tpu.dot_dimension_numbers<[1], [0], [0], [1], [0, 0, 1, 1], [], []>} : vector<4x4xbf16>, vector<4x128xbf16>, vector<4x128xf32> -> vector<4x128xf32>
    %c4_357 = arith.constant 4 : index
    %c7_358 = arith.constant 7 : index
    %c0_359 = arith.constant 0 : index
    %c0_360 = arith.constant 0 : index
    %406 = vector.load %arg8[%c4_357, %c7_358, %c0_359, %c0_360] : memref<6x9x4x4xbf16, #tpu.memory_space<vmem>>, vector<1x1x4x4xbf16>
    %407 = vector.shape_cast %406 : vector<1x1x4x4xbf16> to vector<4x4xbf16>
    %408 = vector.extract_strided_slice %377 {offsets = [0, 896], sizes = [4, 128], strides = [1, 1]} : vector<4x1152xbf16> to vector<4x128xbf16>
    %cst_361 = arith.constant dense<0.000000e+00> : vector<4x128xf32>
    %409 = tpu.matmul %407, %408, %cst_361 {dimension_numbers = #tpu.dot_dimension_numbers<[1], [0], [0], [1], [0, 0, 1, 1], [], []>} : vector<4x4xbf16>, vector<4x128xbf16>, vector<4x128xf32> -> vector<4x128xf32>
    %c4_362 = arith.constant 4 : index
    %c8_363 = arith.constant 8 : index
    %c0_364 = arith.constant 0 : index
    %c0_365 = arith.constant 0 : index
    %410 = vector.load %arg8[%c4_362, %c8_363, %c0_364, %c0_365] : memref<6x9x4x4xbf16, #tpu.memory_space<vmem>>, vector<1x1x4x4xbf16>
    %411 = vector.shape_cast %410 : vector<1x1x4x4xbf16> to vector<4x4xbf16>
    %412 = vector.extract_strided_slice %377 {offsets = [0, 1024], sizes = [4, 128], strides = [1, 1]} : vector<4x1152xbf16> to vector<4x128xbf16>
    %cst_366 = arith.constant dense<0.000000e+00> : vector<4x128xf32>
    %413 = tpu.matmul %411, %412, %cst_366 {dimension_numbers = #tpu.dot_dimension_numbers<[1], [0], [0], [1], [0, 0, 1, 1], [], []>} : vector<4x4xbf16>, vector<4x128xbf16>, vector<4x128xf32> -> vector<4x128xf32>
    %414 = arith.addf %381, %385 : vector<4x128xf32>
    %415 = arith.addf %389, %393 : vector<4x128xf32>
    %416 = arith.addf %397, %401 : vector<4x128xf32>
    %417 = arith.addf %405, %409 : vector<4x128xf32>
    %418 = arith.addf %414, %415 : vector<4x128xf32>
    %419 = arith.addf %416, %417 : vector<4x128xf32>
    %420 = arith.addf %418, %419 : vector<4x128xf32>
    %421 = arith.addf %420, %413 : vector<4x128xf32>
    %c4_367 = arith.constant 4 : index
    %c0_368 = arith.constant 0 : index
    %c0_369 = arith.constant 0 : index
    %422 = vector.load %arg9[%c4_367, %c0_368, %c0_369] : memref<6x4x1xf32, #tpu.memory_space<vmem>>, vector<1x4x1xf32>
    %423 = vector.shape_cast %422 : vector<1x4x1xf32> to vector<4x1xf32>
    %c4_370 = arith.constant 4 : index
    %c0_371 = arith.constant 0 : index
    %c0_372 = arith.constant 0 : index
    %424 = vector.load %arg10[%c4_370, %c0_371, %c0_372] : memref<6x4x1xf32, #tpu.memory_space<vmem>>, vector<1x4x1xf32>
    %425 = vector.shape_cast %424 : vector<1x4x1xf32> to vector<4x1xf32>
    %426 = vector.broadcast %423 : vector<4x1xf32> to vector<4x128xf32>
    %427 = arith.mulf %421, %426 : vector<4x128xf32>
    %428 = vector.broadcast %425 : vector<4x1xf32> to vector<4x128xf32>
    %429 = arith.addf %427, %428 : vector<4x128xf32>
    %cst_373 = arith.constant 0.000000e+00 : f32
    %430 = vector.broadcast %cst_373 : f32 to vector<4x128xf32>
    %431 = arith.maximumf %429, %430 : vector<4x128xf32>
    %c4_374 = arith.constant 4 : index
    %c0_375 = arith.constant 0 : index
    %c0_376 = arith.constant 0 : index
    %432 = vector.load %arg11[%c4_374, %c0_375, %c0_376] : memref<6x16x4xbf16, #tpu.memory_space<vmem>>, vector<1x16x4xbf16>
    %433 = vector.shape_cast %432 : vector<1x16x4xbf16> to vector<16x4xbf16>
    %434 = arith.truncf %431 : vector<4x128xf32> to vector<4x128xbf16>
    %cst_377 = arith.constant dense<0.000000e+00> : vector<16x128xf32>
    %435 = tpu.matmul %433, %434, %cst_377 {dimension_numbers = #tpu.dot_dimension_numbers<[1], [0], [0], [1], [0, 0, 1, 1], [], []>} : vector<16x4xbf16>, vector<4x128xbf16>, vector<16x128xf32> -> vector<16x128xf32>
    %436 = arith.addf %435, %349 : vector<16x128xf32>
    %c0_378 = arith.constant 0 : index
    %c0_379 = arith.constant 0 : index
    %437 = vector.load %arg12[%c0_378, %c0_379] : memref<16x1xf32, #tpu.memory_space<vmem>>, vector<16x1xf32>
    %c0_380 = arith.constant 0 : index
    %c0_381 = arith.constant 0 : index
    %438 = vector.load %arg13[%c0_380, %c0_381] : memref<16x1xf32, #tpu.memory_space<vmem>>, vector<16x1xf32>
    %439 = vector.broadcast %437 : vector<16x1xf32> to vector<16x128xf32>
    %440 = arith.mulf %436, %439 : vector<16x128xf32>
    %441 = vector.broadcast %438 : vector<16x1xf32> to vector<16x128xf32>
    %442 = arith.addf %440, %441 : vector<16x128xf32>
    %cst_382 = arith.constant 0.000000e+00 : f32
    %443 = vector.broadcast %cst_382 : f32 to vector<16x128xf32>
    %444 = arith.maximumf %442, %443 : vector<16x128xf32>
    %c0_383 = arith.constant 0 : index
    %c0_384 = arith.constant 0 : index
    %445 = vector.load %arg14[%c0_383, %c0_384] : memref<16x16xbf16, #tpu.memory_space<vmem>>, vector<16x16xbf16>
    %446 = arith.truncf %444 : vector<16x128xf32> to vector<16x128xbf16>
    %cst_385 = arith.constant dense<0.000000e+00> : vector<16x128xf32>
    %447 = tpu.matmul %445, %446, %cst_385 {dimension_numbers = #tpu.dot_dimension_numbers<[1], [0], [0], [1], [0, 0, 1, 1], [], []>} : vector<16x16xbf16>, vector<16x128xbf16>, vector<16x128xf32> -> vector<16x128xf32>
    %c0_386 = arith.constant 0 : index
    %c0_387 = arith.constant 0 : index
    %448 = vector.load %arg15[%c0_386, %c0_387] : memref<16x1xf32, #tpu.memory_space<vmem>>, vector<16x1xf32>
    %c0_388 = arith.constant 0 : index
    %c0_389 = arith.constant 0 : index
    %449 = vector.load %arg16[%c0_388, %c0_389] : memref<16x1xf32, #tpu.memory_space<vmem>>, vector<16x1xf32>
    %450 = vector.broadcast %448 : vector<16x1xf32> to vector<16x128xf32>
    %451 = arith.mulf %447, %450 : vector<16x128xf32>
    %452 = vector.broadcast %449 : vector<16x1xf32> to vector<16x128xf32>
    %453 = arith.addf %451, %452 : vector<16x128xf32>
    %cst_390 = arith.constant 0.000000e+00 : f32
    %454 = vector.broadcast %cst_390 : f32 to vector<16x128xf32>
    %455 = arith.maximumf %453, %454 : vector<16x128xf32>
    %c0_391 = arith.constant 0 : index
    %c0_392 = arith.constant 0 : index
    %456 = vector.load %arg17[%c0_391, %c0_392] : memref<16x16xbf16, #tpu.memory_space<vmem>>, vector<16x16xbf16>
    %457 = arith.truncf %455 : vector<16x128xf32> to vector<16x128xbf16>
    %cst_393 = arith.constant dense<0.000000e+00> : vector<16x128xf32>
    %458 = tpu.matmul %456, %457, %cst_393 {dimension_numbers = #tpu.dot_dimension_numbers<[1], [0], [0], [1], [0, 0, 1, 1], [], []>} : vector<16x16xbf16>, vector<16x128xbf16>, vector<16x128xf32> -> vector<16x128xf32>
    %cst_394 = arith.constant 0.000000e+00 : f32
    %459 = vector.broadcast %cst_394 : f32 to vector<16x128xf32>
    %460 = arith.subf %459, %458 : vector<16x128xf32>
    %461 = math.exp %460 : vector<16x128xf32>
    %cst_395 = arith.constant 1.000000e+00 : f32
    %462 = vector.broadcast %cst_395 : f32 to vector<16x128xf32>
    %463 = arith.addf %462, %461 : vector<16x128xf32>
    %464 = tpu.reciprocal %463 {approx = true} : vector<16x128xf32> -> vector<16x128xf32>
    %cst_396 = arith.constant 1.000000e+00 : f32
    %465 = vector.broadcast %cst_396 : f32 to vector<16x128xf32>
    %466 = arith.addf %465, %464 : vector<16x128xf32>
    %467 = arith.mulf %466, %262 : vector<16x128xf32>
    %c5_397 = arith.constant 5 : index
    %c0_398 = arith.constant 0 : index
    %c0_399 = arith.constant 0 : index
    %468 = vector.load %arg3[%c5_397, %c0_398, %c0_399] : memref<6x16x1xf32, #tpu.memory_space<vmem>>, vector<1x16x1xf32>
    %469 = vector.shape_cast %468 : vector<1x16x1xf32> to vector<16x1xf32>
    %c5_400 = arith.constant 5 : index
    %c0_401 = arith.constant 0 : index
    %c0_402 = arith.constant 0 : index
    %470 = vector.load %arg4[%c5_400, %c0_401, %c0_402] : memref<6x16x1xf32, #tpu.memory_space<vmem>>, vector<1x16x1xf32>
    %471 = vector.shape_cast %470 : vector<1x16x1xf32> to vector<16x1xf32>
    %472 = vector.broadcast %469 : vector<16x1xf32> to vector<16x128xf32>
    %473 = arith.mulf %467, %472 : vector<16x128xf32>
    %474 = vector.broadcast %471 : vector<16x1xf32> to vector<16x128xf32>
    %475 = arith.addf %473, %474 : vector<16x128xf32>
    %cst_403 = arith.constant 0.000000e+00 : f32
    %476 = vector.broadcast %cst_403 : f32 to vector<16x128xf32>
    %477 = arith.maximumf %475, %476 : vector<16x128xf32>
    %c5_404 = arith.constant 5 : index
    %c0_405 = arith.constant 0 : index
    %c0_406 = arith.constant 0 : index
    %478 = vector.load %arg5[%c5_404, %c0_405, %c0_406] : memref<6x4x16xbf16, #tpu.memory_space<vmem>>, vector<1x4x16xbf16>
    %479 = vector.shape_cast %478 : vector<1x4x16xbf16> to vector<4x16xbf16>
    %480 = arith.truncf %477 : vector<16x128xf32> to vector<16x128xbf16>
    %cst_407 = arith.constant dense<0.000000e+00> : vector<4x128xf32>
    %481 = tpu.matmul %479, %480, %cst_407 {dimension_numbers = #tpu.dot_dimension_numbers<[1], [0], [0], [1], [0, 0, 1, 1], [], []>} : vector<4x16xbf16>, vector<16x128xbf16>, vector<4x128xf32> -> vector<4x128xf32>
    %c5_408 = arith.constant 5 : index
    %c0_409 = arith.constant 0 : index
    %c0_410 = arith.constant 0 : index
    %482 = vector.load %arg6[%c5_408, %c0_409, %c0_410] : memref<6x4x1xf32, #tpu.memory_space<vmem>>, vector<1x4x1xf32>
    %483 = vector.shape_cast %482 : vector<1x4x1xf32> to vector<4x1xf32>
    %c5_411 = arith.constant 5 : index
    %c0_412 = arith.constant 0 : index
    %c0_413 = arith.constant 0 : index
    %484 = vector.load %arg7[%c5_411, %c0_412, %c0_413] : memref<6x4x1xf32, #tpu.memory_space<vmem>>, vector<1x4x1xf32>
    %485 = vector.shape_cast %484 : vector<1x4x1xf32> to vector<4x1xf32>
    %486 = vector.broadcast %483 : vector<4x1xf32> to vector<4x128xf32>
    %487 = arith.mulf %481, %486 : vector<4x128xf32>
    %488 = vector.broadcast %485 : vector<4x1xf32> to vector<4x128xf32>
    %489 = arith.addf %487, %488 : vector<4x128xf32>
    %cst_414 = arith.constant 0.000000e+00 : f32
    %490 = vector.broadcast %cst_414 : f32 to vector<4x128xf32>
    %491 = arith.maximumf %489, %490 : vector<4x128xf32>
    %492 = arith.truncf %491 : vector<4x128xf32> to vector<4x128xbf16>
    %c0_415 = arith.constant 0 : index
    %c0_416 = arith.constant 0 : index
    %493 = vector.load %arg2[%c0_415, %c0_416] : memref<128x1152xbf16, #tpu.memory_space<vmem>>, vector<128x1152xbf16>
    %cst_417 = arith.constant dense<0.000000e+00> : vector<4x1152xf32>
    %494 = tpu.matmul %492, %493, %cst_417 {dimension_numbers = #tpu.dot_dimension_numbers<[1], [0], [0], [1], [0, 0, 1, 1], [], []>} : vector<4x128xbf16>, vector<128x1152xbf16>, vector<4x1152xf32> -> vector<4x1152xf32>
    %495 = arith.truncf %494 : vector<4x1152xf32> to vector<4x1152xbf16>
    %c5_418 = arith.constant 5 : index
    %c0_419 = arith.constant 0 : index
    %c0_420 = arith.constant 0 : index
    %c0_421 = arith.constant 0 : index
    %496 = vector.load %arg8[%c5_418, %c0_419, %c0_420, %c0_421] : memref<6x9x4x4xbf16, #tpu.memory_space<vmem>>, vector<1x1x4x4xbf16>
    %497 = vector.shape_cast %496 : vector<1x1x4x4xbf16> to vector<4x4xbf16>
    %498 = vector.extract_strided_slice %495 {offsets = [0, 0], sizes = [4, 128], strides = [1, 1]} : vector<4x1152xbf16> to vector<4x128xbf16>
    %cst_422 = arith.constant dense<0.000000e+00> : vector<4x128xf32>
    %499 = tpu.matmul %497, %498, %cst_422 {dimension_numbers = #tpu.dot_dimension_numbers<[1], [0], [0], [1], [0, 0, 1, 1], [], []>} : vector<4x4xbf16>, vector<4x128xbf16>, vector<4x128xf32> -> vector<4x128xf32>
    %c5_423 = arith.constant 5 : index
    %c1_424 = arith.constant 1 : index
    %c0_425 = arith.constant 0 : index
    %c0_426 = arith.constant 0 : index
    %500 = vector.load %arg8[%c5_423, %c1_424, %c0_425, %c0_426] : memref<6x9x4x4xbf16, #tpu.memory_space<vmem>>, vector<1x1x4x4xbf16>
    %501 = vector.shape_cast %500 : vector<1x1x4x4xbf16> to vector<4x4xbf16>
    %502 = vector.extract_strided_slice %495 {offsets = [0, 128], sizes = [4, 128], strides = [1, 1]} : vector<4x1152xbf16> to vector<4x128xbf16>
    %cst_427 = arith.constant dense<0.000000e+00> : vector<4x128xf32>
    %503 = tpu.matmul %501, %502, %cst_427 {dimension_numbers = #tpu.dot_dimension_numbers<[1], [0], [0], [1], [0, 0, 1, 1], [], []>} : vector<4x4xbf16>, vector<4x128xbf16>, vector<4x128xf32> -> vector<4x128xf32>
    %c5_428 = arith.constant 5 : index
    %c2_429 = arith.constant 2 : index
    %c0_430 = arith.constant 0 : index
    %c0_431 = arith.constant 0 : index
    %504 = vector.load %arg8[%c5_428, %c2_429, %c0_430, %c0_431] : memref<6x9x4x4xbf16, #tpu.memory_space<vmem>>, vector<1x1x4x4xbf16>
    %505 = vector.shape_cast %504 : vector<1x1x4x4xbf16> to vector<4x4xbf16>
    %506 = vector.extract_strided_slice %495 {offsets = [0, 256], sizes = [4, 128], strides = [1, 1]} : vector<4x1152xbf16> to vector<4x128xbf16>
    %cst_432 = arith.constant dense<0.000000e+00> : vector<4x128xf32>
    %507 = tpu.matmul %505, %506, %cst_432 {dimension_numbers = #tpu.dot_dimension_numbers<[1], [0], [0], [1], [0, 0, 1, 1], [], []>} : vector<4x4xbf16>, vector<4x128xbf16>, vector<4x128xf32> -> vector<4x128xf32>
    %c5_433 = arith.constant 5 : index
    %c3_434 = arith.constant 3 : index
    %c0_435 = arith.constant 0 : index
    %c0_436 = arith.constant 0 : index
    %508 = vector.load %arg8[%c5_433, %c3_434, %c0_435, %c0_436] : memref<6x9x4x4xbf16, #tpu.memory_space<vmem>>, vector<1x1x4x4xbf16>
    %509 = vector.shape_cast %508 : vector<1x1x4x4xbf16> to vector<4x4xbf16>
    %510 = vector.extract_strided_slice %495 {offsets = [0, 384], sizes = [4, 128], strides = [1, 1]} : vector<4x1152xbf16> to vector<4x128xbf16>
    %cst_437 = arith.constant dense<0.000000e+00> : vector<4x128xf32>
    %511 = tpu.matmul %509, %510, %cst_437 {dimension_numbers = #tpu.dot_dimension_numbers<[1], [0], [0], [1], [0, 0, 1, 1], [], []>} : vector<4x4xbf16>, vector<4x128xbf16>, vector<4x128xf32> -> vector<4x128xf32>
    %c5_438 = arith.constant 5 : index
    %c4_439 = arith.constant 4 : index
    %c0_440 = arith.constant 0 : index
    %c0_441 = arith.constant 0 : index
    %512 = vector.load %arg8[%c5_438, %c4_439, %c0_440, %c0_441] : memref<6x9x4x4xbf16, #tpu.memory_space<vmem>>, vector<1x1x4x4xbf16>
    %513 = vector.shape_cast %512 : vector<1x1x4x4xbf16> to vector<4x4xbf16>
    %514 = vector.extract_strided_slice %495 {offsets = [0, 512], sizes = [4, 128], strides = [1, 1]} : vector<4x1152xbf16> to vector<4x128xbf16>
    %cst_442 = arith.constant dense<0.000000e+00> : vector<4x128xf32>
    %515 = tpu.matmul %513, %514, %cst_442 {dimension_numbers = #tpu.dot_dimension_numbers<[1], [0], [0], [1], [0, 0, 1, 1], [], []>} : vector<4x4xbf16>, vector<4x128xbf16>, vector<4x128xf32> -> vector<4x128xf32>
    %c5_443 = arith.constant 5 : index
    %c5_444 = arith.constant 5 : index
    %c0_445 = arith.constant 0 : index
    %c0_446 = arith.constant 0 : index
    %516 = vector.load %arg8[%c5_443, %c5_444, %c0_445, %c0_446] : memref<6x9x4x4xbf16, #tpu.memory_space<vmem>>, vector<1x1x4x4xbf16>
    %517 = vector.shape_cast %516 : vector<1x1x4x4xbf16> to vector<4x4xbf16>
    %518 = vector.extract_strided_slice %495 {offsets = [0, 640], sizes = [4, 128], strides = [1, 1]} : vector<4x1152xbf16> to vector<4x128xbf16>
    %cst_447 = arith.constant dense<0.000000e+00> : vector<4x128xf32>
    %519 = tpu.matmul %517, %518, %cst_447 {dimension_numbers = #tpu.dot_dimension_numbers<[1], [0], [0], [1], [0, 0, 1, 1], [], []>} : vector<4x4xbf16>, vector<4x128xbf16>, vector<4x128xf32> -> vector<4x128xf32>
    %c5_448 = arith.constant 5 : index
    %c6_449 = arith.constant 6 : index
    %c0_450 = arith.constant 0 : index
    %c0_451 = arith.constant 0 : index
    %520 = vector.load %arg8[%c5_448, %c6_449, %c0_450, %c0_451] : memref<6x9x4x4xbf16, #tpu.memory_space<vmem>>, vector<1x1x4x4xbf16>
    %521 = vector.shape_cast %520 : vector<1x1x4x4xbf16> to vector<4x4xbf16>
    %522 = vector.extract_strided_slice %495 {offsets = [0, 768], sizes = [4, 128], strides = [1, 1]} : vector<4x1152xbf16> to vector<4x128xbf16>
    %cst_452 = arith.constant dense<0.000000e+00> : vector<4x128xf32>
    %523 = tpu.matmul %521, %522, %cst_452 {dimension_numbers = #tpu.dot_dimension_numbers<[1], [0], [0], [1], [0, 0, 1, 1], [], []>} : vector<4x4xbf16>, vector<4x128xbf16>, vector<4x128xf32> -> vector<4x128xf32>
    %c5_453 = arith.constant 5 : index
    %c7_454 = arith.constant 7 : index
    %c0_455 = arith.constant 0 : index
    %c0_456 = arith.constant 0 : index
    %524 = vector.load %arg8[%c5_453, %c7_454, %c0_455, %c0_456] : memref<6x9x4x4xbf16, #tpu.memory_space<vmem>>, vector<1x1x4x4xbf16>
    %525 = vector.shape_cast %524 : vector<1x1x4x4xbf16> to vector<4x4xbf16>
    %526 = vector.extract_strided_slice %495 {offsets = [0, 896], sizes = [4, 128], strides = [1, 1]} : vector<4x1152xbf16> to vector<4x128xbf16>
    %cst_457 = arith.constant dense<0.000000e+00> : vector<4x128xf32>
    %527 = tpu.matmul %525, %526, %cst_457 {dimension_numbers = #tpu.dot_dimension_numbers<[1], [0], [0], [1], [0, 0, 1, 1], [], []>} : vector<4x4xbf16>, vector<4x128xbf16>, vector<4x128xf32> -> vector<4x128xf32>
    %c5_458 = arith.constant 5 : index
    %c8_459 = arith.constant 8 : index
    %c0_460 = arith.constant 0 : index
    %c0_461 = arith.constant 0 : index
    %528 = vector.load %arg8[%c5_458, %c8_459, %c0_460, %c0_461] : memref<6x9x4x4xbf16, #tpu.memory_space<vmem>>, vector<1x1x4x4xbf16>
    %529 = vector.shape_cast %528 : vector<1x1x4x4xbf16> to vector<4x4xbf16>
    %530 = vector.extract_strided_slice %495 {offsets = [0, 1024], sizes = [4, 128], strides = [1, 1]} : vector<4x1152xbf16> to vector<4x128xbf16>
    %cst_462 = arith.constant dense<0.000000e+00> : vector<4x128xf32>
    %531 = tpu.matmul %529, %530, %cst_462 {dimension_numbers = #tpu.dot_dimension_numbers<[1], [0], [0], [1], [0, 0, 1, 1], [], []>} : vector<4x4xbf16>, vector<4x128xbf16>, vector<4x128xf32> -> vector<4x128xf32>
    %532 = arith.addf %499, %503 : vector<4x128xf32>
    %533 = arith.addf %507, %511 : vector<4x128xf32>
    %534 = arith.addf %515, %519 : vector<4x128xf32>
    %535 = arith.addf %523, %527 : vector<4x128xf32>
    %536 = arith.addf %532, %533 : vector<4x128xf32>
    %537 = arith.addf %534, %535 : vector<4x128xf32>
    %538 = arith.addf %536, %537 : vector<4x128xf32>
    %539 = arith.addf %538, %531 : vector<4x128xf32>
    %c5_463 = arith.constant 5 : index
    %c0_464 = arith.constant 0 : index
    %c0_465 = arith.constant 0 : index
    %540 = vector.load %arg9[%c5_463, %c0_464, %c0_465] : memref<6x4x1xf32, #tpu.memory_space<vmem>>, vector<1x4x1xf32>
    %541 = vector.shape_cast %540 : vector<1x4x1xf32> to vector<4x1xf32>
    %c5_466 = arith.constant 5 : index
    %c0_467 = arith.constant 0 : index
    %c0_468 = arith.constant 0 : index
    %542 = vector.load %arg10[%c5_466, %c0_467, %c0_468] : memref<6x4x1xf32, #tpu.memory_space<vmem>>, vector<1x4x1xf32>
    %543 = vector.shape_cast %542 : vector<1x4x1xf32> to vector<4x1xf32>
    %544 = vector.broadcast %541 : vector<4x1xf32> to vector<4x128xf32>
    %545 = arith.mulf %539, %544 : vector<4x128xf32>
    %546 = vector.broadcast %543 : vector<4x1xf32> to vector<4x128xf32>
    %547 = arith.addf %545, %546 : vector<4x128xf32>
    %cst_469 = arith.constant 0.000000e+00 : f32
    %548 = vector.broadcast %cst_469 : f32 to vector<4x128xf32>
    %549 = arith.maximumf %547, %548 : vector<4x128xf32>
    %c5_470 = arith.constant 5 : index
    %c0_471 = arith.constant 0 : index
    %c0_472 = arith.constant 0 : index
    %550 = vector.load %arg11[%c5_470, %c0_471, %c0_472] : memref<6x16x4xbf16, #tpu.memory_space<vmem>>, vector<1x16x4xbf16>
    %551 = vector.shape_cast %550 : vector<1x16x4xbf16> to vector<16x4xbf16>
    %552 = arith.truncf %549 : vector<4x128xf32> to vector<4x128xbf16>
    %cst_473 = arith.constant dense<0.000000e+00> : vector<16x128xf32>
    %553 = tpu.matmul %551, %552, %cst_473 {dimension_numbers = #tpu.dot_dimension_numbers<[1], [0], [0], [1], [0, 0, 1, 1], [], []>} : vector<16x4xbf16>, vector<4x128xbf16>, vector<16x128xf32> -> vector<16x128xf32>
    %554 = arith.addf %553, %467 : vector<16x128xf32>
    %c0_474 = arith.constant 0 : index
    %c0_475 = arith.constant 0 : index
    %c0_476 = arith.constant 0 : index
    %555 = vector.load %arg18[%c0_474, %c0_475, %c0_476] : memref<1x16x128xf32, #tpu.memory_space<vmem>>, vector<1x16x128xf32>
    %556 = vector.shape_cast %555 : vector<1x16x128xf32> to vector<16x128xf32>
    %557 = vector.shape_cast %554 : vector<16x128xf32> to vector<1x16x128xf32>
    tpu.vector_store %arg18[%c0_474, %c0_475, %c0_476], %557 {strides = array<i32>} : memref<1x16x128xf32, #tpu.memory_space<vmem>>, vector<1x16x128xf32>,
    return
  }
  func.func @transform_0(%arg0: i32) -> (i32, i32, i32) {
    %c0_i32 = arith.constant 0 : i32
    %c0_i32_0 = arith.constant 0 : i32
    %c0_i32_1 = arith.constant 0 : i32
    return %arg0, %c0_i32, %c0_i32_0 : i32, i32, i32
  }
  func.func @transform_1(%arg0: i32) -> (i32, i32) {
    %c0_i32 = arith.constant 0 : i32
    %c0_i32_0 = arith.constant 0 : i32
    %c0_i32_1 = arith.constant 0 : i32
    return %c0_i32, %c0_i32_0 : i32, i32
  }
  func.func @transform_2(%arg0: i32) -> (i32, i32, i32) {
    %c0_i32 = arith.constant 0 : i32
    %c0_i32_0 = arith.constant 0 : i32
    %c0_i32_1 = arith.constant 0 : i32
    %c0_i32_2 = arith.constant 0 : i32
    return %c0_i32, %c0_i32_0, %c0_i32_1 : i32, i32, i32
  }
  func.func @transform_3(%arg0: i32) -> (i32, i32, i32) {
    %c0_i32 = arith.constant 0 : i32
    %c0_i32_0 = arith.constant 0 : i32
    %c0_i32_1 = arith.constant 0 : i32
    %c0_i32_2 = arith.constant 0 : i32
    return %c0_i32, %c0_i32_0, %c0_i32_1 : i32, i32, i32
  }
  func.func @transform_4(%arg0: i32) -> (i32, i32, i32) {
    %c0_i32 = arith.constant 0 : i32
    %c0_i32_0 = arith.constant 0 : i32
    %c0_i32_1 = arith.constant 0 : i32
    %c0_i32_2 = arith.constant 0 : i32
    return %c0_i32, %c0_i32_0, %c0_i32_1 : i32, i32, i32
  }
  func.func @transform_5(%arg0: i32) -> (i32, i32, i32) {
    %c0_i32 = arith.constant 0 : i32
    %c0_i32_0 = arith.constant 0 : i32
    %c0_i32_1 = arith.constant 0 : i32
    %c0_i32_2 = arith.constant 0 : i32
    return %c0_i32, %c0_i32_0, %c0_i32_1 : i32, i32, i32
  }
  func.func @transform_6(%arg0: i32) -> (i32, i32, i32) {
    %c0_i32 = arith.constant 0 : i32
    %c0_i32_0 = arith.constant 0 : i32
    %c0_i32_1 = arith.constant 0 : i32
    %c0_i32_2 = arith.constant 0 : i32
    return %c0_i32, %c0_i32_0, %c0_i32_1 : i32, i32, i32
  }
  func.func @transform_7(%arg0: i32) -> (i32, i32, i32, i32) {
    %c0_i32 = arith.constant 0 : i32
    %c0_i32_0 = arith.constant 0 : i32
    %c0_i32_1 = arith.constant 0 : i32
    %c0_i32_2 = arith.constant 0 : i32
    %c0_i32_3 = arith.constant 0 : i32
    return %c0_i32, %c0_i32_0, %c0_i32_1, %c0_i32_2 : i32, i32, i32, i32
  }
  func.func @transform_8(%arg0: i32) -> (i32, i32, i32) {
    %c0_i32 = arith.constant 0 : i32
    %c0_i32_0 = arith.constant 0 : i32
    %c0_i32_1 = arith.constant 0 : i32
    %c0_i32_2 = arith.constant 0 : i32
    return %c0_i32, %c0_i32_0, %c0_i32_1 : i32, i32, i32
  }
  func.func @transform_9(%arg0: i32) -> (i32, i32, i32) {
    %c0_i32 = arith.constant 0 : i32
    %c0_i32_0 = arith.constant 0 : i32
    %c0_i32_1 = arith.constant 0 : i32
    %c0_i32_2 = arith.constant 0 : i32
    return %c0_i32, %c0_i32_0, %c0_i32_1 : i32, i32, i32
  }
  func.func @transform_10(%arg0: i32) -> (i32, i32, i32) {
    %c0_i32 = arith.constant 0 : i32
    %c0_i32_0 = arith.constant 0 : i32
    %c0_i32_1 = arith.constant 0 : i32
    %c0_i32_2 = arith.constant 0 : i32
    return %c0_i32, %c0_i32_0, %c0_i32_1 : i32, i32, i32
  }
  func.func @transform_11(%arg0: i32) -> (i32, i32) {
    %c0_i32 = arith.constant 0 : i32
    %c0_i32_0 = arith.constant 0 : i32
    %c0_i32_1 = arith.constant 0 : i32
    return %c0_i32, %c0_i32_0 : i32, i32
  }
  func.func @transform_12(%arg0: i32) -> (i32, i32) {
    %c0_i32 = arith.constant 0 : i32
    %c0_i32_0 = arith.constant 0 : i32
    %c0_i32_1 = arith.constant 0 : i32
    return %c0_i32, %c0_i32_0 : i32, i32
  }
  func.func @transform_13(%arg0: i32) -> (i32, i32) {
    %c0_i32 = arith.constant 0 : i32
    %c0_i32_0 = arith.constant 0 : i32
    %c0_i32_1 = arith.constant 0 : i32
    return %c0_i32, %c0_i32_0 : i32, i32
  }
  func.func @transform_14(%arg0: i32) -> (i32, i32) {
    %c0_i32 = arith.constant 0 : i32
    %c0_i32_0 = arith.constant 0 : i32
    %c0_i32_1 = arith.constant 0 : i32
    return %c0_i32, %c0_i32_0 : i32, i32
  }
  func.func @transform_15(%arg0: i32) -> (i32, i32) {
    %c0_i32 = arith.constant 0 : i32
    %c0_i32_0 = arith.constant 0 : i32
    %c0_i32_1 = arith.constant 0 : i32
    return %c0_i32, %c0_i32_0 : i32, i32
  }
  func.func @transform_16(%arg0: i32) -> (i32, i32) {
    %c0_i32 = arith.constant 0 : i32
    %c0_i32_0 = arith.constant 0 : i32
    %c0_i32_1 = arith.constant 0 : i32
    return %c0_i32, %c0_i32_0 : i32, i32
  }
  func.func @transform_17(%arg0: i32) -> (i32, i32, i32) {
    %c0_i32 = arith.constant 0 : i32
    %c0_i32_0 = arith.constant 0 : i32
    %c0_i32_1 = arith.constant 0 : i32
    return %arg0, %c0_i32, %c0_i32_0 : i32, i32, i32
  }
}

</mosaic_0001>

<bundles_post_ra>
// kernel: attention_module_stage3.1
= control target key start
LH: loop header
LB: loop body
LE: loop exit
PB: predicated region body
PF: predicated region fallthrough
CT: control target
= control target key end

     0   :  { %s9808_s0 = inlined_call_operand.vmem [shape: f32[2,16,128], index: 0, kind: input, shape index: {}]   ;;  %s9809_s1 = inlined_call_operand.hbm [shape: bf16[128,1152], index: 1, kind: input, shape index: {}]   ;;  %s9810_s2 = inlined_call_operand.vmem [shape: f32[6,16,1], index: 2, kind: input, shape index: {}]   ;;  %s9811_s3 = inlined_call_operand.vmem [shape: f32[6,16,1], index: 3, kind: input, shape index: {}]   ;;  %s9812_s4 = inlined_call_operand.hbm [shape: bf16[6,4,16], index: 4, kind: input, shape index: {}]   ;;  %s9813_s5 = inlined_call_operand.hbm [shape: f32[6,4,1], index: 5, kind: input, shape index: {}]   ;;  %s9814_s6 = inlined_call_operand.vmem [shape: f32[6,4,1], index: 6, kind: input, shape index: {}]   ;;  %s9815_s7 = inlined_call_operand.vmem [shape: bf16[6,9,4,4], index: 7, kind: input, shape index: {}]   ;;  %s9816_s8 = inlined_call_operand.vmem [shape: f32[6,4,1], index: 8, kind: input, shape index: {}]   ;;  %s9817_s9 = inlined_call_operand.vmem [shape: f32[6,4,1], index: 9, kind: input, shape index: {}]   ;;  %s9818_s10 = inlined_call_operand.vmem [shape: bf16[6,16,4], index: 10, kind: input, shape index: {}]   ;;  %s9819_s11 = inlined_call_operand.hbm [shape: f32[16,1], index: 11, kind: input, shape index: {}]   ;;  %s9820_s12 = inlined_call_operand.hbm [shape: f32[16,1], index: 12, kind: input, shape index: {}]   ;;  %s9821_s13 = inlined_call_operand.hbm [shape: bf16[16,16], index: 13, kind: input, shape index: {}]   ;;  %s9822_s14 = inlined_call_operand.hbm [shape: f32[16,1], index: 14, kind: input, shape index: {}]   ;;  %s9823_s15 = inlined_call_operand.vmem [shape: f32[16,1], index: 15, kind: input, shape index: {}]   ;;  %s9824_s16 = inlined_call_operand.vmem [shape: bf16[16,16], index: 16, kind: input, shape index: {}]   ;;  %s9825_s17 = inlined_call_operand.vmem [shape: f32[2,16,128], index: 17, kind: output, shape index: {}]  }
   0x1   :  { %9946 = sst [smem:[#allocation61_spill]] %s9808_s0 }
   0x2   :  { %9947 = sst [smem:[#allocation62_spill]] %s9809_s1 }
   0x3   :  { %9948 = sst [smem:[#allocation63_spill]] %s9812_s4 }
   0x4   :  { %9949 = sst [smem:[#allocation64_spill]] %s9819_s11 }
   0x5   :  { %22 = vsyncpa [#allocation3], 0 }
   0x6   :  { %23 = vsyncpa [#allocation5], 0 }
   0x7   :  { %24 = vsyncpa [#allocation8], 0 }
   0x8   :  { %25 = vsyncpa [#allocation11], 0  ;;  %s7969_s24 = smov 0  }
   0x9 LB: > { %s7861_s25 = smov [#allocation4]   ;;  %s7975_s27 = sadd.s32 4294967295, %s7859_s24   ;;  %s7859_s24 = sphi %s7969_s24, %s31_s24  }
   0xa   : > { %s455_s26 = sshll.u32 %s7861_s25, 4  ;;  %p6310_p0 = scmp.ge.s32.totalorder %s7859_s24, 1  ;;  %s456_s26 = int_to_ptr.vmem [resolvable:$true] %s455_s26 }
   0xb   : > { %p424_p1 = scmp.lt.s32.totalorder %s7859_s24, 3  ;;  %p7349_p2 = scmp.eq.s32.totalorder %s7975_s27, 0 }
   0xc   : > { %s7862_s29 = smov [#allocation7]   ;;  %s7666_s19 = scalar_lea.vmem %s456_s26, 192 }
   0xd   : > { %p7980_p3 = pnand %p6310_p0, %p424_p1  ;;  %s496_s0 = sshll.u32 %s7862_s29, 4  ;;  %s7986_s0 = int_to_ptr.vmem [resolvable:$true] %s496_s0 }
   0xe   : > { %p7667_p7 = scmp.ne.s32.totalorder %s456_s26, %s7666_s19  ;;  %p7674_p10 = scmp.lt.s32.totalorder %s456_s26, %s456_s26 }
   0xf   : > { %p7327_p4 = pneg %p7980_p3  ;;  %p7675_p11 = scmp.lt.s32.totalorder %s7666_s19, %s7666_s19 }
  0x11   : > { %p7990_p5 = pnand %p7349_p2, %p7327_p4  ;;  %p7676_p12 = por %p7675_p11, %p7674_p10 }
  0x13   : > { %p7996_p6 = pneg %p7990_p5 }
  0x15   : > { %p7669_p8 = pnand %p7667_p7, %p7996_p6 }
  0x17   : > { %p7670_p9 = pneg %p7669_p8 }
  0x19   : > { %p7677_p13 = pnand %p7676_p12, %p7670_p9 }
  0x1b   : > { %7680 = shalt.err (!%p7677_p13)
}
  0x1c   : > { %s7863_s1 = smov 32   ;;  %s7864_s20 = smov 2  }
  0x1d   : > { %s9953_s4 = sld [smem:[#allocation63_spill]]  ;;  %s7692_s23 = scalar_lea.vmem %s7986_s0, 256 }
  0x1e   : > { %p7693_p0 = scmp.ne.s32.totalorder %s7986_s0, %s7692_s23  ;;  %p7700_p7 = scmp.lt.s32.totalorder %s7986_s0, %s7986_s0 }
  0x1f   : > { %p7701_p8 = scmp.lt.s32.totalorder %s7692_s23, %s7692_s23 }
  0x20   : > { %p7695_p1 = pnand %p7693_p0, %p7996_p6 }
  0x21   : > { %p7702_p9 = por %p7701_p8, %p7700_p7 }
  0x22   : > { %p7696_p4 = pneg %p7695_p1 }
  0x23   : > { %7333 = dma.hbm_to_vmem [thread:$0]  (!%p7990_p5), %s9953_s4, 192, %s456_s26, [#allocation5], %s7863_s1, %s7863_s1, %s7864_s20  }
  0x24   : > { %p7703_p10 = pnand %p7702_p9, %p7696_p4 }
  0x26   : > { %7706 = shalt.err (!%p7703_p10)
}
  0x27   : > { %s9826_s25 = smov 128   ;;  %s9828_s29 = smov 8  }
  0x28   : > { %s9954_s11 = sld [smem:[#allocation64_spill]]  ;;  %s7867_s1 = smov [#allocation10]  }
  0x29   : > { %s522_s20 = sshll.u32 %s7867_s1, 4  ;;  %s7868_s21 = smov [#allocation2]   ;;  %s523_s20 = int_to_ptr.vmem [resolvable:$true] %s522_s20 }
  0x2a   : > { %s436_s22 = sshll.u32 %s7868_s21, 4  ;;  %s7718_s23 = scalar_lea.vmem %s523_s20, 128  ;;  %s437_s22 = int_to_ptr.vmem [resolvable:$true] %s436_s22 }
  0x2b   : > { %p7719_p11 = scmp.ne.s32.totalorder %s523_s20, %s7718_s23  ;;  %p7726_p0 = scmp.lt.s32.totalorder %s523_s20, %s523_s20 }
  0x2c   : > { %p7727_p1 = scmp.lt.s32.totalorder %s7718_s23, %s7718_s23 }
  0x2d   : > { %p7721_p12 = pnand %p7719_p11, %p7996_p6 }
  0x2e   : > { %7339 = dma.hbm_to_vmem [thread:$0]  (!%p7990_p5), %s9954_s11, 256, %s7986_s0, [#allocation8], %s9826_s25, %s9826_s25, %s9828_s29  }
  0x2f   : > { %p7722_p13 = pneg %p7721_p12  ;;  %p7728_p4 = por %p7727_p1, %p7726_p0 }
  0x31   : > { %p7729_p7 = pnand %p7728_p4, %p7722_p13 }
  0x33   : > { %7732 = shalt.err (!%p7729_p7)
}
  0x34   : > { %s9830_s4 = smov 64   ;;  %s9831_s26 = smov 4  }
  0x35   : > { %7345 = dma.hbm_to_vmem [thread:$0]  (!%p7990_p5), %s9821_s13, 128, %s523_s20, [#allocation11], %s9830_s4, %s9830_s4, %s9831_s26  }
  0x36   : > { %s7744_s1 = scalar_lea.vmem %s437_s22, 9216  ;;  %p7752_p11 = scmp.lt.s32.totalorder %s437_s22, %s437_s22 }
  0x37   : > { %p7745_p8 = scmp.ne.s32.totalorder %s437_s22, %s7744_s1  ;;  %p7753_p12 = scmp.lt.s32.totalorder %s7744_s1, %s7744_s1 }
  0x39   : > { %p7747_p9 = pnand %p7745_p8, %p7996_p6  ;;  %p7754_p13 = por %p7753_p12, %p7752_p11 }
  0x3b   : > { %p7748_p10 = pneg %p7747_p9 }
  0x3d   : > { %p7755_p0 = pnand %p7754_p13, %p7748_p10 }
  0x3f   : > { %7758 = shalt.err (!%p7755_p0)
}
  0x40   : > { %s7871_s21 = smov 576   ;;  %s7872_s23 = smov 36  }
  0x41   : > { %s9955_s0 = sld [smem:[#allocation62_spill]]  ;;  %s7873_s20 = smov [#allocation6]  }
  0x42   : > { %s468_s19 = sshll.u32 %s7873_s20, 4  ;;  %s7874_s4 = smov [#allocation9]   ;;  %s469_s19 = int_to_ptr.vmem [resolvable:$true] %s468_s19 }
  0x43   : > { %s509_s26 = sshll.u32 %s7874_s4, 4  ;;  %s7770_s11 = scalar_lea.vmem %s469_s19, 384  ;;  %s510_s26 = int_to_ptr.vmem [resolvable:$true] %s509_s26 }
  0x44   : > { %p7771_p1 = scmp.ne.s32.totalorder %s469_s19, %s7770_s11  ;;  %p7778_p8 = scmp.lt.s32.totalorder %s469_s19, %s469_s19 }
  0x45   : > { %p7779_p9 = scmp.lt.s32.totalorder %s7770_s11, %s7770_s11 }
  0x46   : > { %p7773_p4 = pnand %p7771_p1, %p7996_p6 }
  0x47   : > { %7330 = dma.hbm_to_vmem [thread:$0]  (!%p7990_p5), %s9955_s0, 9216, %s437_s22, [#allocation3], %s7871_s21, %s7871_s21, %s7872_s23  }
  0x48   : > { %p7774_p7 = pneg %p7773_p4  ;;  %p7780_p10 = por %p7779_p9, %p7778_p8 }
  0x4a   : > { %p7781_p11 = pnand %p7780_p10, %p7774_p7 }
  0x4c   : > { %7784 = shalt.err (!%p7781_p11)
}
  0x4d   : > { %s9956_s1 = smov 4   ;;  %s9957_s25 = smov 64  }
  0x4e   : > { %7336 = dma.hbm_to_vmem [thread:$0]  (!%p7990_p5), %s9813_s5, 384, %s469_s19, [#allocation5], %s9957_s25, %s9957_s25, %s9956_s1  }
  0x4f   : > { %s7796_s4 = scalar_lea.vmem %s510_s26, 256  ;;  %p7804_p1 = scmp.lt.s32.totalorder %s510_s26, %s510_s26 }
  0x50   : > { %p7797_p12 = scmp.ne.s32.totalorder %s510_s26, %s7796_s4  ;;  %p7805_p4 = scmp.lt.s32.totalorder %s7796_s4, %s7796_s4 }
  0x52   : > { %p7799_p13 = pnand %p7797_p12, %p7996_p6  ;;  %p7806_p7 = por %p7805_p4, %p7804_p1 }
  0x54   : > { %p7800_p0 = pneg %p7799_p13 }
  0x56   : > { %p7807_p8 = pnand %p7806_p7, %p7800_p0 }
  0x58   : > { %7810 = shalt.err (!%p7807_p8)
}
  0x59   : > { %s9958_s11 = smov 8   ;;  %s9959_s21 = smov 128  }
  0x5a   : > { %7342 = dma.hbm_to_vmem [thread:$0]  (!%p7990_p5), %s9820_s12, 256, %s510_s26, [#allocation8], %s9959_s21, %s9959_s21, %s9958_s11  }
  0x5b   : > { %s7875_s20 = smov [#allocation12]  }
  0x5c   : > { %s535_s19 = sshll.u32 %s7875_s20, 4  ;;  %s536_s19 = int_to_ptr.vmem [resolvable:$true] %s535_s19 }
  0x5d   : > { %s7822_s1 = scalar_lea.vmem %s536_s19, 256  ;;  %p7830_p12 = scmp.lt.s32.totalorder %s536_s19, %s536_s19 }
  0x5e   : > { %p7823_p9 = scmp.ne.s32.totalorder %s536_s19, %s7822_s1  ;;  %p7831_p13 = scmp.lt.s32.totalorder %s7822_s1, %s7822_s1 }
  0x60   : > { %p7825_p10 = pnand %p7823_p9, %p7996_p6  ;;  %p7832_p0 = por %p7831_p13, %p7830_p12 }
  0x62   : > { %p7826_p11 = pneg %p7825_p10 }
  0x64   : > { %p7833_p1 = pnand %p7832_p0, %p7826_p11 }
  0x66   : > { %7836 = shalt.err (!%p7833_p1)
}
  0x67   : > { %7348 = dma.hbm_to_vmem [thread:$0]  (!%p7990_p5), %s9822_s14, 256, %s536_s19, [#allocation11], %s9959_s21, %s9959_s21, %s9958_s11  }
  0x68   : > { %565 = sbr.rel (%p7980_p3) target bundleno = 5741 (0x166d), region = 88 }
  0x6d   : > { %7842 = dma.done.wait (%p7349_p2), [#allocation3], 9216  }
  0x6e   : > { %7844 = vsyncadd (%p7349_p2), [#allocation3], 4294958080 }
  0x6f   : > { %7846 = dma.done.wait (%p7349_p2), [#allocation5], 576  }
  0x70   : > { %7848 = vsyncadd (%p7349_p2), [#allocation5], 4294966720 }
  0x71   : > { %7850 = dma.done.wait (%p7349_p2), [#allocation8], 512  }
  0x72   : > { %7852 = vsyncadd (%p7349_p2), [#allocation8], 4294966784 }
  0x73   : > { %7854 = dma.done.wait (%p7349_p2), [#allocation11], 384  }
  0x74   : > { %7856 = vsyncadd (%p7349_p2), [#allocation11], 4294966912  ;;  %v9832_v0 = vmov 0   ;;  %v656_v1 = vld [vmem:[%s9811_s3] sm:$0xff]  ;;  %v657_v3 = vld [vmem:[%s9811_s3 + $0x8] sm:$0xff]  ;;  %v9834_v7 = vmov 0.0  }
  0x75   : > { %7390 = vset.pattern.permute.xlu1 %v9832_v0  ;;  %7389 = vset.pattern.permute.xlu0 %v9832_v0  ;;  %v654_v2 = vld [vmem:[%s9810_s2] sm:$0xff]  ;;  %v655_v4 = vld [vmem:[%s9810_s2 + $0x8] sm:$0xff]  ;;  %vm7878_vm0 = vmmov 0   ;;  %v6424_v10 = vld [vmem:[%s9810_s2 + $0x18] sm:$0xff]  ;;  %p641_p2 = scmp.lt.s32.totalorder %s7975_s27, 1  ;;  %s9960_s30 = sld [smem:[#allocation61_spill]] }
  0x76   : > { %1226 = vmatprep.mubr.bf16.mxu1 %v9832_v0  ;;  %672 = vperm.xlu1 %7390, %v656_v1   ;;  %v731_v5 = vld [vmem:[%s9814_s6] sm:$0xf]  ;;  %v730_v6 = vld [vmem:[#allocation6] sm:$0xf]  ;;  %v6423_v11 = vld [vmem:[%s9810_s2 + $0x10] sm:$0xff]  ;;  %vm686_vm1 = vcmask 130048  }
  0x77   : > { %660 = vperm.xlu0 %7389, %v654_v2   ;;  %6771 = vmatprep.subr.bf16.mxu0 %v9834_v7  ;;  %v1845_v8 = vld [vmem:[%s9817_s9] sm:$0xf]  ;;  %v6426_v12 = vld [vmem:[%s9811_s3 + $0x18] sm:$0xff]  ;;  %v6425_v13 = vld [vmem:[%s9811_s3 + $0x10] sm:$0xff]  ;;  %s10183_s27 = smov (!%p641_p2, %s7975_s27), 1  ;;  %vm1414_vm2 = vcmask 1041408  }
  0x78   : > { %v1844_v9 = vld [vmem:[%s9816_s8] sm:$0xf]  ;;  %6773 = vmatprep.mubr.msk.bf16.mxu0 %vm7878_vm0, %v9834_v7  ;;  %v6428_v14 = vld [vmem:[%s9814_s6 + $0x4] sm:$0xf]  ;;  %v1993_v15 = vld [vmem:[#allocation6 + $0x4] sm:$0xf] }
  0x79   : > { %v6448_v16 = vld [vmem:[%s9817_s9 + $0x4] sm:$0xf]  ;;  %v6454_v18 = vld [vmem:[%s9810_s2 + $0x28] sm:$0xff]  ;;  %v2811_v23 = vld [vmem:[#allocation6 + $0x8] sm:$0xf]  ;;  %s6579_s25 = sshll.u32 %s10183_s27, 4 }
  0x7a   : > { %677 = vperm.xlu1 %7390, %v657_v3   ;;  %v6447_v17 = vld [vmem:[%s9816_s8 + $0x4] sm:$0xf]  ;;  %v6456_v20 = vld [vmem:[%s9811_s3 + $0x28] sm:$0xff]  ;;  %v6484_v24 = vld [vmem:[%s9810_s2 + $0x38] sm:$0xff]  ;;  %vm1410_vm3 = vcmask 31744  }
  0x7b   : > { %665 = vperm.xlu0 %7389, %v655_v4   ;;  %v6453_v19 = vld [vmem:[%s9810_s2 + $0x20] sm:$0xff]  ;;  %v6458_v22 = vld [vmem:[%s9814_s6 + $0x8] sm:$0xf]  ;;  %v6483_v25 = vld [vmem:[%s9810_s2 + $0x30] sm:$0xff]  ;;  %s645_s18 = scalar_lea.vmem %s9960_s30, %s6579_s25  ;;  %s650_s30 = scalar_lea.vmem %s9825_s17, %s6579_s25 }
  0x7c   : > { %v6455_v21 = vld [vmem:[%s9811_s3 + $0x20] sm:$0xff]  ;;  %v6486_v26 = vld [vmem:[%s9811_s3 + $0x38] sm:$0xff]  ;;  %v6485_v27 = vld [vmem:[%s9811_s3 + $0x30] sm:$0xff] }
  0x7d   : > { %v6478_v28 = vld [vmem:[%s9817_s9 + $0x8] sm:$0xf]  ;;  %v6488_v30 = vld [vmem:[%s9814_s6 + $0xc] sm:$0xf]  ;;  %v3629_v31 = vld [vmem:[#allocation6 + $0xc] sm:$0xf] }
  0x7e   : > { %740 = vperm.xlu1 %7390, %v731_v5   ;;  %v6477_v29 = vld [vmem:[%s9816_s8 + $0x8] sm:$0xf]  ;;  %v6508_v32 = vld [vmem:[%s9817_s9 + $0xc] sm:$0xf]  ;;  %v6513_v35 = vld [vmem:[%s9810_s2 + $0x40] sm:$0xff] }
  0x7f   : > { %734 = vperm.xlu0 %7389, %v730_v6   ;;  %v6507_v33 = vld [vmem:[%s9816_s8 + $0xc] sm:$0xf]  ;;  %v6515_v37 = vld [vmem:[%s9811_s3 + $0x40] sm:$0xff]  ;;  %v6518_v38 = vld [vmem:[%s9814_s6 + $0x10] sm:$0xf] }
  0x80   : > { %v6514_v34 = vld [vmem:[%s9810_s2 + $0x48] sm:$0xff]  ;;  %v4447_v39 = vld [vmem:[#allocation6 + $0x10] sm:$0xf]  ;;  %v6538_v40 = vld [vmem:[%s9817_s9 + $0x10] sm:$0xf] }
  0x81   : > { %v6516_v36 = vld [vmem:[%s9811_s3 + $0x48] sm:$0xff]  ;;  %v6537_v41 = vld [vmem:[%s9816_s8 + $0x10] sm:$0xf]  ;;  %v5189_v44 = vld [vmem:[#allocation9 + $0x8] sm:$0xff] }
  0x82   : > { %1854 = vperm.xlu1 %7390, %v1845_v8   ;;  %v5187_v42 = vld [vmem:[#allocation7 + $0x8] sm:$0xff]  ;;  %v5186_v43 = vld [vmem:[#allocation7] sm:$0xff]  ;;  %v5188_v45 = vld [vmem:[#allocation9] sm:$0xff] }
  0x83   : > { %1848 = vperm.xlu0 %7389, %v1844_v9   ;;  %v5269_v46 = vld [vmem:[#allocation12 + $0x8] sm:$0xff]  ;;  %v5268_v47 = vld [vmem:[#allocation12] sm:$0xff]  ;;  %v5270_v49 = vld [vmem:[%s9823_s15] sm:$0xff] }
  0x84   : > { %v5271_v48 = vld [vmem:[%s9823_s15 + $0x8] sm:$0xff]  ;;  %v6548_v50 = vld [vmem:[%s9810_s2 + $0x58] sm:$0xff]  ;;  %v6547_v51 = vld [vmem:[%s9810_s2 + $0x50] sm:$0xff] }
  0x85   : > { %v6550_v52 = vld [vmem:[%s9811_s3 + $0x58] sm:$0xff]  ;;  %v6549_v53 = vld [vmem:[%s9811_s3 + $0x50] sm:$0xff]  ;;  %v5443_v55 = vld [vmem:[#allocation6 + $0x14] sm:$0xf] }
  0x86   : > { %1927 = vperm.xlu1 %7390, %v6424_v10   ;;  %v6552_v54 = vld [vmem:[%s9814_s6 + $0x14] sm:$0xf]  ;;  %v8219_v56 = vld [vmem:[#allocation2 + $0x1fc] ss:$36 sps:$4 sm:$0xff]   ;;  %v8237_v62 = vld [vmem:[#allocation2 + $0x16c] ss:$36 sps:$4 sm:$0xff]  }
  0x87   : > { %1922 = vperm.xlu0 %7389, %v6423_v11   ;;  %v8221_v57 = vld [vmem:[#allocation2 + $0x1f8] ss:$36 sps:$4 sm:$0xff]   ;;  %v6572_v59 = vld [vmem:[%s9817_s9 + $0x14] sm:$0xf]  ;;  %1194 = vmatprep.subr.bf16.mxu1 %v8219_v56  ;;  %v8240_v63 = vld [vmem:[#allocation2 + $0x168] ss:$36 sps:$4 sm:$0xff]  }
  0x88   : > { %v8223_v58 = vld [vmem:[#allocation2 + $0x1b4] ss:$36 sps:$4 sm:$0xff]   ;;  %1195 = vmatpush1.bf16.msra.mxu1 %v8221_v57  ;;  %v8246_v1 = vld [vmem:[#allocation2 + $0x124] ss:$36 sps:$4 sm:$0xff]   ;;  %v8253_v3 = vld [vmem:[#allocation2 + $0xdc] ss:$36 sps:$4 sm:$0xff]  }
  0x89   : > { %v6571_v60 = vld [vmem:[%s9816_s8 + $0x14] sm:$0xf]  ;;  %1196 = vmatprep.subr.bf16.mxu1 %v8223_v58  ;;  %v8249_v2 = vld [vmem:[#allocation2 + $0x120] ss:$36 sps:$4 sm:$0xff]   ;;  %v8261_v4 = vld [vmem:[#allocation2 + $0xd8] ss:$36 sps:$4 sm:$0xff]  }
  0x8a   : > { %1939 = vperm.xlu1 %7390, %v6426_v12   ;;  %v8233_v61 = vld [vmem:[#allocation2 + $0x1b0] ss:$36 sps:$4 sm:$0xff]   ;;  %v8266_v6 = vld [vmem:[%s645_s18] sm:$0xff]  ;;  %v8273_v12 = vld [vmem:[%s645_s18 + $0x8] sm:$0xff] }
  0x8b   : > { %1934 = vperm.xlu0 %7389, %v6425_v13   ;;  %v8264_v5 = vld [vmem:[#allocation2 + $0x94] ss:$36 sps:$4 sm:$0xff]  }
  0x8c   : > { %1197 = vmatpush1.bf16.msra.mxu1 %v8233_v61  ;;  %v8269_v8 = vld [vmem:[#allocation2 + $0x90] ss:$36 sps:$4 sm:$0xff]  }
  0x8d   : > { %1198 = vmatprep.subr.bf16.mxu1 %v8237_v62  ;;  %v8427_v7 = vld [vmem:[#allocation2 + $0x14] ss:$36 sps:$4 sm:$0xff]  }
  0x8e   : > { %2004 = vperm.xlu1 %7390, %v6428_v14   ;;  %9987 = vst [vmem:[#allocation43_spill] sm:$0xff] %v8427_v7 }
  0x8f   : > { %1998 = vperm.xlu0 %7389, %v1993_v15  }
  0x90   : > { %1199 = vmatpush1.bf16.msra.mxu1 %v8240_v63 }
  0x91   : > { %1200 = vmatprep.subr.bf16.mxu1 %v8246_v1 }
  0x92   : > { %2671 = vperm.xlu1 %7390, %v6448_v16  }
  0x93   : > { %2665 = vperm.xlu0 %7389, %v6447_v17  }
  0x94   : > { %1201 = vmatpush1.bf16.msra.mxu1 %v8249_v2 }
  0x95   : > { %1202 = vmatprep.subr.bf16.mxu1 %v8253_v3 }
  0x96   : > { %2745 = vperm.xlu1 %7390, %v6454_v18  }
  0x97   : > { %2740 = vperm.xlu0 %7389, %v6453_v19  }
  0x98   : > { %1203 = vmatpush1.bf16.msra.mxu1 %v8261_v4 }
  0x99   : > { %1204 = vmatprep.subr.bf16.mxu1 %v8264_v5 }
  0x9a   : > { %2757 = vperm.xlu1 %7390, %v6456_v20   ;;  %v8277_v20 = vld [vmem:[#allocation2 + $0x204] ss:$36 sps:$4 sm:$0xff]  }
  0x9b   : > { %2752 = vperm.xlu0 %7389, %v6455_v21  }
  0x9c   : > { %1205 = vmatpush1.bf16.msra.mxu1 %v8269_v8 }
  0x9e   : > { %2822 = vperm.xlu1 %7390, %v6458_v22   ;;  %v684_v22 = vld [vmem:[#allocation4] sm:$0x3] }
  0x9f   : > { %2816 = vperm.xlu0 %7389, %v2811_v23   ;;  %v8279_v23 = vld [vmem:[#allocation2 + $0x200] ss:$36 sps:$4 sm:$0xff]  }
  0xa2   : > { %3563 = vperm.xlu1 %7390, %v6484_v24   ;;  %v8282_v24 = vld [vmem:[#allocation2 + $0x1bc] ss:$36 sps:$4 sm:$0xff]  }
  0xa3   : > { %3558 = vperm.xlu0 %7389, %v6483_v25   ;;  %v8286_v25 = vld [vmem:[#allocation2 + $0x1b8] ss:$36 sps:$4 sm:$0xff]  }
  0xa6   : > { %3575 = vperm.xlu1 %7390, %v6486_v26   ;;  %v8290_v26 = vld [vmem:[#allocation2 + $0x174] ss:$36 sps:$4 sm:$0xff]  }
  0xa7   : > { %3570 = vperm.xlu0 %7389, %v6485_v27   ;;  %v8293_v27 = vld [vmem:[#allocation2 + $0x170] ss:$36 sps:$4 sm:$0xff]  }
  0xaa   : > { %3489 = vperm.xlu1 %7390, %v6478_v28   ;;  %v8296_v28 = vld [vmem:[#allocation2 + $0x12c] ss:$36 sps:$4 sm:$0xff]  }
  0xab   : > { %3483 = vperm.xlu0 %7389, %v6477_v29   ;;  %v8299_v29 = vld [vmem:[#allocation2 + $0x128] ss:$36 sps:$4 sm:$0xff]  }
  0xae   : > { %3640 = vperm.xlu1 %7390, %v6488_v30   ;;  %v8302_v30 = vld [vmem:[#allocation2 + $0xe4] ss:$36 sps:$4 sm:$0xff]  }
  0xaf   : > { %3634 = vperm.xlu0 %7389, %v3629_v31   ;;  %v8305_v31 = vld [vmem:[#allocation2 + $0xe0] ss:$36 sps:$4 sm:$0xff]  }
  0xb2   : > { %4307 = vperm.xlu1 %7390, %v6508_v32   ;;  %v8308_v32 = vld [vmem:[#allocation2 + $0x9c] ss:$36 sps:$4 sm:$0xff]  }
  0xb3   : > { %4301 = vperm.xlu0 %7389, %v6507_v33   ;;  %v8311_v33 = vld [vmem:[#allocation2 + $0x98] ss:$36 sps:$4 sm:$0xff]  }
  0xb6   : > { %4381 = vperm.xlu1 %7390, %v6514_v34   ;;  %v8315_v34 = vld [vmem:[#allocation2 + $0x4c] ss:$36 sps:$4 sm:$0xff]  }
  0xb7   : > { %4376 = vperm.xlu0 %7389, %v6513_v35   ;;  %v8317_v35 = vld [vmem:[#allocation2 + $0x54] ss:$36 sps:$4 sm:$0xff]   ;;  %1206 = vmatprep.subr.bf16.mxu1 %v8315_v34 }
  0xba   : > { %4393 = vperm.xlu1 %7390, %v6516_v36   ;;  %v8319_v36 = vld [vmem:[#allocation2 + $0x48] ss:$36 sps:$4 sm:$0xff]  }
  0xbb   : > { %4388 = vperm.xlu0 %7389, %v6515_v37   ;;  %v8321_v37 = vld [vmem:[#allocation2 + $0x50] ss:$36 sps:$4 sm:$0xff]   ;;  %1207 = vmatpush1.bf16.msra.mxu1 %v8319_v36 }
  0xbe   : > { %4458 = vperm.xlu1 %7390, %v6518_v38   ;;  %v8327_v38 = vld [vmem:[#allocation2 + $0x4] ss:$36 sps:$4 sm:$0xff]  }
  0xbf   : > { %4452 = vperm.xlu0 %7389, %v4447_v39   ;;  %v8329_v39 = vld [vmem:[#allocation2 + $0xc] ss:$36 sps:$4 sm:$0xff]   ;;  %1208 = vmatprep.subr.bf16.mxu1 %v8327_v38 }
  0xc2   : > { %5125 = vperm.xlu1 %7390, %v6538_v40   ;;  %v8331_v40 = vld [vmem:[#allocation2] ss:$36 sps:$4 sm:$0xff]  }
  0xc3   : > { %5119 = vperm.xlu0 %7389, %v6537_v41   ;;  %v8333_v41 = vld [vmem:[#allocation2 + $0x8] ss:$36 sps:$4 sm:$0xff]   ;;  %1209 = vmatpush1.bf16.msra.mxu1 %v8331_v40 }
  0xc6   : > { %5197 = vperm.xlu1 %7390, %v5187_v42   ;;  %v8339_v42 = vld [vmem:[#allocation2 + $0x20c] ss:$36 sps:$4 sm:$0xff]  }
  0xc7   : > { %5192 = vperm.xlu0 %7389, %v5186_v43   ;;  %v8341_v43 = vld [vmem:[#allocation2 + $0x214] ss:$36 sps:$4 sm:$0xff]   ;;  %1276 = vmatprep.subr.bf16.mxu1 %v8339_v42 }
  0xca   : > { %5209 = vperm.xlu1 %7390, %v5189_v44  }
  0xcb   : > { %5204 = vperm.xlu0 %7389, %v5188_v45  }
  0xce   : > { %5279 = vperm.xlu1 %7390, %v5269_v46  }
  0xcf   : > { %5274 = vperm.xlu0 %7389, %v5268_v47  }
  0xd2   : > { %5291 = vperm.xlu1 %7390, %v5271_v48  }
  0xd3   : > { %5286 = vperm.xlu0 %7389, %v5270_v49  }
  0xd6   : > { %5377 = vperm.xlu1 %7390, %v6548_v50  }
  0xd7   : > { %5372 = vperm.xlu0 %7389, %v6547_v51  }
  0xda   : > { %5389 = vperm.xlu1 %7390, %v6550_v52  }
  0xdb   : > { %5384 = vperm.xlu0 %7389, %v6549_v53   ;;  %v8345_v53 = vld [vmem:[#allocation2 + $0x208] ss:$36 sps:$4 sm:$0xff]  }
  0xdc   : > { %9961 = vst [vmem:[#allocation17_spill] sm:$0xff] %v8345_v53 }
  0xde   : > { %5454 = vperm.xlu1 %7390, %v6552_v54   ;;  %v8347_v54 = vld [vmem:[#allocation2 + $0x210] ss:$36 sps:$4 sm:$0xff]  }
  0xdf   : > { %5448 = vperm.xlu0 %7389, %v5443_v55   ;;  %9962 = vst [vmem:[#allocation18_spill] sm:$0xff] %v8347_v54 }
  0xe2   : > { %6121 = vperm.xlu1 %7390, %v6572_v59   ;;  %v8351_v59 = vld [vmem:[#allocation2 + $0x1c4] ss:$36 sps:$4 sm:$0xff]  }
  0xe3   : > { %6115 = vperm.xlu0 %7389, %v6571_v60   ;;  %9963 = vst [vmem:[#allocation19_spill] sm:$0xff] %v8351_v59  ;;  %v8353_v60 = vld [vmem:[#allocation2 + $0x1cc] ss:$36 sps:$4 sm:$0xff]  }
  0xe4   : > { %9964 = vst [vmem:[#allocation20_spill] sm:$0xff] %v8353_v60 }
  0xf1   : > { %v673_v9 = vpop.permute.xlu1 %672 }
  0xf2   : > { %v661_v10 = vpop.permute.xlu0 %660 }
  0xf3   : > { %v668_v11 = vmul.f32 %v661_v10, %v8266_v6  ;;  %v8361_v10 = vld [vmem:[#allocation2 + $0x1c8] ss:$36 sps:$4 sm:$0xff]  }
  0xf4   : > { %9966 = vst [vmem:[#allocation22_spill] sm:$0xff] %v8361_v10 }
  0xf5   : > { %v680_v14 = vadd.f32 %v673_v9, %v668_v11  ;;  %v678_v16 = vpop.permute.xlu1 %677  ;;  %v8359_v9 = vld [vmem:[#allocation2 + $0x1c0] ss:$36 sps:$4 sm:$0xff]  }
  0xf6   : > { %v666_v13 = vpop.permute.xlu0 %665  ;;  %9965 = vst [vmem:[#allocation21_spill] sm:$0xff] %v8359_v9  ;;  %v8365_v11 = vld [vmem:[#allocation2 + $0x17c] ss:$36 sps:$4 sm:$0xff]  }
  0xf7   : > { %v669_v15 = vmul.f32 %v666_v13, %v8273_v12  ;;  %v682_v18 = vmax.f32 %v680_v14, 0.0  ;;  %9967 = vst [vmem:[#allocation23_spill] sm:$0xff] %v8365_v11  ;;  %v8367_v13 = vld [vmem:[#allocation2 + $0x184] ss:$36 sps:$4 sm:$0xff]   ;;  %v8373_v14 = vld [vmem:[#allocation2 + $0x178] ss:$36 sps:$4 sm:$0xff]  }
  0xf8   : > { %9968 = vst [vmem:[#allocation24_spill] sm:$0xff] %v8367_v13  ;;  %9969 = vst [vmem:[#allocation25_spill] sm:$0xff] %v8373_v14 }
  0xf9   : > { %v681_v17 = vadd.f32 %v678_v16, %v669_v15  ;;  %v741_v47 = vpop.permute.xlu1 %740  ;;  %v8375_v15 = vld [vmem:[#allocation2 + $0x180] ss:$36 sps:$4 sm:$0xff]   ;;  %v8379_v16 = vld [vmem:[#allocation2 + $0x134] ss:$36 sps:$4 sm:$0xff]  }
  0xfa   : > { %v735_v44 = vpop.permute.xlu0 %734  ;;  %9970 = vst [vmem:[#allocation26_spill] sm:$0xff] %v8375_v15  ;;  %9971 = vst [vmem:[#allocation27_spill] sm:$0xff] %v8379_v16 }
  0xfb   : > { %v683_v19 = vmax.f32 %v681_v17, 0.0  ;;  %v8381_v17 = vld [vmem:[#allocation2 + $0x13c] ss:$36 sps:$4 sm:$0xff]  }
  0xfc   : > { %9972 = vst [vmem:[#allocation28_spill] sm:$0xff] %v8381_v17 }
  0xfd   : > { %v685_v21 = vpack.c.bf16 %v683_v19, %v682_v18  ;;  %v8385_v18 = vld [vmem:[#allocation2 + $0x130] ss:$36 sps:$4 sm:$0xff]   ;;  %v8387_v19 = vld [vmem:[#allocation2 + $0x138] ss:$36 sps:$4 sm:$0xff]  }
  0xfe   : > { %9973 = vst [vmem:[#allocation29_spill] sm:$0xff] %v8385_v18  ;;  %9974 = vst [vmem:[#allocation30_spill] sm:$0xff] %v8387_v19 }
  0xff   : > { %6772 = vmatpush3.bf16.msra.mxu0 %v685_v21  ;;  %v8391_v21 = vld [vmem:[#allocation2 + $0xec] ss:$36 sps:$4 sm:$0xff]  }
 0x100   : > { %1235 = vmatprep.subr.bf16.mxu0 %v8277_v20  ;;  %9975 = vst [vmem:[#allocation31_spill] sm:$0xff] %v8391_v21 }
 0x102   : > { %6774 = vmatmul.mubr.msk.bf16.vlgmr.msra.gmra.mxu0 %vm686_vm1, %v684_v22  ;;  %v8393_v22 = vld [vmem:[#allocation2 + $0xf4] ss:$36 sps:$4 sm:$0xff]  }
 0x103   : > { %1236 = vmatpush1.bf16.msra.mxu0 %v8279_v23  ;;  %1267 = vmatprep.mubr.bf16.mxu0 %v9832_v0  ;;  %9976 = vst [vmem:[#allocation32_spill] sm:$0xff] %v8393_v22 }
 0x104   : > { %1237 = vmatprep.subr.bf16.mxu0 %v8282_v24 }
 0x107   : > { %1238 = vmatpush1.bf16.msra.mxu0 %v8286_v25 }
 0x108   : > { %1239 = vmatprep.subr.bf16.mxu0 %v8290_v26 }
 0x10b   : > { %1240 = vmatpush1.bf16.msra.mxu0 %v8293_v27 }
 0x10c   : > { %1241 = vmatprep.subr.bf16.mxu0 %v8296_v28 }
 0x10f   : > { %1242 = vmatpush1.bf16.msra.mxu0 %v8299_v29 }
 0x110   : > { %1243 = vmatprep.subr.bf16.mxu0 %v8302_v30 }
 0x113   : > { %1244 = vmatpush1.bf16.msra.mxu0 %v8305_v31 }
 0x114   : > { %1245 = vmatprep.subr.bf16.mxu0 %v8308_v32 }
 0x117   : > { %1246 = vmatpush1.bf16.msra.mxu0 %v8311_v33 }
 0x118   : > { %1247 = vmatprep.subr.bf16.mxu0 %v8317_v35 }
 0x11b   : > { %1248 = vmatpush1.bf16.msra.mxu0 %v8321_v37 }
 0x11c   : > { %1249 = vmatprep.subr.bf16.mxu0 %v8329_v39 }
 0x11f   : > { %1250 = vmatpush1.bf16.msra.mxu0 %v8333_v41 }
 0x120   : > { %1317 = vmatprep.subr.bf16.mxu0 %v8341_v43 }
 0x1c2   : > { %v724_v45 = vpop.f32.mrf.mxu0 }
 0x1c3   : > { %v737_v46 = vmul.f32 %v735_v44, %v724_v45  ;;  %v8397_v44 = vld [vmem:[#allocation2 + $0xe8] ss:$36 sps:$4 sm:$0xff]   ;;  %v8399_v45 = vld [vmem:[#allocation2 + $0xf0] ss:$36 sps:$4 sm:$0xff]  }
 0x1c4   : > { %v6775_v48 = vpop.f32.mrf.mxu0  ;;  %9977 = vst [vmem:[#allocation33_spill] sm:$0xff] %v8397_v44  ;;  %9978 = vst [vmem:[#allocation34_spill] sm:$0xff] %v8399_v45 }
 0x1c5   : > { %v743_v49 = vadd.f32 %v741_v47, %v737_v46  ;;  %v8403_v46 = vld [vmem:[#allocation2 + $0xa4] ss:$36 sps:$4 sm:$0xff]   ;;  %v8405_v47 = vld [vmem:[#allocation2 + $0xac] ss:$36 sps:$4 sm:$0xff]  }
 0x1c6   : > { %v727_v50 = vpop.f32.mrf.mxu0  ;;  %9979 = vst [vmem:[#allocation35_spill] sm:$0xff] %v8403_v46  ;;  %9980 = vst [vmem:[#allocation36_spill] sm:$0xff] %v8405_v47  ;;  %v8409_v48 = vld [vmem:[#allocation2 + $0xa0] ss:$36 sps:$4 sm:$0xff]  }
 0x1c7   : > { %v744_v51 = vmax.f32 %v743_v49, 0.0  ;;  %9981 = vst [vmem:[#allocation37_spill] sm:$0xff] %v8409_v48  ;;  %v8411_v49 = vld [vmem:[#allocation2 + $0xa8] ss:$36 sps:$4 sm:$0xff]   ;;  %v8415_v50 = vld [vmem:[#allocation2 + $0x5c] ss:$36 sps:$4 sm:$0xff]  }
 0x1c8   : > { %v6776_v52 = vpop.f32.mrf.mxu0  ;;  %9982 = vst [vmem:[#allocation38_spill] sm:$0xff] %v8411_v49  ;;  %9983 = vst [vmem:[#allocation39_spill] sm:$0xff] %v8415_v50 }
 0x1c9   : > { %v8349_v55 = vpack.c.bf16 %v744_v51, %v744_v51  ;;  %v8417_v51 = vld [vmem:[#allocation2 + $0x64] ss:$36 sps:$4 sm:$0xff]   ;;  %v8421_v52 = vld [vmem:[#allocation2 + $0x58] ss:$36 sps:$4 sm:$0xff]  }
 0x1ca   : > { %9984 = vst [vmem:[#allocation40_spill] sm:$0xff] %v8417_v51  ;;  %9985 = vst [vmem:[#allocation41_spill] sm:$0xff] %v8421_v52 }
 0x1cb   : > { %1227 = vmatmul.mubr.bf16.vlgmr.msra.gmra.mxu1 %v8349_v55  ;;  %1268 = vmatmul.mubr.bf16.vlgmr.msra.gmra.mxu0 %v8349_v55 }
 0x1cc   : > { %1277 = vmatpush1.bf16.msra.mxu1 %v8345_v53  ;;  %1318 = vmatpush1.bf16.msra.mxu0 %v8347_v54 }
 0x1cd   : > { %1278 = vmatprep.subr.bf16.mxu1 %v8351_v59  ;;  %1319 = vmatprep.subr.bf16.mxu0 %v8353_v60 }
 0x1ce   : > { %1308 = vmatprep.mubr.bf16.mxu1 %v9832_v0  ;;  %1349 = vmatprep.mubr.bf16.mxu0 %v9832_v0  ;;  %v8423_v0 = vld [vmem:[#allocation2 + $0x60] ss:$36 sps:$4 sm:$0xff]  }
 0x1cf   : > { %9986 = vst [vmem:[#allocation42_spill] sm:$0xff] %v8423_v0 }
 0x1d0   : > { %1279 = vmatpush1.bf16.msra.mxu1 %v8359_v9  ;;  %1320 = vmatpush1.bf16.msra.mxu0 %v8361_v10 }
 0x1d1   : > { %1280 = vmatprep.subr.bf16.mxu1 %v8365_v11  ;;  %1321 = vmatprep.subr.bf16.mxu0 %v8367_v13 }
 0x1d4   : > { %1281 = vmatpush1.bf16.msra.mxu1 %v8373_v14  ;;  %1322 = vmatpush1.bf16.msra.mxu0 %v8375_v15 }
 0x1d5   : > { %1282 = vmatprep.subr.bf16.mxu1 %v8379_v16  ;;  %1323 = vmatprep.subr.bf16.mxu0 %v8381_v17 }
 0x1d8   : > { %1283 = vmatpush1.bf16.msra.mxu1 %v8385_v18  ;;  %1324 = vmatpush1.bf16.msra.mxu0 %v8387_v19 }
 0x1d9   : > { %1284 = vmatprep.subr.bf16.mxu1 %v8391_v21  ;;  %1325 = vmatprep.subr.bf16.mxu0 %v8393_v22 }
 0x1dc   : > { %1285 = vmatpush1.bf16.msra.mxu1 %v8397_v44  ;;  %1326 = vmatpush1.bf16.msra.mxu0 %v8399_v45 }
 0x1dd   : > { %1286 = vmatprep.subr.bf16.mxu1 %v8403_v46  ;;  %1327 = vmatprep.subr.bf16.mxu0 %v8405_v47  ;;  %v8429_v46 = vld [vmem:[#allocation2 + $0x1c] ss:$36 sps:$4 sm:$0xff]   ;;  %v8433_v47 = vld [vmem:[#allocation2 + $0x10] ss:$36 sps:$4 sm:$0xff]  }
 0x1de   : > { %9988 = vst [vmem:[#allocation44_spill] sm:$0xff] %v8429_v46  ;;  %9989 = vst [vmem:[#allocation45_spill] sm:$0xff] %v8433_v47 }
 0x1e0   : > { %1287 = vmatpush1.bf16.msra.mxu1 %v8409_v48  ;;  %1328 = vmatpush1.bf16.msra.mxu0 %v8411_v49  ;;  %v8435_v48 = vld [vmem:[#allocation2 + $0x18] ss:$36 sps:$4 sm:$0xff]  }
 0x1e1   : > { %1288 = vmatprep.subr.bf16.mxu1 %v8415_v50  ;;  %1329 = vmatprep.subr.bf16.mxu0 %v8417_v51  ;;  %9990 = vst [vmem:[#allocation46_spill] sm:$0xff] %v8435_v48  ;;  %v8441_v51 = vld [vmem:[#allocation2 + $0x218] ss:$36 sps:$4 sm:$0xff]   ;;  %v9992_v50 = vmov 0.0  }
 0x1e2   : > { %9991 = vst [vmem:[#allocation47_spill] sm:$0xff] %v8441_v51 }
 0x1e4   : > { %1289 = vmatpush1.bf16.msra.mxu1 %v8421_v52  ;;  %1330 = vmatpush1.bf16.msra.mxu0 %v8423_v0  ;;  %v8448_v0 = vld [vmem:[#allocation2 + $0x1d0] ss:$36 sps:$4 sm:$0xff]  }
 0x1e5   : > { %1290 = vmatprep.subr.bf16.mxu1 %v8427_v7  ;;  %1331 = vmatprep.subr.bf16.mxu0 %v8429_v46  ;;  %9993 = vst [vmem:[#allocation48_spill] sm:$0xff] %v8448_v0  ;;  %v8468_v46 = vld [vmem:[#allocation2 + $0xb0] ss:$36 sps:$4 sm:$0xff]  }
 0x1e6   : > { %9997 = vst [vmem:[#allocation52_spill] sm:$0xff] %v8468_v46 }
 0x1e8   : > { %1291 = vmatpush1.bf16.msra.mxu1 %v8433_v47  ;;  %1332 = vmatpush1.bf16.msra.mxu0 %v8435_v48  ;;  %v8456_v48 = vld [vmem:[#allocation2 + $0x188] ss:$36 sps:$4 sm:$0xff]   ;;  %v8460_v47 = vld [vmem:[#allocation2 + $0x140] ss:$36 sps:$4 sm:$0xff]  }
 0x1e9   : > { %6777 = vmatprep.subr.bf16.mxu1 %v9992_v50  ;;  %6797 = vmatprep.subr.bf16.mxu0 %v9992_v50  ;;  %9994 = vst [vmem:[#allocation49_spill] sm:$0xff] %v8456_v48  ;;  %9995 = vst [vmem:[#allocation50_spill] sm:$0xff] %v8460_v47 }
 0x1eb   : > { %1309 = vmatmul.mubr.bf16.vlgmr.msra.gmra.mxu1 %v8349_v55  ;;  %1350 = vmatmul.mubr.bf16.vlgmr.msra.gmra.mxu0 %v8349_v55 }
 0x1ec   : > { %6778 = vmatpush3.bf16.msra.mxu1 %v8441_v51  ;;  %6793 = vmatprep.mubr.msk.bf16.mxu1 %vm7878_vm0, %v9992_v50  ;;  %v8464_v51 = vld [vmem:[#allocation2 + $0xf8] ss:$36 sps:$4 sm:$0xff]  }
 0x1ed   : > { %6779 = vmatprep.subr.bf16.mxu1 %v9992_v50  ;;  %6799 = vmatprep.mubr.msk.bf16.mxu0 %vm7878_vm0, %v9992_v50  ;;  %9996 = vst [vmem:[#allocation51_spill] sm:$0xff] %v8464_v51 }
 0x1f0   : > { %6780 = vmatpush3.bf16.msra.mxu1 %v8448_v0  ;;  %v8472_v0 = vld [vmem:[#allocation2 + $0x68] ss:$36 sps:$4 sm:$0xff]  }
 0x1f1   : > { %6781 = vmatprep.subr.bf16.mxu1 %v9992_v50  ;;  %9998 = vst [vmem:[#allocation53_spill] sm:$0xff] %v8472_v0 }
 0x1f4   : > { %6782 = vmatpush3.bf16.msra.mxu1 %v8456_v48  ;;  %v8476_v48 = vld [vmem:[#allocation2 + $0x20] ss:$36 sps:$4 sm:$0xff]  }
 0x1f5   : > { %6783 = vmatprep.subr.bf16.mxu1 %v9992_v50  ;;  %9999 = vst [vmem:[#allocation54_spill] sm:$0xff] %v8476_v48 }
 0x1f8   : > { %6784 = vmatpush3.bf16.msra.mxu1 %v8460_v47 }
 0x1f9   : > { %6785 = vmatprep.subr.bf16.mxu1 %v9992_v50 }
 0x1fc   : > { %6786 = vmatpush3.bf16.msra.mxu1 %v8464_v51 }
 0x1fd   : > { %6787 = vmatprep.subr.bf16.mxu1 %v9992_v50 }
 0x200   : > { %6788 = vmatpush3.bf16.msra.mxu1 %v8468_v46 }
 0x201   : > { %6789 = vmatprep.subr.bf16.mxu1 %v9992_v50 }
 0x204   : > { %6790 = vmatpush3.bf16.msra.mxu1 %v8472_v0 }
 0x205   : > { %6791 = vmatprep.subr.bf16.mxu1 %v9992_v50 }
 0x208   : > { %6792 = vmatpush3.bf16.msra.mxu1 %v8476_v48 }
 0x209   : > { %6821 = vmatprep.subr.bf16.mxu1 %v9992_v50 }
 0x20b   : > { %6794 = vmatmul.mubr.bf16.vlgmr.msra.gmra.mxu1 %v8349_v55  ;;  %v6404_v55 = vld [vmem:[%s9815_s7 + $0x2] sm:$0x3] }
 0x20c   : > { %6823 = vmatprep.mubr.msk.bf16.mxu1 %vm7878_vm0, %v9992_v50 }
 0x28b   : > { %v1228_v46 = vpop.f32.mrf.mxu1  ;;  %v8484_v51 = vpop.f32.mrf.mxu0 }
 0x28d   : > { %v1230_v47 = vpop.f32.mrf.mxu1  ;;  %v1271_v7 = vpop.f32.mrf.mxu0 }
 0x28e   : > { %v1399_v52 = vpack.c.bf16 %v1230_v47, %v1230_v47  ;;  %v1401_v44 = vpack.c.bf16 %v1271_v7, %v1271_v7 }
 0x28f   : > { %v1232_v0 = vpop.f32.mrf.mxu1  ;;  %v1273_v49 = vpop.f32.mrf.mxu0 }
 0x290   : > { %v1416_v45 = vsel %vm1414_vm2, %v1399_v52, 0  ;;  %v1466_v21 = vsel %vm1414_vm2, %v1401_v44, 0  ;;  %v6407_v0 = vld [vmem:[%s9815_s7 + $0x6] sm:$0x3] }
 0x291   : > { %v1233_v48 = vpop.f32.mrf.mxu1  ;;  %v1274_v22 = vpop.f32.mrf.mxu0  ;;  %6798 = vmatpush3.bf16.msra.mxu0 %v1416_v45 }
 0x292   : > { %6803 = vmatprep.subr.bf16.mxu0 %v9992_v50 }
 0x294   : > { %6800 = vmatmul.mubr.msk.bf16.vlgmr.msra.gmra.mxu0 %vm1410_vm3, %v6404_v55 }
 0x295   : > { %6804 = vmatpush3.bf16.msra.mxu0 %v1466_v21  ;;  %6805 = vmatprep.mubr.msk.bf16.mxu0 %vm7878_vm0, %v9992_v50 }
 0x296   : > { %6809 = vmatprep.subr.bf16.mxu0 %v9992_v50 }
 0x29c   : > { %6806 = vmatmul.mubr.msk.bf16.vlgmr.msra.gmra.mxu0 %vm1410_vm3, %v6407_v0  ;;  %v6410_v0 = vld [vmem:[%s9815_s7 + $0xa] sm:$0x3] }
 0x29d   : > { %6811 = vmatprep.mubr.msk.bf16.mxu0 %vm7878_vm0, %v9992_v50 }
 0x2ab   : > { %v1310_v7 = vpop.f32.mrf.mxu1  ;;  %v1351_v22 = vpop.f32.mrf.mxu0 }
 0x2ad   : > { %v1312_v44 = vpop.f32.mrf.mxu1  ;;  %v1353_v45 = vpop.f32.mrf.mxu0 }
 0x2ae   : > { %v1403_v47 = vpack.c.bf16 %v1312_v44, %v1312_v44  ;;  %v1405_v52 = vpack.c.bf16 %v1353_v45, %v1353_v45  ;;  %v1398_v44 = vpack.c.bf16 %v1228_v46, %v1228_v46 }
 0x2af   : > { %v1314_v21 = vpop.f32.mrf.mxu1  ;;  %v1355_v48 = vpop.f32.mrf.mxu0 }
 0x2b0   : > { %v1516_v49 = vsel %vm1414_vm2, %v1403_v47, 0  ;;  %v1566_v18 = vsel %vm1414_vm2, %v1405_v52, 0  ;;  %v1660_v45 = vsel %vm1414_vm2, %v1398_v44, 0  ;;  %v1407_v47 = vld [vmem:[%s9815_s7] sm:$0x3]  ;;  %v1400_v52 = vpack.c.bf16 %v8484_v51, %v8484_v51 }
 0x2b1   : > { %v1315_v55 = vpop.f32.mrf.mxu1  ;;  %v1356_v19 = vpop.f32.mrf.mxu0  ;;  %6810 = vmatpush3.bf16.msra.mxu0 %v1516_v49  ;;  %v6409_v21 = vld [vmem:[%s9815_s7 + $0x8] sm:$0x3]  ;;  %v6415_v44 = vld [vmem:[%s9815_s7 + $0x10] sm:$0x3]  ;;  %v1404_v51 = vpack.c.bf16 %v1351_v22, %v1351_v22 }
 0x2b2   : > { %6815 = vmatprep.subr.bf16.mxu0 %v9992_v50  ;;  %v6413_v19 = vld [vmem:[%s9815_s7 + $0xe] sm:$0x3] }
 0x2b4   : > { %6812 = vmatmul.mubr.msk.bf16.vlgmr.msra.gmra.mxu0 %vm1410_vm3, %v6410_v0 }
 0x2b5   : > { %6816 = vmatpush3.bf16.msra.mxu0 %v1566_v18  ;;  %6817 = vmatprep.mubr.msk.bf16.mxu0 %vm7878_vm0, %v9992_v50  ;;  %v1402_v18 = vpack.c.bf16 %v1310_v7, %v1310_v7 }
 0x2b6   : > { %6827 = vmatprep.subr.bf16.mxu0 %v9992_v50 }
 0x2b7   : > { %v1752_v46 = vsel %vm1414_vm2, %v1402_v18, 0  ;;  %v6406_v18 = vld [vmem:[%s9815_s7 + $0x4] sm:$0x3] }
 0x2bc   : > { %6818 = vmatmul.mubr.msk.bf16.vlgmr.msra.gmra.mxu0 %vm1410_vm3, %v6413_v19 }
 0x2bd   : > { %6828 = vmatpush3.bf16.msra.mxu0 %v1660_v45  ;;  %6829 = vmatprep.mubr.msk.bf16.mxu0 %vm7878_vm0, %v9992_v50  ;;  %v1706_v45 = vsel %vm1414_vm2, %v1400_v52, 0 }
 0x2be   : > { %6839 = vmatprep.subr.bf16.mxu0 %v9992_v50 }
 0x2c4   : > { %6830 = vmatmul.mubr.msk.bf16.vlgmr.msra.gmra.mxu0 %vm1410_vm3, %v1407_v47  ;;  %v1798_v47 = vsel %vm1414_vm2, %v1404_v51, 0 }
 0x2c5   : > { %6840 = vmatpush3.bf16.msra.mxu0 %v1752_v46  ;;  %6841 = vmatprep.mubr.msk.bf16.mxu0 %vm7878_vm0, %v9992_v50  ;;  %v6412_v46 = vld [vmem:[%s9815_s7 + $0xc] sm:$0x3] }
 0x2c6   : > { %6851 = vmatprep.subr.bf16.mxu0 %v9992_v50 }
 0x2cb   : > { %v1392_v48 = vpop.f32.mrf.mxu1 }
 0x2cc   : > { %v1406_v7 = vpack.c.bf16 %v1392_v48, %v1392_v48  ;;  %6842 = vmatmul.mubr.msk.bf16.vlgmr.msra.gmra.mxu0 %vm1410_vm3, %v6409_v21 }
 0x2cd   : > { %v6795_v49 = vpop.f32.mrf.mxu1  ;;  %6853 = vmatprep.mubr.msk.bf16.mxu0 %vm7878_vm0, %v9992_v50 }
 0x2ce   : > { %v1614_v55 = vsel %vm1414_vm2, %v1406_v7, 0 }
 0x2cf   : > { %v1395_v0 = vpop.f32.mrf.mxu1  ;;  %6822 = vmatpush3.bf16.msra.mxu1 %v1614_v55 }
 0x2d0   : > { %6833 = vmatprep.subr.bf16.mxu1 %v9992_v50 }
 0x2d1   : > { %v6796_v19 = vpop.f32.mrf.mxu1 }
 0x2d2   : > { %6824 = vmatmul.mubr.msk.bf16.vlgmr.msra.gmra.mxu1 %vm1410_vm3, %v6415_v44 }
 0x2d3   : > { %6834 = vmatpush3.bf16.msra.mxu1 %v1706_v45  ;;  %6835 = vmatprep.mubr.msk.bf16.mxu1 %vm7878_vm0, %v9992_v50 }
 0x2d4   : > { %6845 = vmatprep.subr.bf16.mxu1 %v9992_v50 }
 0x2da   : > { %6836 = vmatmul.mubr.msk.bf16.vlgmr.msra.gmra.mxu1 %vm1410_vm3, %v6406_v18 }
 0x2db   : > { %6846 = vmatpush3.bf16.msra.mxu1 %v1798_v47  ;;  %6847 = vmatprep.mubr.msk.bf16.mxu1 %vm7878_vm0, %v9992_v50 }
 0x2dc   : > { %6857 = vmatprep.subr.bf16.mxu1 %v9992_v50 }
 0x2e2   : > { %6848 = vmatmul.mubr.msk.bf16.vlgmr.msra.gmra.mxu1 %vm1410_vm3, %v6412_v46 }
 0x2e3   : > { %6859 = vmatprep.mubr.msk.bf16.mxu1 %vm7878_vm0, %v9992_v50 }
 0x354   : > { %v1452_v22 = vpop.f32.mrf.mxu0 }
 0x356   : > { %v6801_v21 = vpop.f32.mrf.mxu0 }
 0x358   : > { %v1455_v48 = vpop.f32.mrf.mxu0 }
 0x35a   : > { %v6802_v7 = vpop.f32.mrf.mxu0 }
 0x35c   : > { %v1502_v49 = vpop.f32.mrf.mxu0 }
 0x35e   : > { %v6807_v52 = vpop.f32.mrf.mxu0 }
 0x360   : > { %v1505_v55 = vpop.f32.mrf.mxu0 }
 0x362   : > { %v6808_v0 = vpop.f32.mrf.mxu0 }
 0x374   : > { %v1552_v44 = vpop.f32.mrf.mxu0 }
 0x376   : > { %v6813_v19 = vpop.f32.mrf.mxu0 }
 0x378   : > { %v1555_v45 = vpop.f32.mrf.mxu0 }
 0x37a   : > { %v6814_v51 = vpop.f32.mrf.mxu0 }
 0x37c   : > { %v1602_v18 = vpop.f32.mrf.mxu0 }
 0x37e   : > { %v6819_v47 = vpop.f32.mrf.mxu0 }
 0x380   : > { %v1605_v17 = vpop.f32.mrf.mxu0 }
 0x382   : > { %v6820_v16 = vpop.f32.mrf.mxu0 }
 0x384   : > { %v1696_v46 = vpop.f32.mrf.mxu0 }
 0x385   : > { %v1697_v19 = vadd.f32 %v1696_v46, %v1452_v22  ;;  %v10016_v46 = vld [vmem:[#allocation32_spill] sm:$0xff] }
 0x386   : > { %v6831_v15 = vpop.f32.mrf.mxu0 }
 0x388   : > { %v1699_v14 = vpop.f32.mrf.mxu0 }
 0x38a   : > { %v6832_v50 = vpop.f32.mrf.mxu0 }
 0x38c   : > { %v1788_v13 = vpop.f32.mrf.mxu0 }
 0x38d   : > { %v1789_v60 = vadd.f32 %v1788_v13, %v1552_v44  ;;  %v10013_v13 = vld [vmem:[#allocation29_spill] sm:$0xff]  ;;  %v10014_v44 = vld [vmem:[#allocation30_spill] sm:$0xff] }
 0x38e   : > { %v6843_v21 = vpop.f32.mrf.mxu0 }
 0x390   : > { %v1791_v48 = vpop.f32.mrf.mxu0 }
 0x392   : > { %v1650_v7 = vpop.f32.mrf.mxu1  ;;  %v6844_v11 = vpop.f32.mrf.mxu0 }
 0x393   : > { %v1849_v11 = vpop.permute.xlu0 %1848 }
 0x394   : > { %v6825_v52 = vpop.f32.mrf.mxu1 }
 0x396   : > { %v1653_v55 = vpop.f32.mrf.mxu1 }
 0x397   : > { %v1855_v55 = vpop.permute.xlu1 %1854 }
 0x398   : > { %v6826_v0 = vpop.f32.mrf.mxu1 }
 0x39a   : > { %v1742_v10 = vpop.f32.mrf.mxu1 }
 0x39b   : > { %v1743_v45 = vadd.f32 %v1742_v10, %v1502_v49  ;;  %v7495_v49 = vld [vmem:[%s9818_s10] sm:$0xff]  }
 0x39c   : > { %v6837_v51 = vpop.f32.mrf.mxu1 }
 0x39d   : > { %v1840_v9 = vadd.f32 %v1743_v45, %v1697_v19  ;;  %v10018_v19 = vld [vmem:[#allocation34_spill] sm:$0xff]  ;;  %v10019_v45 = vld [vmem:[#allocation35_spill] sm:$0xff]  ;;  %v10020_v51 = vld [vmem:[#allocation36_spill] sm:$0xff] }
 0x39e   : > { %v1745_v47 = vpop.f32.mrf.mxu1 }
 0x39f   : > { %v10021_v47 = vld [vmem:[#allocation37_spill] sm:$0xff] }
 0x3a0   : > { %v6838_v17 = vpop.f32.mrf.mxu1 }
 0x3a1   : > { %v10022_v17 = vld [vmem:[#allocation38_spill] sm:$0xff] }
 0x3a2   : > { %v1834_v16 = vpop.f32.mrf.mxu1 }
 0x3a3   : > { %v1835_v15 = vadd.f32 %v1834_v16, %v1602_v18  ;;  %v10015_v18 = vld [vmem:[#allocation31_spill] sm:$0xff] }
 0x3a4   : > { %v6849_v14 = vpop.f32.mrf.mxu1  ;;  %v10023_v16 = vld [vmem:[#allocation39_spill] sm:$0xff] }
 0x3a5   : > { %v1841_v50 = vadd.f32 %v1835_v15, %v1789_v60  ;;  %v10011_v60 = vld [vmem:[#allocation27_spill] sm:$0xff]  ;;  %v10024_v15 = vld [vmem:[#allocation40_spill] sm:$0xff]  ;;  %v10025_v14 = vld [vmem:[#allocation41_spill] sm:$0xff] }
 0x3a6   : > { %v1837_v59 = vpop.f32.mrf.mxu1 }
 0x3a7   : > { %v1842_v21 = vadd.f32 %v1841_v50, %v1840_v9  ;;  %v10000_v59 = vmov 0   ;;  %v10012_v9 = vld [vmem:[#allocation28_spill] sm:$0xff]  ;;  %v10026_v50 = vld [vmem:[#allocation42_spill] sm:$0xff] }
 0x3a8   : > { %v6850_v48 = vpop.f32.mrf.mxu1 }
 0x3a9   : > { %v1843_v54 = vadd.f32 %v1842_v21, %v1650_v7  ;;  %v10017_v7 = vld [vmem:[#allocation33_spill] sm:$0xff]  ;;  %v10027_v21 = vld [vmem:[#allocation43_spill] sm:$0xff]  ;;  %v10028_v48 = vld [vmem:[#allocation44_spill] sm:$0xff] }
 0x3ab   : > { %v1851_v52 = vmul.f32 %v1849_v11, %v1843_v54  ;;  %v10010_v54 = vld [vmem:[#allocation26_spill] sm:$0xff]  ;;  %v10029_v11 = vld [vmem:[#allocation45_spill] sm:$0xff] }
 0x3ad   : > { %v1857_v0 = vadd.f32 %v1855_v55, %v1851_v52  ;;  %v10030_v52 = vld [vmem:[#allocation46_spill] sm:$0xff]  ;;  %v10031_v55 = vmov 0.0  }
 0x3af   : > { %v1858_v53 = vmax.f32 %v1857_v0, 0.0  ;;  %v10032_v0 = vld [vmem:[#allocation47_spill] sm:$0xff] }
 0x3b1   : > { %v1861_v22 = vpack.c.bf16 %v1858_v53, %v1858_v53  ;;  %v10009_v53 = vld [vmem:[#allocation25_spill] sm:$0xff] }
 0x3b3   : > { %v1871_v10 = vsel %vm1414_vm2, %v1861_v22, 0  ;;  %v10033_v22 = vld [vmem:[#allocation48_spill] sm:$0xff] }
 0x3b4   : > { %6852 = vmatpush3.bf16.msra.mxu0 %v1871_v10  ;;  %v10034_v10 = vld [vmem:[#allocation49_spill] sm:$0xff] }
 0x3b5   : > { %2010 = vmatprep.subr.bf16.mxu0 %v8219_v56  ;;  %v1923_v56 = vpop.permute.xlu0 %1922 }
 0x3b7   : > { %6854 = vmatmul.mubr.msk.bf16.vlgmr.msra.gmra.mxu0 %vm1410_vm3, %v7495_v49  ;;  %v10035_v49 = vld [vmem:[#allocation50_spill] sm:$0xff] }
 0x3b8   : > { %2011 = vmatpush1.bf16.msra.mxu0 %v8221_v57  ;;  %2042 = vmatprep.mubr.bf16.mxu0 %v10000_v59 }
 0x3b9   : > { %2012 = vmatprep.subr.bf16.mxu0 %v8223_v58 }
 0x3bc   : > { %2013 = vmatpush1.bf16.msra.mxu0 %v8233_v61  ;;  %v1928_v61 = vpop.permute.xlu1 %1927 }
 0x3bd   : > { %2014 = vmatprep.subr.bf16.mxu0 %v8237_v62 }
 0x3c0   : > { %2015 = vmatpush1.bf16.msra.mxu0 %v8240_v63 }
 0x3c1   : > { %2016 = vmatprep.subr.bf16.mxu0 %v8246_v1 }
 0x3c4   : > { %2017 = vmatpush1.bf16.msra.mxu0 %v8249_v2 }
 0x3c5   : > { %2018 = vmatprep.subr.bf16.mxu0 %v8253_v3  ;;  %v1935_v3 = vpop.permute.xlu0 %1934 }
 0x3c8   : > { %2019 = vmatpush1.bf16.msra.mxu0 %v8261_v4 }
 0x3c9   : > { %2020 = vmatprep.subr.bf16.mxu0 %v8264_v5 }
 0x3cc   : > { %2021 = vmatpush1.bf16.msra.mxu0 %v8269_v8 }
 0x3cd   : > { %2022 = vmatprep.subr.bf16.mxu0 %v8315_v34  ;;  %v1940_v34 = vpop.permute.xlu1 %1939 }
 0x3d0   : > { %2023 = vmatpush1.bf16.msra.mxu0 %v8319_v36 }
 0x3d1   : > { %2024 = vmatprep.subr.bf16.mxu0 %v8327_v38 }
 0x3d4   : > { %2025 = vmatpush1.bf16.msra.mxu0 %v8331_v40 }
 0x3d5   : > { %2092 = vmatprep.subr.bf16.mxu0 %v8339_v42 }
 0x477   : > { %v1907_v57 = vpop.f32.mrf.mxu0 }
 0x478   : > { %v8584_v58 = vadd.f32 %v1907_v57, %v8266_v6  ;;  %v1947_v6 = vld [vmem:[#allocation4 + $0x2] sm:$0x3]  ;;  %v10037_v57 = vld [vmem:[#allocation52_spill] sm:$0xff] }
 0x479   : > { %v6855_v62 = vpop.f32.mrf.mxu0 }
 0x47a   : > { %v1930_v63 = vmul.f32 %v1923_v56, %v8584_v58  ;;  %v10036_v56 = vld [vmem:[#allocation51_spill] sm:$0xff]  ;;  %v10039_v62 = vld [vmem:[#allocation54_spill] sm:$0xff] }
 0x47b   : > { %v1910_v1 = vpop.f32.mrf.mxu0 }
 0x47c   : > { %v8588_v2 = vadd.f32 %v1910_v1, %v8273_v12  ;;  %v1942_v8 = vadd.f32 %v1935_v3, %v1930_v63  ;;  %v1999_v12 = vpop.permute.xlu0 %1998 }
 0x47d   : > { %v6856_v4 = vpop.f32.mrf.mxu0 }
 0x47e   : > { %v1931_v5 = vmul.f32 %v1928_v61, %v8588_v2  ;;  %v1944_v38 = vmax.f32 %v1942_v8, 0.0  ;;  %v10038_v61 = vld [vmem:[#allocation53_spill] sm:$0xff] }
 0x480   : > { %v1943_v36 = vadd.f32 %v1940_v34, %v1931_v5 }
 0x482   : > { %v1945_v40 = vmax.f32 %v1943_v36, 0.0 }
 0x484   : > { %v1948_v42 = vpack.c.bf16 %v1945_v40, %v1944_v38 }
 0x486   : > { %6858 = vmatpush3.bf16.msra.mxu1 %v1948_v42 }
 0x487   : > { %2051 = vmatprep.subr.bf16.mxu1 %v8277_v20 }
 0x489   : > { %6860 = vmatmul.mubr.msk.bf16.vlgmr.msra.gmra.mxu1 %vm686_vm1, %v1947_v6  ;;  %v6430_v6 = vld [vmem:[%s9815_s7 + $0x14] sm:$0x3] }
 0x48a   : > { %2052 = vmatpush1.bf16.msra.mxu1 %v8279_v23  ;;  %2083 = vmatprep.mubr.bf16.mxu1 %v10000_v59 }
 0x48b   : > { %2053 = vmatprep.subr.bf16.mxu1 %v8282_v24  ;;  %v2005_v24 = vpop.permute.xlu1 %2004 }
 0x48e   : > { %2054 = vmatpush1.bf16.msra.mxu1 %v8286_v25 }
 0x48f   : > { %2055 = vmatprep.subr.bf16.mxu1 %v8290_v26 }
 0x492   : > { %2056 = vmatpush1.bf16.msra.mxu1 %v8293_v27 }
 0x493   : > { %2057 = vmatprep.subr.bf16.mxu1 %v8296_v28 }
 0x496   : > { %2058 = vmatpush1.bf16.msra.mxu1 %v8299_v29 }
 0x497   : > { %2059 = vmatprep.subr.bf16.mxu1 %v8302_v30 }
 0x49a   : > { %2060 = vmatpush1.bf16.msra.mxu1 %v8305_v31  ;;  %v10001_v31 = vld [vmem:[#allocation17_spill] sm:$0xff] }
 0x49b   : > { %2061 = vmatprep.subr.bf16.mxu1 %v8308_v32  ;;  %v10002_v32 = vld [vmem:[#allocation18_spill] sm:$0xff] }
 0x49e   : > { %2062 = vmatpush1.bf16.msra.mxu1 %v8311_v33  ;;  %v10003_v33 = vld [vmem:[#allocation19_spill] sm:$0xff] }
 0x49f   : > { %2063 = vmatprep.subr.bf16.mxu1 %v8317_v35  ;;  %v10004_v35 = vld [vmem:[#allocation20_spill] sm:$0xff] }
 0x4a2   : > { %2064 = vmatpush1.bf16.msra.mxu1 %v8321_v37  ;;  %v10005_v37 = vld [vmem:[#allocation21_spill] sm:$0xff] }
 0x4a3   : > { %2065 = vmatprep.subr.bf16.mxu1 %v8329_v39  ;;  %v10006_v39 = vld [vmem:[#allocation22_spill] sm:$0xff] }
 0x4a6   : > { %2066 = vmatpush1.bf16.msra.mxu1 %v8333_v41  ;;  %v10007_v41 = vld [vmem:[#allocation23_spill] sm:$0xff] }
 0x4a7   : > { %2133 = vmatprep.subr.bf16.mxu1 %v8341_v43  ;;  %v10008_v43 = vld [vmem:[#allocation24_spill] sm:$0xff] }
 0x549   : > { %v1986_v20 = vpop.f32.mrf.mxu1 }
 0x54a   : > { %v2001_v23 = vmul.f32 %v1999_v12, %v1986_v20  ;;  %v6433_v20 = vld [vmem:[%s9815_s7 + $0x18] sm:$0x3] }
 0x54b   : > { %v6861_v25 = vpop.f32.mrf.mxu1 }
 0x54c   : > { %v2007_v26 = vadd.f32 %v2005_v24, %v2001_v23 }
 0x54d   : > { %v1989_v27 = vpop.f32.mrf.mxu1 }
 0x54e   : > { %v2008_v28 = vmax.f32 %v2007_v26, 0.0 }
 0x54f   : > { %v6862_v29 = vpop.f32.mrf.mxu1 }
 0x550   : > { %v2009_v30 = vpack.c.bf16 %v2008_v28, %v2008_v28 }
 0x552   : > { %2043 = vmatmul.mubr.bf16.vlgmr.msra.gmra.mxu0 %v2009_v30  ;;  %2084 = vmatmul.mubr.bf16.vlgmr.msra.gmra.mxu1 %v2009_v30 }
 0x553   : > { %2093 = vmatpush1.bf16.msra.mxu0 %v10001_v31  ;;  %2134 = vmatpush1.bf16.msra.mxu1 %v10002_v32 }
 0x554   : > { %2094 = vmatprep.subr.bf16.mxu0 %v10003_v33  ;;  %2135 = vmatprep.subr.bf16.mxu1 %v10004_v35  ;;  %v6436_v35 = vld [vmem:[%s9815_s7 + $0x1c] sm:$0x3] }
 0x555   : > { %2124 = vmatprep.mubr.bf16.mxu0 %v10000_v59  ;;  %2165 = vmatprep.mubr.bf16.mxu1 %v10000_v59 }
 0x557   : > { %2095 = vmatpush1.bf16.msra.mxu0 %v10005_v37  ;;  %2136 = vmatpush1.bf16.msra.mxu1 %v10006_v39 }
 0x558   : > { %2096 = vmatprep.subr.bf16.mxu0 %v10007_v41  ;;  %2137 = vmatprep.subr.bf16.mxu1 %v10008_v43  ;;  %v6439_v41 = vld [vmem:[%s9815_s7 + $0x20] sm:$0x3] }
 0x55b   : > { %2097 = vmatpush1.bf16.msra.mxu0 %v10009_v53  ;;  %2138 = vmatpush1.bf16.msra.mxu1 %v10010_v54  ;;  %v6429_v54 = vld [vmem:[%s9815_s7 + $0x12] sm:$0x3] }
 0x55c   : > { %2098 = vmatprep.subr.bf16.mxu0 %v10011_v60  ;;  %2139 = vmatprep.subr.bf16.mxu1 %v10012_v9  ;;  %v6435_v9 = vld [vmem:[%s9815_s7 + $0x1a] sm:$0x3] }
 0x55f   : > { %2099 = vmatpush1.bf16.msra.mxu0 %v10013_v13  ;;  %2140 = vmatpush1.bf16.msra.mxu1 %v10014_v44 }
 0x560   : > { %2100 = vmatprep.subr.bf16.mxu0 %v10015_v18  ;;  %2141 = vmatprep.subr.bf16.mxu1 %v10016_v46 }
 0x563   : > { %2101 = vmatpush1.bf16.msra.mxu0 %v10017_v7  ;;  %2142 = vmatpush1.bf16.msra.mxu1 %v10018_v19 }
 0x564   : > { %2102 = vmatprep.subr.bf16.mxu0 %v10019_v45  ;;  %2143 = vmatprep.subr.bf16.mxu1 %v10020_v51  ;;  %v6441_v45 = vld [vmem:[%s9815_s7 + $0x22] sm:$0x3] }
 0x567   : > { %2103 = vmatpush1.bf16.msra.mxu0 %v10021_v47  ;;  %2144 = vmatpush1.bf16.msra.mxu1 %v10022_v17 }
 0x568   : > { %2104 = vmatprep.subr.bf16.mxu0 %v10023_v16  ;;  %2145 = vmatprep.subr.bf16.mxu1 %v10024_v15  ;;  %v6432_v16 = vld [vmem:[%s9815_s7 + $0x16] sm:$0x3] }
 0x56b   : > { %2105 = vmatpush1.bf16.msra.mxu0 %v10025_v14  ;;  %2146 = vmatpush1.bf16.msra.mxu1 %v10026_v50  ;;  %v6438_v14 = vld [vmem:[%s9815_s7 + $0x1e] sm:$0x3] }
 0x56c   : > { %2106 = vmatprep.subr.bf16.mxu0 %v10027_v21  ;;  %2147 = vmatprep.subr.bf16.mxu1 %v10028_v48 }
 0x56f   : > { %2107 = vmatpush1.bf16.msra.mxu0 %v10029_v11  ;;  %2148 = vmatpush1.bf16.msra.mxu1 %v10030_v52 }
 0x570   : > { %6863 = vmatprep.subr.bf16.mxu0 %v10031_v55  ;;  %6883 = vmatprep.subr.bf16.mxu1 %v10031_v55 }
 0x572   : > { %2125 = vmatmul.mubr.bf16.vlgmr.msra.gmra.mxu0 %v2009_v30  ;;  %2166 = vmatmul.mubr.bf16.vlgmr.msra.gmra.mxu1 %v2009_v30 }
 0x573   : > { %6864 = vmatpush3.bf16.msra.mxu0 %v10032_v0  ;;  %6879 = vmatprep.mubr.msk.bf16.mxu0 %vm7878_vm0, %v10031_v55 }
 0x574   : > { %6865 = vmatprep.subr.bf16.mxu0 %v10031_v55  ;;  %6885 = vmatprep.mubr.msk.bf16.mxu1 %vm7878_vm0, %v10031_v55 }
 0x577   : > { %6866 = vmatpush3.bf16.msra.mxu0 %v10033_v22 }
 0x578   : > { %6867 = vmatprep.subr.bf16.mxu0 %v10031_v55 }
 0x57b   : > { %6868 = vmatpush3.bf16.msra.mxu0 %v10034_v10 }
 0x57c   : > { %6869 = vmatprep.subr.bf16.mxu0 %v10031_v55 }
 0x57f   : > { %6870 = vmatpush3.bf16.msra.mxu0 %v10035_v49 }
 0x580   : > { %6871 = vmatprep.subr.bf16.mxu0 %v10031_v55 }
 0x583   : > { %6872 = vmatpush3.bf16.msra.mxu0 %v10036_v56 }
 0x584   : > { %6873 = vmatprep.subr.bf16.mxu0 %v10031_v55 }
 0x587   : > { %6874 = vmatpush3.bf16.msra.mxu0 %v10037_v57 }
 0x588   : > { %6875 = vmatprep.subr.bf16.mxu0 %v10031_v55 }
 0x58b   : > { %6876 = vmatpush3.bf16.msra.mxu0 %v10038_v61 }
 0x58c   : > { %6877 = vmatprep.subr.bf16.mxu0 %v10031_v55 }
 0x58f   : > { %6878 = vmatpush3.bf16.msra.mxu0 %v10039_v62 }
 0x590   : > { %6907 = vmatprep.subr.bf16.mxu0 %v10031_v55 }
 0x592   : > { %6880 = vmatmul.mubr.bf16.vlgmr.msra.gmra.mxu0 %v2009_v30 }
 0x593   : > { %6909 = vmatprep.mubr.msk.bf16.mxu0 %vm7878_vm0, %v10031_v55 }
 0x612   : > { %v2044_v63 = vpop.f32.mrf.mxu0  ;;  %v8666_v1 = vpop.f32.mrf.mxu1 }
 0x613   : > { %v2214_v39 = vpack.c.bf16 %v2044_v63, %v2044_v63  ;;  %v2216_v46 = vpack.c.bf16 %v8666_v1, %v8666_v1 }
 0x614   : > { %v2046_v3 = vpop.f32.mrf.mxu0  ;;  %v2087_v4 = vpop.f32.mrf.mxu1 }
 0x615   : > { %v2215_v5 = vpack.c.bf16 %v2046_v3, %v2046_v3  ;;  %v2217_v38 = vpack.c.bf16 %v2087_v4, %v2087_v4  ;;  %v2475_v43 = vsel %vm1414_vm2, %v2214_v39, 0  ;;  %v2521_v47 = vsel %vm1414_vm2, %v2216_v46, 0 }
 0x616   : > { %v2048_v8 = vpop.f32.mrf.mxu0  ;;  %v2089_v34 = vpop.f32.mrf.mxu1 }
 0x617   : > { %v2231_v36 = vsel %vm1414_vm2, %v2215_v5, 0  ;;  %v2281_v12 = vsel %vm1414_vm2, %v2217_v38, 0 }
 0x618   : > { %v2049_v40 = vpop.f32.mrf.mxu0  ;;  %v2090_v42 = vpop.f32.mrf.mxu1  ;;  %6884 = vmatpush3.bf16.msra.mxu1 %v2231_v36 }
 0x619   : > { %6889 = vmatprep.subr.bf16.mxu1 %v10031_v55 }
 0x61b   : > { %6886 = vmatmul.mubr.msk.bf16.vlgmr.msra.gmra.mxu1 %vm1410_vm3, %v6430_v6 }
 0x61c   : > { %6890 = vmatpush3.bf16.msra.mxu1 %v2281_v12  ;;  %6891 = vmatprep.mubr.msk.bf16.mxu1 %vm7878_vm0, %v10031_v55 }
 0x61d   : > { %6895 = vmatprep.subr.bf16.mxu1 %v10031_v55 }
 0x623   : > { %6892 = vmatmul.mubr.msk.bf16.vlgmr.msra.gmra.mxu1 %vm1410_vm3, %v6433_v20 }
 0x624   : > { %6897 = vmatprep.mubr.msk.bf16.mxu1 %vm7878_vm0, %v10031_v55 }
 0x632   : > { %v2126_v23 = vpop.f32.mrf.mxu0  ;;  %v2167_v24 = vpop.f32.mrf.mxu1 }
 0x633   : > { %v2218_v53 = vpack.c.bf16 %v2126_v23, %v2126_v23  ;;  %v2220_v17 = vpack.c.bf16 %v2167_v24, %v2167_v24 }
 0x634   : > { %v2128_v25 = vpop.f32.mrf.mxu0  ;;  %v2169_v26 = vpop.f32.mrf.mxu1 }
 0x635   : > { %v2219_v27 = vpack.c.bf16 %v2128_v25, %v2128_v25  ;;  %v2221_v31 = vpack.c.bf16 %v2169_v26, %v2169_v26  ;;  %v2567_v60 = vsel %vm1414_vm2, %v2218_v53, 0  ;;  %v2613_v15 = vsel %vm1414_vm2, %v2220_v17, 0  ;;  %v8760_v17 = vld [vmem:[#allocation2 + $0x16c] ss:$36 sps:$4 sm:$0xff]  }
 0x636   : > { %v2130_v28 = vpop.f32.mrf.mxu0  ;;  %v2171_v29 = vpop.f32.mrf.mxu1 }
 0x637   : > { %v2331_v30 = vsel %vm1414_vm2, %v2219_v27, 0  ;;  %v2381_v37 = vsel %vm1414_vm2, %v2221_v31, 0 }
 0x638   : > { %v2131_v32 = vpop.f32.mrf.mxu0  ;;  %v2172_v33 = vpop.f32.mrf.mxu1  ;;  %6896 = vmatpush3.bf16.msra.mxu1 %v2331_v30 }
 0x639   : > { %6901 = vmatprep.subr.bf16.mxu1 %v10031_v55 }
 0x63b   : > { %6898 = vmatmul.mubr.msk.bf16.vlgmr.msra.gmra.mxu1 %vm1410_vm3, %v6436_v35 }
 0x63c   : > { %6902 = vmatpush3.bf16.msra.mxu1 %v2381_v37  ;;  %6903 = vmatprep.mubr.msk.bf16.mxu1 %vm7878_vm0, %v10031_v55 }
 0x63d   : > { %6913 = vmatprep.subr.bf16.mxu1 %v10031_v55 }
 0x643   : > { %6904 = vmatmul.mubr.msk.bf16.vlgmr.msra.gmra.mxu1 %vm1410_vm3, %v6439_v41 }
 0x644   : > { %6914 = vmatpush3.bf16.msra.mxu1 %v2475_v43  ;;  %6915 = vmatprep.mubr.msk.bf16.mxu1 %vm7878_vm0, %v10031_v55 }
 0x645   : > { %6925 = vmatprep.subr.bf16.mxu1 %v10031_v55 }
 0x64b   : > { %6916 = vmatmul.mubr.msk.bf16.vlgmr.msra.gmra.mxu1 %vm1410_vm3, %v6429_v54  ;;  %v2666_v54 = vpop.permute.xlu0 %2665 }
 0x64c   : > { %6926 = vmatpush3.bf16.msra.mxu1 %v2567_v60  ;;  %6927 = vmatprep.mubr.msk.bf16.mxu1 %vm7878_vm0, %v10031_v55 }
 0x64d   : > { %6937 = vmatprep.subr.bf16.mxu1 %v10031_v55 }
 0x652   : > { %v2208_v13 = vpop.f32.mrf.mxu0 }
 0x653   : > { %v2222_v44 = vpack.c.bf16 %v2208_v13, %v2208_v13  ;;  %6928 = vmatmul.mubr.msk.bf16.vlgmr.msra.gmra.mxu1 %vm1410_vm3, %v6435_v9  ;;  %v2672_v9 = vpop.permute.xlu1 %2671 }
 0x654   : > { %v6881_v18 = vpop.f32.mrf.mxu0  ;;  %6939 = vmatprep.mubr.msk.bf16.mxu1 %vm7878_vm0, %v10031_v55 }
 0x655   : > { %v2429_v7 = vsel %vm1414_vm2, %v2222_v44, 0 }
 0x656   : > { %v2211_v19 = vpop.f32.mrf.mxu0  ;;  %6908 = vmatpush3.bf16.msra.mxu0 %v2429_v7  ;;  %v7496_v7 = vld [vmem:[%s9818_s10 + $0x8] sm:$0xff]  }
 0x657   : > { %6919 = vmatprep.subr.bf16.mxu0 %v10031_v55  ;;  %v8746_v19 = vld [vmem:[#allocation2 + $0x1fc] ss:$36 sps:$4 sm:$0xff]  }
 0x658   : > { %v6882_v51 = vpop.f32.mrf.mxu0 }
 0x659   : > { %6910 = vmatmul.mubr.msk.bf16.vlgmr.msra.gmra.mxu0 %vm1410_vm3, %v6441_v45  ;;  %v8750_v45 = vld [vmem:[#allocation2 + $0x1f8] ss:$36 sps:$4 sm:$0xff]  }
 0x65a   : > { %6920 = vmatpush3.bf16.msra.mxu0 %v2521_v47  ;;  %6921 = vmatprep.mubr.msk.bf16.mxu0 %vm7878_vm0, %v10031_v55  ;;  %v8754_v51 = vld [vmem:[#allocation2 + $0x1b4] ss:$36 sps:$4 sm:$0xff]  }
 0x65b   : > { %6931 = vmatprep.subr.bf16.mxu0 %v10031_v55  ;;  %v8757_v47 = vld [vmem:[#allocation2 + $0x1b0] ss:$36 sps:$4 sm:$0xff]  }
 0x661   : > { %6922 = vmatmul.mubr.msk.bf16.vlgmr.msra.gmra.mxu0 %vm1410_vm3, %v6432_v16  ;;  %v8763_v16 = vld [vmem:[#allocation2 + $0x168] ss:$36 sps:$4 sm:$0xff]  }
 0x662   : > { %6932 = vmatpush3.bf16.msra.mxu0 %v2613_v15  ;;  %6933 = vmatprep.mubr.msk.bf16.mxu0 %vm7878_vm0, %v10031_v55  ;;  %v8766_v15 = vld [vmem:[#allocation2 + $0x124] ss:$36 sps:$4 sm:$0xff]  }
 0x663   : > { %6943 = vmatprep.subr.bf16.mxu0 %v10031_v55 }
 0x669   : > { %6934 = vmatmul.mubr.msk.bf16.vlgmr.msra.gmra.mxu0 %vm1410_vm3, %v6438_v14  ;;  %v8769_v14 = vld [vmem:[#allocation2 + $0x120] ss:$36 sps:$4 sm:$0xff]  }
 0x66a   : > { %6945 = vmatprep.mubr.msk.bf16.mxu0 %vm7878_vm0, %v10031_v55 }
 0x6db   : > { %v2267_v50 = vpop.f32.mrf.mxu1 }
 0x6dd   : > { %v6887_v21 = vpop.f32.mrf.mxu1 }
 0x6de   : > { %v8775_v21 = vld [vmem:[#allocation2 + $0xd8] ss:$36 sps:$4 sm:$0xff]  }
 0x6df   : > { %v2270_v48 = vpop.f32.mrf.mxu1 }
 0x6e0   : > { %v8778_v48 = vld [vmem:[#allocation2 + $0x94] ss:$36 sps:$4 sm:$0xff]  }
 0x6e1   : > { %v6888_v11 = vpop.f32.mrf.mxu1 }
 0x6e2   : > { %v8781_v11 = vld [vmem:[#allocation2 + $0x90] ss:$36 sps:$4 sm:$0xff]  }
 0x6e3   : > { %v2317_v52 = vpop.f32.mrf.mxu1 }
 0x6e5   : > { %v6893_v0 = vpop.f32.mrf.mxu1 }
 0x6e6   : > { %v8787_v0 = vld [vmem:[#allocation2 + $0x48] ss:$36 sps:$4 sm:$0xff]  }
 0x6e7   : > { %v2320_v22 = vpop.f32.mrf.mxu1  ;;  %10040 = vst [vmem:[#allocation17_spill] sm:$0xff] %v8787_v0 }
 0x6e8   : > { %v8790_v22 = vld [vmem:[#allocation2 + $0x4] ss:$36 sps:$4 sm:$0xff]  }
 0x6e9   : > { %v6894_v10 = vpop.f32.mrf.mxu1  ;;  %10041 = vst [vmem:[#allocation18_spill] sm:$0xff] %v8790_v22 }
 0x6ea   : > { %v8793_v10 = vld [vmem:[#allocation2] ss:$36 sps:$4 sm:$0xff]  }
 0x6eb   : > { %10042 = vst [vmem:[#allocation19_spill] sm:$0xff] %v8793_v10 }
 0x6fb   : > { %v2367_v49 = vpop.f32.mrf.mxu1 }
 0x6fd   : > { %v6899_v56 = vpop.f32.mrf.mxu1 }
 0x6fe   : > { %v2741_v56 = vpop.permute.xlu0 %2740 }
 0x6ff   : > { %v2370_v57 = vpop.f32.mrf.mxu1 }
 0x701   : > { %v6900_v61 = vpop.f32.mrf.mxu1 }
 0x703   : > { %v2417_v62 = vpop.f32.mrf.mxu1 }
 0x705   : > { %v6905_v63 = vpop.f32.mrf.mxu1 }
 0x707   : > { %v2420_v1 = vpop.f32.mrf.mxu1 }
 0x709   : > { %v6906_v3 = vpop.f32.mrf.mxu1 }
 0x70b   : > { %v2511_v4 = vpop.f32.mrf.mxu1 }
 0x70c   : > { %v2512_v25 = vadd.f32 %v2511_v4, %v2267_v50  ;;  %v8772_v50 = vld [vmem:[#allocation2 + $0xdc] ss:$36 sps:$4 sm:$0xff]  }
 0x70d   : > { %v6917_v5 = vpop.f32.mrf.mxu1 }
 0x70e   : > { %v2753_v5 = vpop.permute.xlu0 %2752 }
 0x70f   : > { %v2514_v8 = vpop.f32.mrf.mxu1 }
 0x711   : > { %v6918_v34 = vpop.f32.mrf.mxu1 }
 0x713   : > { %v2603_v36 = vpop.f32.mrf.mxu1 }
 0x714   : > { %v2604_v32 = vadd.f32 %v2603_v36, %v2367_v49  ;;  %v8796_v49 = vld [vmem:[#allocation2 + $0x20c] ss:$36 sps:$4 sm:$0xff]  }
 0x715   : > { %v6929_v38 = vpop.f32.mrf.mxu1  ;;  %10043 = vst [vmem:[#allocation20_spill] sm:$0xff] %v8796_v49 }
 0x717   : > { %v2606_v40 = vpop.f32.mrf.mxu1 }
 0x719   : > { %v2465_v42 = vpop.f32.mrf.mxu0  ;;  %v6930_v6 = vpop.f32.mrf.mxu1 }
 0x71b   : > { %v6911_v12 = vpop.f32.mrf.mxu0 }
 0x71d   : > { %v2468_v20 = vpop.f32.mrf.mxu0 }
 0x71e   : > { %v2765_v20 = vld [vmem:[#allocation4 + $0x4] sm:$0x3] }
 0x71f   : > { %v6912_v23 = vpop.f32.mrf.mxu0 }
 0x720   : > { %v8807_v23 = vld [vmem:[#allocation2 + $0x204] ss:$36 sps:$4 sm:$0xff]  }
 0x721   : > { %v2557_v24 = vpop.f32.mrf.mxu0 }
 0x722   : > { %v2558_v26 = vadd.f32 %v2557_v24, %v2317_v52  ;;  %v8784_v52 = vld [vmem:[#allocation2 + $0x4c] ss:$36 sps:$4 sm:$0xff]   ;;  %v8811_v24 = vld [vmem:[#allocation2 + $0x200] ss:$36 sps:$4 sm:$0xff]  }
 0x723   : > { %v6923_v27 = vpop.f32.mrf.mxu0 }
 0x724   : > { %v2655_v28 = vadd.f32 %v2558_v26, %v2512_v25  ;;  %v8815_v25 = vld [vmem:[#allocation2 + $0x1bc] ss:$36 sps:$4 sm:$0xff]   ;;  %v8821_v27 = vld [vmem:[#allocation2 + $0x174] ss:$36 sps:$4 sm:$0xff]  }
 0x725   : > { %v2560_v29 = vpop.f32.mrf.mxu0  ;;  %v8818_v26 = vld [vmem:[#allocation2 + $0x1b8] ss:$36 sps:$4 sm:$0xff]  }
 0x726   : > { %v8827_v29 = vld [vmem:[#allocation2 + $0x12c] ss:$36 sps:$4 sm:$0xff]  }
 0x727   : > { %v6924_v30 = vpop.f32.mrf.mxu0 }
 0x728   : > { %v8830_v30 = vld [vmem:[#allocation2 + $0x128] ss:$36 sps:$4 sm:$0xff]  }
 0x729   : > { %v2649_v31 = vpop.f32.mrf.mxu0 }
 0x72a   : > { %v2650_v33 = vadd.f32 %v2649_v31, %v2417_v62  ;;  %v2746_v62 = vpop.permute.xlu1 %2745  ;;  %v8833_v31 = vld [vmem:[#allocation2 + $0xe4] ss:$36 sps:$4 sm:$0xff]  }
 0x72b   : > { %v6935_v35 = vpop.f32.mrf.mxu0 }
 0x72c   : > { %v2656_v37 = vadd.f32 %v2650_v33, %v2604_v32  ;;  %v8836_v32 = vld [vmem:[#allocation2 + $0xe0] ss:$36 sps:$4 sm:$0xff]   ;;  %v8842_v35 = vld [vmem:[#allocation2 + $0x98] ss:$36 sps:$4 sm:$0xff]  }
 0x72d   : > { %v2652_v39 = vpop.f32.mrf.mxu0  ;;  %v8839_v33 = vld [vmem:[#allocation2 + $0x9c] ss:$36 sps:$4 sm:$0xff]  }
 0x72e   : > { %v2657_v41 = vadd.f32 %v2656_v37, %v2655_v28  ;;  %v2758_v38 = vpop.permute.xlu1 %2757  ;;  %v8824_v28 = vld [vmem:[#allocation2 + $0x170] ss:$36 sps:$4 sm:$0xff]  }
 0x72f   : > { %v6936_v43 = vpop.f32.mrf.mxu0  ;;  %v8845_v37 = vld [vmem:[#allocation2 + $0x54] ss:$36 sps:$4 sm:$0xff]  }
 0x730   : > { %v2658_v53 = vadd.f32 %v2657_v41, %v2465_v42  ;;  %v8848_v39 = vld [vmem:[#allocation2 + $0x50] ss:$36 sps:$4 sm:$0xff]   ;;  %v8854_v43 = vld [vmem:[#allocation2 + $0x8] ss:$36 sps:$4 sm:$0xff]  }
 0x731   : > { %v8851_v41 = vld [vmem:[#allocation2 + $0xc] ss:$36 sps:$4 sm:$0xff]  }
 0x732   : > { %v2668_v60 = vmul.f32 %v2666_v54, %v2658_v53  ;;  %v8857_v53 = vld [vmem:[#allocation2 + $0x214] ss:$36 sps:$4 sm:$0xff]   ;;  %v2817_v54 = vpop.permute.xlu0 %2816 }
 0x734   : > { %v2674_v13 = vadd.f32 %v2672_v9, %v2668_v60 }
 0x736   : > { %v2675_v44 = vmax.f32 %v2674_v13, 0.0  ;;  %v2823_v13 = vpop.permute.xlu1 %2822 }
 0x738   : > { %v2679_v18 = vpack.c.bf16 %v2675_v44, %v2675_v44 }
 0x73a   : > { %v2689_v46 = vsel %vm1414_vm2, %v2679_v18, 0 }
 0x73b   : > { %6938 = vmatpush3.bf16.msra.mxu1 %v2689_v46 }
 0x73c   : > { %2828 = vmatprep.subr.bf16.mxu1 %v8746_v19 }
 0x73e   : > { %6940 = vmatmul.mubr.msk.bf16.vlgmr.msra.gmra.mxu1 %vm1410_vm3, %v7496_v7 }
 0x73f   : > { %2829 = vmatpush1.bf16.msra.mxu1 %v8750_v45  ;;  %2860 = vmatprep.mubr.bf16.mxu1 %v10000_v59 }
 0x740   : > { %2830 = vmatprep.subr.bf16.mxu1 %v8754_v51 }
 0x743   : > { %2831 = vmatpush1.bf16.msra.mxu1 %v8757_v47 }
 0x744   : > { %2832 = vmatprep.subr.bf16.mxu1 %v8760_v17 }
 0x747   : > { %2833 = vmatpush1.bf16.msra.mxu1 %v8763_v16 }
 0x748   : > { %2834 = vmatprep.subr.bf16.mxu1 %v8766_v15 }
 0x74b   : > { %2835 = vmatpush1.bf16.msra.mxu1 %v8769_v14 }
 0x74c   : > { %2836 = vmatprep.subr.bf16.mxu1 %v8772_v50 }
 0x74f   : > { %2837 = vmatpush1.bf16.msra.mxu1 %v8775_v21 }
 0x750   : > { %2838 = vmatprep.subr.bf16.mxu1 %v8778_v48 }
 0x753   : > { %2839 = vmatpush1.bf16.msra.mxu1 %v8781_v11 }
 0x754   : > { %2840 = vmatprep.subr.bf16.mxu1 %v8784_v52 }
 0x757   : > { %2841 = vmatpush1.bf16.msra.mxu1 %v8787_v0 }
 0x758   : > { %2842 = vmatprep.subr.bf16.mxu1 %v8790_v22 }
 0x75b   : > { %2843 = vmatpush1.bf16.msra.mxu1 %v8793_v10 }
 0x75c   : > { %2910 = vmatprep.subr.bf16.mxu1 %v8796_v49 }
 0x7fe   : > { %v2725_v57 = vpop.f32.mrf.mxu1 }
 0x7ff   : > { %v8800_v61 = vadd.f32 %v2725_v57, %v8584_v58 }
 0x800   : > { %v6941_v63 = vpop.f32.mrf.mxu1 }
 0x801   : > { %10044 = vst [vmem:[#allocation21_spill] sm:$0xff] %v8800_v61  ;;  %v2748_v1 = vmul.f32 %v2741_v56, %v8800_v61  ;;  %v8867_v63 = vld [vmem:[#allocation2 + $0x210] ss:$36 sps:$4 sm:$0xff]   ;;  %v8938_v61 = vld [vmem:[#allocation2 + $0x58] ss:$36 sps:$4 sm:$0xff]  }
 0x802   : > { %v2728_v3 = vpop.f32.mrf.mxu1  ;;  %10058 = vst [vmem:[#allocation35_spill] sm:$0xff] %v8938_v61 }
 0x803   : > { %v8804_v4 = vadd.f32 %v2728_v3, %v8588_v2  ;;  %v2760_v34 = vadd.f32 %v2753_v5, %v2748_v1  ;;  %v8870_v1 = vld [vmem:[#allocation2 + $0x1c4] ss:$36 sps:$4 sm:$0xff]   ;;  %v8873_v3 = vld [vmem:[#allocation2 + $0x1cc] ss:$36 sps:$4 sm:$0xff]  }
 0x804   : > { %v6942_v8 = vpop.f32.mrf.mxu1  ;;  %10047 = vst [vmem:[#allocation24_spill] sm:$0xff] %v8870_v1  ;;  %v8878_v5 = vld [vmem:[#allocation2 + $0x1c0] ss:$36 sps:$4 sm:$0xff]  }
 0x805   : > { %10045 = vst [vmem:[#allocation22_spill] sm:$0xff] %v8804_v4  ;;  %v2749_v36 = vmul.f32 %v2746_v62, %v8804_v4  ;;  %v2762_v42 = vmax.f32 %v2760_v34, 0.0  ;;  %v8864_v62 = vld [vmem:[#allocation2 + $0x208] ss:$36 sps:$4 sm:$0xff]   ;;  %10048 = vst [vmem:[#allocation25_spill] sm:$0xff] %v8878_v5 }
 0x806   : > { %10046 = vst [vmem:[#allocation23_spill] sm:$0xff] %v8864_v62  ;;  %v8881_v8 = vld [vmem:[#allocation2 + $0x1c8] ss:$36 sps:$4 sm:$0xff]   ;;  %v8884_v34 = vld [vmem:[#allocation2 + $0x17c] ss:$36 sps:$4 sm:$0xff]  }
 0x807   : > { %v2761_v40 = vadd.f32 %v2758_v38, %v2749_v36  ;;  %10049 = vst [vmem:[#allocation26_spill] sm:$0xff] %v8884_v34  ;;  %v8887_v36 = vld [vmem:[#allocation2 + $0x184] ss:$36 sps:$4 sm:$0xff]   ;;  %v8890_v38 = vld [vmem:[#allocation2 + $0x178] ss:$36 sps:$4 sm:$0xff]  }
 0x808   : > { %10050 = vst [vmem:[#allocation27_spill] sm:$0xff] %v8890_v38  ;;  %v8935_v4 = vld [vmem:[#allocation2 + $0x64] ss:$36 sps:$4 sm:$0xff]  }
 0x809   : > { %v2763_v6 = vmax.f32 %v2761_v40, 0.0  ;;  %v8893_v40 = vld [vmem:[#allocation2 + $0x180] ss:$36 sps:$4 sm:$0xff]  }
 0x80b   : > { %v2766_v12 = vpack.c.bf16 %v2763_v6, %v2762_v42  ;;  %v8896_v42 = vld [vmem:[#allocation2 + $0x134] ss:$36 sps:$4 sm:$0xff]   ;;  %v8899_v6 = vld [vmem:[#allocation2 + $0x13c] ss:$36 sps:$4 sm:$0xff]  }
 0x80c   : > { %10051 = vst [vmem:[#allocation28_spill] sm:$0xff] %v8896_v42 }
 0x80d   : > { %6944 = vmatpush3.bf16.msra.mxu0 %v2766_v12  ;;  %v8902_v12 = vld [vmem:[#allocation2 + $0x130] ss:$36 sps:$4 sm:$0xff]  }
 0x80e   : > { %2869 = vmatprep.subr.bf16.mxu0 %v8807_v23  ;;  %10052 = vst [vmem:[#allocation29_spill] sm:$0xff] %v8902_v12 }
 0x810   : > { %6946 = vmatmul.mubr.msk.bf16.vlgmr.msra.gmra.mxu0 %vm686_vm1, %v2765_v20  ;;  %v8905_v20 = vld [vmem:[#allocation2 + $0x138] ss:$36 sps:$4 sm:$0xff]  }
 0x811   : > { %2870 = vmatpush1.bf16.msra.mxu0 %v8811_v24  ;;  %2901 = vmatprep.mubr.bf16.mxu0 %v10000_v59 }
 0x812   : > { %2871 = vmatprep.subr.bf16.mxu0 %v8815_v25 }
 0x815   : > { %2872 = vmatpush1.bf16.msra.mxu0 %v8818_v26 }
 0x816   : > { %2873 = vmatprep.subr.bf16.mxu0 %v8821_v27 }
 0x819   : > { %2874 = vmatpush1.bf16.msra.mxu0 %v8824_v28 }
 0x81a   : > { %2875 = vmatprep.subr.bf16.mxu0 %v8827_v29 }
 0x81d   : > { %2876 = vmatpush1.bf16.msra.mxu0 %v8830_v30 }
 0x81e   : > { %2877 = vmatprep.subr.bf16.mxu0 %v8833_v31 }
 0x821   : > { %2878 = vmatpush1.bf16.msra.mxu0 %v8836_v32 }
 0x822   : > { %2879 = vmatprep.subr.bf16.mxu0 %v8839_v33 }
 0x825   : > { %2880 = vmatpush1.bf16.msra.mxu0 %v8842_v35 }
 0x826   : > { %2881 = vmatprep.subr.bf16.mxu0 %v8845_v37 }
 0x829   : > { %2882 = vmatpush1.bf16.msra.mxu0 %v8848_v39 }
 0x82a   : > { %2883 = vmatprep.subr.bf16.mxu0 %v8851_v41 }
 0x82d   : > { %2884 = vmatpush1.bf16.msra.mxu0 %v8854_v43 }
 0x82e   : > { %2951 = vmatprep.subr.bf16.mxu0 %v8857_v53 }
 0x8d0   : > { %v2804_v60 = vpop.f32.mrf.mxu0 }
 0x8d1   : > { %v2819_v9 = vmul.f32 %v2817_v54, %v2804_v60  ;;  %v8908_v54 = vld [vmem:[#allocation2 + $0xec] ss:$36 sps:$4 sm:$0xff]   ;;  %v8911_v60 = vld [vmem:[#allocation2 + $0xf4] ss:$36 sps:$4 sm:$0xff]  }
 0x8d2   : > { %v6947_v44 = vpop.f32.mrf.mxu0  ;;  %10053 = vst [vmem:[#allocation30_spill] sm:$0xff] %v8908_v54 }
 0x8d3   : > { %v2825_v18 = vadd.f32 %v2823_v13, %v2819_v9  ;;  %v8914_v9 = vld [vmem:[#allocation2 + $0xe8] ss:$36 sps:$4 sm:$0xff]   ;;  %v8917_v13 = vld [vmem:[#allocation2 + $0xf0] ss:$36 sps:$4 sm:$0xff]  }
 0x8d4   : > { %v2807_v46 = vpop.f32.mrf.mxu0  ;;  %10054 = vst [vmem:[#allocation31_spill] sm:$0xff] %v8914_v9  ;;  %v8920_v44 = vld [vmem:[#allocation2 + $0xa4] ss:$36 sps:$4 sm:$0xff]  }
 0x8d5   : > { %v2826_v7 = vmax.f32 %v2825_v18, 0.0  ;;  %10055 = vst [vmem:[#allocation32_spill] sm:$0xff] %v8920_v44  ;;  %v8923_v18 = vld [vmem:[#allocation2 + $0xac] ss:$36 sps:$4 sm:$0xff]   ;;  %v8926_v46 = vld [vmem:[#allocation2 + $0xa0] ss:$36 sps:$4 sm:$0xff]  }
 0x8d6   : > { %v6948_v56 = vpop.f32.mrf.mxu0  ;;  %10056 = vst [vmem:[#allocation33_spill] sm:$0xff] %v8926_v46 }
 0x8d7   : > { %v8860_v57 = vpack.c.bf16 %v2826_v7, %v2826_v7  ;;  %v8929_v7 = vld [vmem:[#allocation2 + $0xa8] ss:$36 sps:$4 sm:$0xff]   ;;  %v8932_v56 = vld [vmem:[#allocation2 + $0x5c] ss:$36 sps:$4 sm:$0xff]  }
 0x8d8   : > { %10057 = vst [vmem:[#allocation34_spill] sm:$0xff] %v8932_v56 }
 0x8d9   : > { %2861 = vmatmul.mubr.bf16.vlgmr.msra.gmra.mxu1 %v8860_v57  ;;  %2902 = vmatmul.mubr.bf16.vlgmr.msra.gmra.mxu0 %v8860_v57 }
 0x8da   : > { %2911 = vmatpush1.bf16.msra.mxu1 %v8864_v62  ;;  %2952 = vmatpush1.bf16.msra.mxu0 %v8867_v63 }
 0x8db   : > { %2912 = vmatprep.subr.bf16.mxu1 %v8870_v1  ;;  %2953 = vmatprep.subr.bf16.mxu0 %v8873_v3 }
 0x8dc   : > { %2942 = vmatprep.mubr.bf16.mxu1 %v10000_v59  ;;  %2983 = vmatprep.mubr.bf16.mxu0 %v10000_v59 }
 0x8de   : > { %2913 = vmatpush1.bf16.msra.mxu1 %v8878_v5  ;;  %2954 = vmatpush1.bf16.msra.mxu0 %v8881_v8 }
 0x8df   : > { %2914 = vmatprep.subr.bf16.mxu1 %v8884_v34  ;;  %2955 = vmatprep.subr.bf16.mxu0 %v8887_v36 }
 0x8e2   : > { %2915 = vmatpush1.bf16.msra.mxu1 %v8890_v38  ;;  %2956 = vmatpush1.bf16.msra.mxu0 %v8893_v40 }
 0x8e3   : > { %2916 = vmatprep.subr.bf16.mxu1 %v8896_v42  ;;  %2957 = vmatprep.subr.bf16.mxu0 %v8899_v6 }
 0x8e6   : > { %2917 = vmatpush1.bf16.msra.mxu1 %v8902_v12  ;;  %2958 = vmatpush1.bf16.msra.mxu0 %v8905_v20  ;;  %v8980_v12 = vld [vmem:[#allocation2 + $0xf8] ss:$36 sps:$4 sm:$0xff]  }
 0x8e7   : > { %2918 = vmatprep.subr.bf16.mxu1 %v8908_v54  ;;  %2959 = vmatprep.subr.bf16.mxu0 %v8911_v60  ;;  %v8953_v54 = vld [vmem:[#allocation2 + $0x18] ss:$36 sps:$4 sm:$0xff]   ;;  %10065 = vst [vmem:[#allocation42_spill] sm:$0xff] %v8980_v12 }
 0x8ea   : > { %2919 = vmatpush1.bf16.msra.mxu1 %v8914_v9  ;;  %2960 = vmatpush1.bf16.msra.mxu0 %v8917_v13  ;;  %v8947_v9 = vld [vmem:[#allocation2 + $0x1c] ss:$36 sps:$4 sm:$0xff]  }
 0x8eb   : > { %2920 = vmatprep.subr.bf16.mxu1 %v8920_v44  ;;  %2961 = vmatprep.subr.bf16.mxu0 %v8923_v18  ;;  %v8941_v44 = vld [vmem:[#allocation2 + $0x60] ss:$36 sps:$4 sm:$0xff]  }
 0x8ee   : > { %2921 = vmatpush1.bf16.msra.mxu1 %v8926_v46  ;;  %2962 = vmatpush1.bf16.msra.mxu0 %v8929_v7  ;;  %v8944_v46 = vld [vmem:[#allocation2 + $0x14] ss:$36 sps:$4 sm:$0xff]  }
 0x8ef   : > { %2922 = vmatprep.subr.bf16.mxu1 %v8932_v56  ;;  %2963 = vmatprep.subr.bf16.mxu0 %v8935_v4  ;;  %10059 = vst [vmem:[#allocation36_spill] sm:$0xff] %v8944_v46  ;;  %v8950_v56 = vld [vmem:[#allocation2 + $0x10] ss:$36 sps:$4 sm:$0xff]  }
 0x8f0   : > { %10060 = vst [vmem:[#allocation37_spill] sm:$0xff] %v8950_v56 }
 0x8f2   : > { %2923 = vmatpush1.bf16.msra.mxu1 %v8938_v61  ;;  %2964 = vmatpush1.bf16.msra.mxu0 %v8941_v44  ;;  %v8972_v61 = vld [vmem:[#allocation2 + $0x188] ss:$36 sps:$4 sm:$0xff]  }
 0x8f3   : > { %2924 = vmatprep.subr.bf16.mxu1 %v8944_v46  ;;  %2965 = vmatprep.subr.bf16.mxu0 %v8947_v9  ;;  %v8960_v46 = vld [vmem:[#allocation2 + $0x218] ss:$36 sps:$4 sm:$0xff]   ;;  %10063 = vst [vmem:[#allocation40_spill] sm:$0xff] %v8972_v61 }
 0x8f4   : > { %10061 = vst [vmem:[#allocation38_spill] sm:$0xff] %v8960_v46 }
 0x8f6   : > { %2925 = vmatpush1.bf16.msra.mxu1 %v8950_v56  ;;  %2966 = vmatpush1.bf16.msra.mxu0 %v8953_v54  ;;  %v8968_v56 = vld [vmem:[#allocation2 + $0x1d0] ss:$36 sps:$4 sm:$0xff]  }
 0x8f7   : > { %6949 = vmatprep.subr.bf16.mxu1 %v10031_v55  ;;  %6969 = vmatprep.subr.bf16.mxu0 %v10031_v55  ;;  %10062 = vst [vmem:[#allocation39_spill] sm:$0xff] %v8968_v56 }
 0x8f9   : > { %2943 = vmatmul.mubr.bf16.vlgmr.msra.gmra.mxu1 %v8860_v57  ;;  %2984 = vmatmul.mubr.bf16.vlgmr.msra.gmra.mxu0 %v8860_v57 }
 0x8fa   : > { %6950 = vmatpush3.bf16.msra.mxu1 %v8960_v46  ;;  %6965 = vmatprep.mubr.msk.bf16.mxu1 %vm7878_vm0, %v10031_v55  ;;  %v8976_v46 = vld [vmem:[#allocation2 + $0x140] ss:$36 sps:$4 sm:$0xff]  }
 0x8fb   : > { %6951 = vmatprep.subr.bf16.mxu1 %v10031_v55  ;;  %6971 = vmatprep.mubr.msk.bf16.mxu0 %vm7878_vm0, %v10031_v55  ;;  %10064 = vst [vmem:[#allocation41_spill] sm:$0xff] %v8976_v46 }
 0x8fe   : > { %6952 = vmatpush3.bf16.msra.mxu1 %v8968_v56  ;;  %v8984_v56 = vld [vmem:[#allocation2 + $0xb0] ss:$36 sps:$4 sm:$0xff]  }
 0x8ff   : > { %6953 = vmatprep.subr.bf16.mxu1 %v10031_v55  ;;  %10066 = vst [vmem:[#allocation43_spill] sm:$0xff] %v8984_v56 }
 0x902   : > { %6954 = vmatpush3.bf16.msra.mxu1 %v8972_v61  ;;  %v8988_v61 = vld [vmem:[#allocation2 + $0x68] ss:$36 sps:$4 sm:$0xff]  }
 0x903   : > { %6955 = vmatprep.subr.bf16.mxu1 %v10031_v55  ;;  %10067 = vst [vmem:[#allocation44_spill] sm:$0xff] %v8988_v61 }
 0x906   : > { %6956 = vmatpush3.bf16.msra.mxu1 %v8976_v46  ;;  %v8992_v46 = vld [vmem:[#allocation2 + $0x20] ss:$36 sps:$4 sm:$0xff]  }
 0x907   : > { %6957 = vmatprep.subr.bf16.mxu1 %v10031_v55  ;;  %10068 = vst [vmem:[#allocation45_spill] sm:$0xff] %v8992_v46 }
 0x90a   : > { %6958 = vmatpush3.bf16.msra.mxu1 %v8980_v12 }
 0x90b   : > { %6959 = vmatprep.subr.bf16.mxu1 %v10031_v55 }
 0x90e   : > { %6960 = vmatpush3.bf16.msra.mxu1 %v8984_v56 }
 0x90f   : > { %6961 = vmatprep.subr.bf16.mxu1 %v10031_v55 }
 0x912   : > { %6962 = vmatpush3.bf16.msra.mxu1 %v8988_v61 }
 0x913   : > { %6963 = vmatprep.subr.bf16.mxu1 %v10031_v55 }
 0x916   : > { %6964 = vmatpush3.bf16.msra.mxu1 %v8992_v46 }
 0x917   : > { %6993 = vmatprep.subr.bf16.mxu1 %v10031_v55 }
 0x919   : > { %6966 = vmatmul.mubr.bf16.vlgmr.msra.gmra.mxu1 %v8860_v57  ;;  %v6460_v57 = vld [vmem:[%s9815_s7 + $0x26] sm:$0x3] }
 0x91a   : > { %6995 = vmatprep.mubr.msk.bf16.mxu1 %vm7878_vm0, %v10031_v55 }
 0x999   : > { %v2862_v56 = vpop.f32.mrf.mxu1  ;;  %v8999_v12 = vpop.f32.mrf.mxu0 }
 0x99b   : > { %v2864_v42 = vpop.f32.mrf.mxu1  ;;  %v2905_v38 = vpop.f32.mrf.mxu0 }
 0x99c   : > { %v3033_v34 = vpack.c.bf16 %v2864_v42, %v2864_v42  ;;  %v3035_v62 = vpack.c.bf16 %v2905_v38, %v2905_v38 }
 0x99d   : > { %v2866_v61 = vpop.f32.mrf.mxu1  ;;  %v2907_v5 = vpop.f32.mrf.mxu0 }
 0x99e   : > { %v3049_v1 = vsel %vm1414_vm2, %v3033_v34, 0  ;;  %v3099_v10 = vsel %vm1414_vm2, %v3035_v62, 0 }
 0x99f   : > { %v2867_v49 = vpop.f32.mrf.mxu1  ;;  %v2908_v46 = vpop.f32.mrf.mxu0  ;;  %6970 = vmatpush3.bf16.msra.mxu0 %v3049_v1 }
 0x9a0   : > { %6975 = vmatprep.subr.bf16.mxu0 %v10031_v55  ;;  %v6463_v49 = vld [vmem:[%s9815_s7 + $0x2a] sm:$0x3] }
 0x9a2   : > { %6972 = vmatmul.mubr.msk.bf16.vlgmr.msra.gmra.mxu0 %vm1410_vm3, %v6460_v57 }
 0x9a3   : > { %6976 = vmatpush3.bf16.msra.mxu0 %v3099_v10  ;;  %6977 = vmatprep.mubr.msk.bf16.mxu0 %vm7878_vm0, %v10031_v55 }
 0x9a4   : > { %6981 = vmatprep.subr.bf16.mxu0 %v10031_v55 }
 0x9aa   : > { %6978 = vmatmul.mubr.msk.bf16.vlgmr.msra.gmra.mxu0 %vm1410_vm3, %v6463_v49  ;;  %v6466_v49 = vld [vmem:[%s9815_s7 + $0x2e] sm:$0x3] }
 0x9ab   : > { %6983 = vmatprep.mubr.msk.bf16.mxu0 %vm7878_vm0, %v10031_v55 }
 0x9b9   : > { %v2944_v61 = vpop.f32.mrf.mxu1  ;;  %v2985_v1 = vpop.f32.mrf.mxu0 }
 0x9bb   : > { %v2946_v62 = vpop.f32.mrf.mxu1  ;;  %v2987_v5 = vpop.f32.mrf.mxu0 }
 0x9bc   : > { %v3037_v34 = vpack.c.bf16 %v2946_v62, %v2946_v62  ;;  %v3039_v46 = vpack.c.bf16 %v2987_v5, %v2987_v5  ;;  %v3032_v62 = vpack.c.bf16 %v2862_v56, %v2862_v56 }
 0x9bd   : > { %v2948_v10 = vpop.f32.mrf.mxu1  ;;  %v2989_v38 = vpop.f32.mrf.mxu0 }
 0x9be   : > { %v3149_v42 = vsel %vm1414_vm2, %v3037_v34, 0  ;;  %v3199_v0 = vsel %vm1414_vm2, %v3039_v46, 0  ;;  %v3293_v5 = vsel %vm1414_vm2, %v3032_v62, 0  ;;  %v6459_v34 = vld [vmem:[%s9815_s7 + $0x24] sm:$0x3]  ;;  %v3034_v46 = vpack.c.bf16 %v8999_v12, %v8999_v12  ;;  %v3559_v12 = vpop.permute.xlu0 %3558 }
 0x9bf   : > { %v2949_v57 = vpop.f32.mrf.mxu1  ;;  %v2990_v22 = vpop.f32.mrf.mxu0  ;;  %6982 = vmatpush3.bf16.msra.mxu0 %v3149_v42  ;;  %v6465_v10 = vld [vmem:[%s9815_s7 + $0x2c] sm:$0x3]  ;;  %v6471_v62 = vld [vmem:[%s9815_s7 + $0x34] sm:$0x3] }
 0x9c0   : > { %6987 = vmatprep.subr.bf16.mxu0 %v10031_v55  ;;  %v6469_v22 = vld [vmem:[%s9815_s7 + $0x32] sm:$0x3] }
 0x9c2   : > { %6984 = vmatmul.mubr.msk.bf16.vlgmr.msra.gmra.mxu0 %vm1410_vm3, %v6466_v49 }
 0x9c3   : > { %6988 = vmatpush3.bf16.msra.mxu0 %v3199_v0  ;;  %6989 = vmatprep.mubr.msk.bf16.mxu0 %vm7878_vm0, %v10031_v55  ;;  %v3036_v0 = vpack.c.bf16 %v2944_v61, %v2944_v61 }
 0x9c4   : > { %6999 = vmatprep.subr.bf16.mxu0 %v10031_v55 }
 0x9c5   : > { %v3385_v56 = vsel %vm1414_vm2, %v3036_v0, 0  ;;  %v3339_v0 = vsel %vm1414_vm2, %v3034_v46, 0  ;;  %v3571_v46 = vpop.permute.xlu0 %3570 }
 0x9ca   : > { %6990 = vmatmul.mubr.msk.bf16.vlgmr.msra.gmra.mxu0 %vm1410_vm3, %v6469_v22 }
 0x9cb   : > { %7000 = vmatpush3.bf16.msra.mxu0 %v3293_v5  ;;  %7001 = vmatprep.mubr.msk.bf16.mxu0 %vm7878_vm0, %v10031_v55  ;;  %v3564_v5 = vpop.permute.xlu1 %3563 }
 0x9cc   : > { %7011 = vmatprep.subr.bf16.mxu0 %v10031_v55 }
 0x9d2   : > { %7002 = vmatmul.mubr.msk.bf16.vlgmr.msra.gmra.mxu0 %vm1410_vm3, %v6459_v34  ;;  %v3567_v34 = vmul.f32 %v3564_v5, %v8588_v2 }
 0x9d3   : > { %7012 = vmatpush3.bf16.msra.mxu0 %v3385_v56  ;;  %7013 = vmatprep.mubr.msk.bf16.mxu0 %vm7878_vm0, %v10031_v55  ;;  %v3038_v56 = vpack.c.bf16 %v2985_v1, %v2985_v1 }
 0x9d4   : > { %7023 = vmatprep.subr.bf16.mxu0 %v10031_v55 }
 0x9d9   : > { %v3026_v38 = vpop.f32.mrf.mxu1 }
 0x9da   : > { %v3040_v61 = vpack.c.bf16 %v3026_v38, %v3026_v38  ;;  %7014 = vmatmul.mubr.msk.bf16.vlgmr.msra.gmra.mxu0 %vm1410_vm3, %v6465_v10  ;;  %v3566_v10 = vmul.f32 %v3559_v12, %v8584_v58  ;;  %v6462_v38 = vld [vmem:[%s9815_s7 + $0x28] sm:$0x3] }
 0x9db   : > { %v6967_v42 = vpop.f32.mrf.mxu1  ;;  %7025 = vmatprep.mubr.msk.bf16.mxu0 %vm7878_vm0, %v10031_v55 }
 0x9dc   : > { %v3247_v57 = vsel %vm1414_vm2, %v3040_v61, 0  ;;  %v3576_v61 = vpop.permute.xlu1 %3575 }
 0x9dd   : > { %v3029_v49 = vpop.f32.mrf.mxu1  ;;  %6994 = vmatpush3.bf16.msra.mxu1 %v3247_v57  ;;  %v3579_v42 = vadd.f32 %v3576_v61, %v3567_v34  ;;  %v3431_v57 = vsel %vm1414_vm2, %v3038_v56, 0 }
 0x9de   : > { %7005 = vmatprep.subr.bf16.mxu1 %v10031_v55  ;;  %v3578_v49 = vadd.f32 %v3571_v46, %v3566_v10 }
 0x9df   : > { %v6968_v22 = vpop.f32.mrf.mxu1  ;;  %v3581_v1 = vmax.f32 %v3579_v42, 0.0 }
 0x9e0   : > { %6996 = vmatmul.mubr.msk.bf16.vlgmr.msra.gmra.mxu1 %vm1410_vm3, %v6471_v62  ;;  %v6468_v62 = vld [vmem:[%s9815_s7 + $0x30] sm:$0x3]  ;;  %v3580_v22 = vmax.f32 %v3578_v49, 0.0 }
 0x9e1   : > { %7006 = vmatpush3.bf16.msra.mxu1 %v3339_v0  ;;  %7007 = vmatprep.mubr.msk.bf16.mxu1 %vm7878_vm0, %v10031_v55  ;;  %v3583_v0 = vld [vmem:[#allocation4 + $0x6] sm:$0x3] }
 0x9e2   : > { %7017 = vmatprep.subr.bf16.mxu1 %v10031_v55  ;;  %v3584_v5 = vpack.c.bf16 %v3581_v1, %v3580_v22 }
 0x9e8   : > { %7008 = vmatmul.mubr.msk.bf16.vlgmr.msra.gmra.mxu1 %vm1410_vm3, %v6462_v38 }
 0x9e9   : > { %7018 = vmatpush3.bf16.msra.mxu1 %v3431_v57  ;;  %7019 = vmatprep.mubr.msk.bf16.mxu1 %vm7878_vm0, %v10031_v55 }
 0x9ea   : > { %7029 = vmatprep.subr.bf16.mxu1 %v10031_v55 }
 0x9f0   : > { %7020 = vmatmul.mubr.msk.bf16.vlgmr.msra.gmra.mxu1 %vm1410_vm3, %v6468_v62 }
 0x9f1   : > { %7030 = vmatpush3.bf16.msra.mxu1 %v3584_v5  ;;  %7031 = vmatprep.mubr.msk.bf16.mxu1 %vm7878_vm0, %v10031_v55 }
 0x9f2   : > { %3687 = vmatprep.subr.bf16.mxu1 %v8807_v23 }
 0x9f8   : > { %7032 = vmatmul.mubr.msk.bf16.vlgmr.msra.gmra.mxu1 %vm686_vm1, %v3583_v0 }
 0x9f9   : > { %3688 = vmatpush1.bf16.msra.mxu1 %v8811_v24  ;;  %3719 = vmatprep.mubr.bf16.mxu1 %v10000_v59 }
 0x9fa   : > { %3689 = vmatprep.subr.bf16.mxu1 %v8815_v25 }
 0x9fd   : > { %3690 = vmatpush1.bf16.msra.mxu1 %v8818_v26 }
 0x9fe   : > { %3691 = vmatprep.subr.bf16.mxu1 %v8821_v27 }
 0xa01   : > { %3692 = vmatpush1.bf16.msra.mxu1 %v8824_v28 }
 0xa02   : > { %3693 = vmatprep.subr.bf16.mxu1 %v8827_v29 }
 0xa05   : > { %3694 = vmatpush1.bf16.msra.mxu1 %v8830_v30 }
 0xa06   : > { %3695 = vmatprep.subr.bf16.mxu1 %v8833_v31 }
 0xa09   : > { %3696 = vmatpush1.bf16.msra.mxu1 %v8836_v32 }
 0xa0a   : > { %3697 = vmatprep.subr.bf16.mxu1 %v8839_v33 }
 0xa0d   : > { %3698 = vmatpush1.bf16.msra.mxu1 %v8842_v35 }
 0xa0e   : > { %3699 = vmatprep.subr.bf16.mxu1 %v8845_v37 }
 0xa11   : > { %3700 = vmatpush1.bf16.msra.mxu1 %v8848_v39 }
 0xa12   : > { %3701 = vmatprep.subr.bf16.mxu1 %v8851_v41 }
 0xa15   : > { %3702 = vmatpush1.bf16.msra.mxu1 %v8854_v43 }
 0xa16   : > { %3769 = vmatprep.subr.bf16.mxu1 %v8857_v53 }
 0xa62   : > { %v3085_v23 = vpop.f32.mrf.mxu0 }
 0xa64   : > { %v6973_v24 = vpop.f32.mrf.mxu0 }
 0xa66   : > { %v3088_v25 = vpop.f32.mrf.mxu0 }
 0xa68   : > { %v6974_v26 = vpop.f32.mrf.mxu0 }
 0xa6a   : > { %v3135_v27 = vpop.f32.mrf.mxu0 }
 0xa6c   : > { %v6979_v28 = vpop.f32.mrf.mxu0 }
 0xa6e   : > { %v3138_v29 = vpop.f32.mrf.mxu0 }
 0xa70   : > { %v6980_v30 = vpop.f32.mrf.mxu0 }
 0xa82   : > { %v3185_v31 = vpop.f32.mrf.mxu0 }
 0xa84   : > { %v6985_v32 = vpop.f32.mrf.mxu0 }
 0xa85   : > { %v3484_v32 = vpop.permute.xlu0 %3483 }
 0xa86   : > { %v3188_v33 = vpop.f32.mrf.mxu0 }
 0xa88   : > { %v6986_v35 = vpop.f32.mrf.mxu0 }
 0xa8a   : > { %v3235_v37 = vpop.f32.mrf.mxu0 }
 0xa8c   : > { %v6991_v39 = vpop.f32.mrf.mxu0 }
 0xa8d   : > { %v3490_v39 = vpop.permute.xlu1 %3489 }
 0xa8e   : > { %v3238_v12 = vpop.f32.mrf.mxu0 }
 0xa90   : > { %v6992_v41 = vpop.f32.mrf.mxu0 }
 0xa92   : > { %v3329_v34 = vpop.f32.mrf.mxu0 }
 0xa93   : > { %v3330_v22 = vadd.f32 %v3329_v34, %v3085_v23 }
 0xa94   : > { %v7003_v43 = vpop.f32.mrf.mxu0 }
 0xa96   : > { %v3332_v56 = vpop.f32.mrf.mxu0 }
 0xa98   : > { %v7004_v53 = vpop.f32.mrf.mxu0 }
 0xa99   : > { %v3635_v53 = vpop.permute.xlu0 %3634 }
 0xa9a   : > { %v3421_v10 = vpop.f32.mrf.mxu0 }
 0xa9b   : > { %v3422_v29 = vadd.f32 %v3421_v10, %v3185_v31 }
 0xa9c   : > { %v7015_v38 = vpop.f32.mrf.mxu0 }
 0xa9e   : > { %v3424_v61 = vpop.f32.mrf.mxu0 }
 0xaa0   : > { %v3283_v42 = vpop.f32.mrf.mxu1  ;;  %v7016_v46 = vpop.f32.mrf.mxu0 }
 0xaa2   : > { %v6997_v57 = vpop.f32.mrf.mxu1 }
 0xaa4   : > { %v3286_v49 = vpop.f32.mrf.mxu1 }
 0xaa6   : > { %v6998_v1 = vpop.f32.mrf.mxu1 }
 0xaa8   : > { %v3375_v62 = vpop.f32.mrf.mxu1 }
 0xaa9   : > { %v3376_v5 = vadd.f32 %v3375_v62, %v3135_v27  ;;  %v3641_v27 = vpop.permute.xlu1 %3640 }
 0xaaa   : > { %v7009_v0 = vpop.f32.mrf.mxu1 }
 0xaab   : > { %v3473_v24 = vadd.f32 %v3376_v5, %v3330_v22 }
 0xaac   : > { %v3378_v25 = vpop.f32.mrf.mxu1 }
 0xaae   : > { %v7010_v26 = vpop.f32.mrf.mxu1 }
 0xab0   : > { %v3467_v28 = vpop.f32.mrf.mxu1 }
 0xab1   : > { %v3468_v30 = vadd.f32 %v3467_v28, %v3235_v37 }
 0xab2   : > { %v7021_v33 = vpop.f32.mrf.mxu1 }
 0xab3   : > { %v3474_v35 = vadd.f32 %v3468_v30, %v3422_v29 }
 0xab4   : > { %v3470_v12 = vpop.f32.mrf.mxu1 }
 0xab5   : > { %v3475_v41 = vadd.f32 %v3474_v35, %v3473_v24 }
 0xab6   : > { %v7022_v43 = vpop.f32.mrf.mxu1 }
 0xab7   : > { %v3476_v56 = vadd.f32 %v3475_v41, %v3283_v42  ;;  %v7497_v42 = vld [vmem:[%s9818_s10 + $0x10] sm:$0xff]  }
 0xab8   : > { %v3622_v38 = vpop.f32.mrf.mxu1 }
 0xab9   : > { %v3637_v61 = vmul.f32 %v3635_v53, %v3622_v38  ;;  %v3486_v23 = vmul.f32 %v3484_v32, %v3476_v56 }
 0xaba   : > { %v7033_v34 = vpop.f32.mrf.mxu1 }
 0xabb   : > { %v3643_v46 = vadd.f32 %v3641_v27, %v3637_v61  ;;  %v3492_v57 = vadd.f32 %v3490_v39, %v3486_v23  ;;  %v6490_v61 = vld [vmem:[%s9815_s7 + $0x38] sm:$0x3]  ;;  %v6493_v27 = vld [vmem:[%s9815_s7 + $0x3c] sm:$0x3] }
 0xabc   : > { %v3625_v49 = vpop.f32.mrf.mxu1 }
 0xabd   : > { %v3644_v1 = vmax.f32 %v3643_v46, 0.0  ;;  %v3493_v31 = vmax.f32 %v3492_v57, 0.0 }
 0xabe   : > { %v7034_v37 = vpop.f32.mrf.mxu1 }
 0xabf   : > { %v9096_v10 = vpack.c.bf16 %v3644_v1, %v3644_v1  ;;  %v3497_v62 = vpack.c.bf16 %v3493_v31, %v3493_v31 }
 0xac1   : > { %3720 = vmatmul.mubr.bf16.vlgmr.msra.gmra.mxu1 %v9096_v10  ;;  %v3507_v22 = vsel %vm1414_vm2, %v3497_v62, 0 }
 0xac2   : > { %3770 = vmatpush1.bf16.msra.mxu1 %v8867_v63  ;;  %7024 = vmatpush3.bf16.msra.mxu0 %v3507_v22  ;;  %v10083_v63 = vld [vmem:[#allocation33_spill] sm:$0xff] }
 0xac3   : > { %3771 = vmatprep.subr.bf16.mxu1 %v8873_v3  ;;  %3646 = vmatprep.subr.bf16.mxu0 %v8746_v19  ;;  %v10069_v19 = vld [vmem:[#allocation17_spill] sm:$0xff]  ;;  %v10084_v3 = vld [vmem:[#allocation34_spill] sm:$0xff] }
 0xac4   : > { %3801 = vmatprep.mubr.bf16.mxu1 %v10000_v59 }
 0xac5   : > { %7026 = vmatmul.mubr.msk.bf16.vlgmr.msra.gmra.mxu0 %vm1410_vm3, %v7497_v42  ;;  %v6499_v42 = vld [vmem:[%s9815_s7 + $0x44] sm:$0x3] }
 0xac6   : > { %3772 = vmatpush1.bf16.msra.mxu1 %v8881_v8  ;;  %3647 = vmatpush1.bf16.msra.mxu0 %v8750_v45  ;;  %v10070_v45 = vld [vmem:[#allocation18_spill] sm:$0xff]  ;;  %v10085_v8 = vld [vmem:[#allocation35_spill] sm:$0xff] }
 0xac7   : > { %3773 = vmatprep.subr.bf16.mxu1 %v8887_v36  ;;  %3648 = vmatprep.subr.bf16.mxu0 %v8754_v51  ;;  %v10071_v51 = vld [vmem:[#allocation19_spill] sm:$0xff]  ;;  %v10086_v36 = vld [vmem:[#allocation36_spill] sm:$0xff] }
 0xac8   : > { %3678 = vmatprep.mubr.bf16.mxu0 %v10000_v59 }
 0xaca   : > { %3774 = vmatpush1.bf16.msra.mxu1 %v8893_v40  ;;  %3649 = vmatpush1.bf16.msra.mxu0 %v8757_v47  ;;  %v10072_v47 = vld [vmem:[#allocation20_spill] sm:$0xff]  ;;  %v10087_v40 = vld [vmem:[#allocation37_spill] sm:$0xff] }
 0xacb   : > { %3775 = vmatprep.subr.bf16.mxu1 %v8899_v6  ;;  %3650 = vmatprep.subr.bf16.mxu0 %v8760_v17  ;;  %v10073_v17 = vld [vmem:[#allocation23_spill] sm:$0xff]  ;;  %v10088_v6 = vld [vmem:[#allocation38_spill] sm:$0xff] }
 0xace   : > { %3776 = vmatpush1.bf16.msra.mxu1 %v8905_v20  ;;  %3651 = vmatpush1.bf16.msra.mxu0 %v8763_v16  ;;  %v10074_v16 = vld [vmem:[#allocation24_spill] sm:$0xff]  ;;  %v10089_v20 = vld [vmem:[#allocation39_spill] sm:$0xff] }
 0xacf   : > { %3777 = vmatprep.subr.bf16.mxu1 %v8911_v60  ;;  %3652 = vmatprep.subr.bf16.mxu0 %v8766_v15  ;;  %v10075_v15 = vld [vmem:[#allocation25_spill] sm:$0xff] }
 0xad0   : > { %v10091_v60 = vld [vmem:[#allocation41_spill] sm:$0xff] }
 0xad2   : > { %3778 = vmatpush1.bf16.msra.mxu1 %v8917_v13  ;;  %3653 = vmatpush1.bf16.msra.mxu0 %v8769_v14  ;;  %v10076_v14 = vld [vmem:[#allocation26_spill] sm:$0xff]  ;;  %v10093_v13 = vld [vmem:[#allocation43_spill] sm:$0xff] }
 0xad3   : > { %3779 = vmatprep.subr.bf16.mxu1 %v8923_v18  ;;  %3654 = vmatprep.subr.bf16.mxu0 %v8772_v50  ;;  %v10077_v50 = vld [vmem:[#allocation27_spill] sm:$0xff]  ;;  %v10095_v18 = vld [vmem:[#allocation45_spill] sm:$0xff] }
 0xad6   : > { %3780 = vmatpush1.bf16.msra.mxu1 %v8929_v7  ;;  %3655 = vmatpush1.bf16.msra.mxu0 %v8775_v21  ;;  %v10078_v21 = vld [vmem:[#allocation28_spill] sm:$0xff] }
 0xad7   : > { %3781 = vmatprep.subr.bf16.mxu1 %v8935_v4  ;;  %3656 = vmatprep.subr.bf16.mxu0 %v8778_v48  ;;  %v10079_v48 = vld [vmem:[#allocation29_spill] sm:$0xff]  ;;  %v10082_v4 = vld [vmem:[#allocation32_spill] sm:$0xff] }
 0xada   : > { %3782 = vmatpush1.bf16.msra.mxu1 %v8941_v44  ;;  %3657 = vmatpush1.bf16.msra.mxu0 %v8781_v11  ;;  %v10080_v11 = vld [vmem:[#allocation30_spill] sm:$0xff]  ;;  %v10094_v44 = vld [vmem:[#allocation44_spill] sm:$0xff] }
 0xadb   : > { %3783 = vmatprep.subr.bf16.mxu1 %v8947_v9  ;;  %3658 = vmatprep.subr.bf16.mxu0 %v8784_v52  ;;  %v10081_v52 = vld [vmem:[#allocation31_spill] sm:$0xff]  ;;  %v10092_v9 = vld [vmem:[#allocation42_spill] sm:$0xff] }
 0xade   : > { %3784 = vmatpush1.bf16.msra.mxu1 %v8953_v54  ;;  %3659 = vmatpush1.bf16.msra.mxu0 %v10069_v19  ;;  %v10090_v54 = vld [vmem:[#allocation40_spill] sm:$0xff] }
 0xadf   : > { %3660 = vmatprep.subr.bf16.mxu0 %v10070_v45  ;;  %7055 = vmatprep.subr.bf16.mxu1 %v10031_v55 }
 0xae1   : > { %3802 = vmatmul.mubr.bf16.vlgmr.msra.gmra.mxu1 %v9096_v10 }
 0xae2   : > { %3661 = vmatpush1.bf16.msra.mxu0 %v10071_v51  ;;  %7057 = vmatprep.mubr.msk.bf16.mxu1 %vm7878_vm0, %v10031_v55  ;;  %v6489_v51 = vld [vmem:[%s9815_s7 + $0x36] sm:$0x3] }
 0xae3   : > { %3728 = vmatprep.subr.bf16.mxu0 %v10072_v47 }
 0xae5   : > { %3679 = vmatmul.mubr.bf16.vlgmr.msra.gmra.mxu0 %v9096_v10 }
 0xae6   : > { %3729 = vmatpush1.bf16.msra.mxu0 %v10073_v17  ;;  %3760 = vmatprep.mubr.bf16.mxu0 %v10000_v59  ;;  %v6495_v17 = vld [vmem:[%s9815_s7 + $0x3e] sm:$0x3] }
 0xae7   : > { %3730 = vmatprep.subr.bf16.mxu0 %v10074_v16 }
 0xaea   : > { %3731 = vmatpush1.bf16.msra.mxu0 %v10075_v15 }
 0xaeb   : > { %3732 = vmatprep.subr.bf16.mxu0 %v10076_v14 }
 0xaee   : > { %3733 = vmatpush1.bf16.msra.mxu0 %v10077_v50 }
 0xaef   : > { %3734 = vmatprep.subr.bf16.mxu0 %v10078_v21 }
 0xaf2   : > { %3735 = vmatpush1.bf16.msra.mxu0 %v10079_v48 }
 0xaf3   : > { %3736 = vmatprep.subr.bf16.mxu0 %v10080_v11  ;;  %v6501_v11 = vld [vmem:[%s9815_s7 + $0x46] sm:$0x3] }
 0xaf6   : > { %3737 = vmatpush1.bf16.msra.mxu0 %v10081_v52 }
 0xaf7   : > { %3738 = vmatprep.subr.bf16.mxu0 %v10082_v4 }
 0xafa   : > { %3739 = vmatpush1.bf16.msra.mxu0 %v10083_v63 }
 0xafb   : > { %3740 = vmatprep.subr.bf16.mxu0 %v10084_v3  ;;  %v6492_v3 = vld [vmem:[%s9815_s7 + $0x3a] sm:$0x3] }
 0xafe   : > { %3741 = vmatpush1.bf16.msra.mxu0 %v10085_v8 }
 0xaff   : > { %3742 = vmatprep.subr.bf16.mxu0 %v10086_v36  ;;  %v6498_v36 = vld [vmem:[%s9815_s7 + $0x42] sm:$0x3] }
 0xb02   : > { %3743 = vmatpush1.bf16.msra.mxu0 %v10087_v40 }
 0xb03   : > { %7035 = vmatprep.subr.bf16.mxu0 %v10031_v55 }
 0xb05   : > { %3761 = vmatmul.mubr.bf16.vlgmr.msra.gmra.mxu0 %v9096_v10 }
 0xb06   : > { %7036 = vmatpush3.bf16.msra.mxu0 %v10088_v6  ;;  %7051 = vmatprep.mubr.msk.bf16.mxu0 %vm7878_vm0, %v10031_v55 }
 0xb07   : > { %7037 = vmatprep.subr.bf16.mxu0 %v10031_v55 }
 0xb0a   : > { %7038 = vmatpush3.bf16.msra.mxu0 %v10089_v20 }
 0xb0b   : > { %7039 = vmatprep.subr.bf16.mxu0 %v10031_v55 }
 0xb0e   : > { %7040 = vmatpush3.bf16.msra.mxu0 %v10090_v54 }
 0xb0f   : > { %7041 = vmatprep.subr.bf16.mxu0 %v10031_v55 }
 0xb12   : > { %7042 = vmatpush3.bf16.msra.mxu0 %v10091_v60 }
 0xb13   : > { %7043 = vmatprep.subr.bf16.mxu0 %v10031_v55 }
 0xb16   : > { %7044 = vmatpush3.bf16.msra.mxu0 %v10092_v9 }
 0xb17   : > { %7045 = vmatprep.subr.bf16.mxu0 %v10031_v55 }
 0xb1a   : > { %7046 = vmatpush3.bf16.msra.mxu0 %v10093_v13 }
 0xb1b   : > { %7047 = vmatprep.subr.bf16.mxu0 %v10031_v55 }
 0xb1e   : > { %7048 = vmatpush3.bf16.msra.mxu0 %v10094_v44 }
 0xb1f   : > { %7049 = vmatprep.subr.bf16.mxu0 %v10031_v55 }
 0xb22   : > { %7050 = vmatpush3.bf16.msra.mxu0 %v10095_v18 }
 0xb23   : > { %7079 = vmatprep.subr.bf16.mxu0 %v10031_v55 }
 0xb25   : > { %7052 = vmatmul.mubr.bf16.vlgmr.msra.gmra.mxu0 %v9096_v10  ;;  %v6496_v10 = vld [vmem:[%s9815_s7 + $0x40] sm:$0x3] }
 0xb26   : > { %7081 = vmatprep.mubr.msk.bf16.mxu0 %vm7878_vm0, %v10031_v55 }
 0xb81   : > { %v9182_v7 = vpop.f32.mrf.mxu1 }
 0xb82   : > { %v3852_v50 = vpack.c.bf16 %v9182_v7, %v9182_v7 }
 0xb83   : > { %v3723_v5 = vpop.f32.mrf.mxu1 }
 0xb84   : > { %v3853_v56 = vpack.c.bf16 %v3723_v5, %v3723_v5  ;;  %v4157_v4 = vsel %vm1414_vm2, %v3852_v50, 0 }
 0xb85   : > { %v9184_v0 = vpop.f32.mrf.mxu0  ;;  %v3725_v24 = vpop.f32.mrf.mxu1 }
 0xb86   : > { %v3917_v23 = vsel %vm1414_vm2, %v3853_v56, 0 }
 0xb87   : > { %v7027_v25 = vpop.f32.mrf.mxu0  ;;  %v3726_v26 = vpop.f32.mrf.mxu1 }
 0xb89   : > { %v9186_v28 = vpop.f32.mrf.mxu0 }
 0xb8b   : > { %v7028_v29 = vpop.f32.mrf.mxu0 }
 0xba1   : > { %v9188_v30 = vpop.f32.mrf.mxu1 }
 0xba2   : > { %v3856_v63 = vpack.c.bf16 %v9188_v30, %v9188_v30 }
 0xba3   : > { %v3805_v32 = vpop.f32.mrf.mxu1 }
 0xba4   : > { %v3857_v1 = vpack.c.bf16 %v3805_v32, %v3805_v32  ;;  %v4249_v8 = vsel %vm1414_vm2, %v3856_v63, 0  ;;  %v9278_v63 = vld [vmem:[#allocation2 + $0x1b4] ss:$36 sps:$4 sm:$0xff]  }
 0xba5   : > { %v3807_v33 = vpop.f32.mrf.mxu1  ;;  %v3680_v35 = vpop.f32.mrf.mxu0 }
 0xba6   : > { %v4017_v62 = vsel %vm1414_vm2, %v3857_v1, 0  ;;  %v3850_v22 = vpack.c.bf16 %v3680_v35, %v3680_v35 }
 0xba7   : > { %v3808_v39 = vpop.f32.mrf.mxu1  ;;  %v3682_v12 = vpop.f32.mrf.mxu0 }
 0xba8   : > { %v3851_v41 = vpack.c.bf16 %v3682_v12, %v3682_v12  ;;  %v4111_v19 = vsel %vm1414_vm2, %v3850_v22, 0 }
 0xba9   : > { %v3684_v43 = vpop.f32.mrf.mxu0 }
 0xbaa   : > { %v3867_v53 = vsel %vm1414_vm2, %v3851_v41, 0 }
 0xbab   : > { %v3685_v38 = vpop.f32.mrf.mxu0  ;;  %7056 = vmatpush3.bf16.msra.mxu1 %v3867_v53 }
 0xbac   : > { %7061 = vmatprep.subr.bf16.mxu1 %v10031_v55 }
 0xbae   : > { %7058 = vmatmul.mubr.msk.bf16.vlgmr.msra.gmra.mxu1 %vm1410_vm3, %v6490_v61 }
 0xbaf   : > { %7062 = vmatpush3.bf16.msra.mxu1 %v3917_v23  ;;  %7063 = vmatprep.mubr.msk.bf16.mxu1 %vm7878_vm0, %v10031_v55 }
 0xbb0   : > { %7067 = vmatprep.subr.bf16.mxu1 %v10031_v55 }
 0xbb6   : > { %7064 = vmatmul.mubr.msk.bf16.vlgmr.msra.gmra.mxu1 %vm1410_vm3, %v6493_v27 }
 0xbb7   : > { %7069 = vmatprep.mubr.msk.bf16.mxu1 %vm7878_vm0, %v10031_v55 }
 0xbc5   : > { %v3762_v34 = vpop.f32.mrf.mxu0 }
 0xbc6   : > { %v3854_v45 = vpack.c.bf16 %v3762_v34, %v3762_v34 }
 0xbc7   : > { %v3764_v46 = vpop.f32.mrf.mxu0 }
 0xbc8   : > { %v3855_v57 = vpack.c.bf16 %v3764_v46, %v3764_v46  ;;  %v4203_v47 = vsel %vm1414_vm2, %v3854_v45, 0 }
 0xbc9   : > { %v3766_v49 = vpop.f32.mrf.mxu0 }
 0xbca   : > { %v3967_v31 = vsel %vm1414_vm2, %v3855_v57, 0 }
 0xbcb   : > { %v3767_v37 = vpop.f32.mrf.mxu0  ;;  %7068 = vmatpush3.bf16.msra.mxu1 %v3967_v31 }
 0xbcc   : > { %7073 = vmatprep.subr.bf16.mxu1 %v10031_v55 }
 0xbce   : > { %7070 = vmatmul.mubr.msk.bf16.vlgmr.msra.gmra.mxu1 %vm1410_vm3, %v6496_v10 }
 0xbcf   : > { %7074 = vmatpush3.bf16.msra.mxu1 %v4017_v62  ;;  %7075 = vmatprep.mubr.msk.bf16.mxu1 %vm7878_vm0, %v10031_v55 }
 0xbd0   : > { %7085 = vmatprep.subr.bf16.mxu1 %v10031_v55 }
 0xbd6   : > { %7076 = vmatmul.mubr.msk.bf16.vlgmr.msra.gmra.mxu1 %vm1410_vm3, %v6499_v42 }
 0xbd7   : > { %7086 = vmatpush3.bf16.msra.mxu1 %v4111_v19  ;;  %7087 = vmatprep.mubr.msk.bf16.mxu1 %vm7878_vm0, %v10031_v55 }
 0xbd8   : > { %7097 = vmatprep.subr.bf16.mxu1 %v10031_v55 }
 0xbde   : > { %7088 = vmatmul.mubr.msk.bf16.vlgmr.msra.gmra.mxu1 %vm1410_vm3, %v6489_v51 }
 0xbdf   : > { %7098 = vmatpush3.bf16.msra.mxu1 %v4203_v47  ;;  %7099 = vmatprep.mubr.msk.bf16.mxu1 %vm7878_vm0, %v10031_v55 }
 0xbe0   : > { %7109 = vmatprep.subr.bf16.mxu1 %v10031_v55 }
 0xbe5   : > { %v3844_v16 = vpop.f32.mrf.mxu0 }
 0xbe6   : > { %v3858_v15 = vpack.c.bf16 %v3844_v16, %v3844_v16  ;;  %7100 = vmatmul.mubr.msk.bf16.vlgmr.msra.gmra.mxu1 %vm1410_vm3, %v6495_v17  ;;  %v4302_v17 = vpop.permute.xlu0 %4301 }
 0xbe7   : > { %v7053_v14 = vpop.f32.mrf.mxu0  ;;  %7111 = vmatprep.mubr.msk.bf16.mxu1 %vm7878_vm0, %v10031_v55 }
 0xbe8   : > { %v4065_v21 = vsel %vm1414_vm2, %v3858_v15, 0  ;;  %v4308_v15 = vpop.permute.xlu1 %4307 }
 0xbe9   : > { %v3847_v48 = vpop.f32.mrf.mxu0  ;;  %7080 = vmatpush3.bf16.msra.mxu0 %v4065_v21 }
 0xbea   : > { %7091 = vmatprep.subr.bf16.mxu0 %v10031_v55 }
 0xbeb   : > { %v7054_v52 = vpop.f32.mrf.mxu0 }
 0xbec   : > { %7082 = vmatmul.mubr.msk.bf16.vlgmr.msra.gmra.mxu0 %vm1410_vm3, %v6501_v11  ;;  %v7498_v11 = vld [vmem:[%s9818_s10 + $0x18] sm:$0xff]  }
 0xbed   : > { %7092 = vmatpush3.bf16.msra.mxu0 %v4157_v4  ;;  %7093 = vmatprep.mubr.msk.bf16.mxu0 %vm7878_vm0, %v10031_v55  ;;  %v9270_v52 = vld [vmem:[#allocation2 + $0x1fc] ss:$36 sps:$4 sm:$0xff]  }
 0xbee   : > { %7103 = vmatprep.subr.bf16.mxu0 %v10031_v55  ;;  %v9274_v4 = vld [vmem:[#allocation2 + $0x1f8] ss:$36 sps:$4 sm:$0xff]  }
 0xbf4   : > { %7094 = vmatmul.mubr.msk.bf16.vlgmr.msra.gmra.mxu0 %vm1410_vm3, %v6492_v3  ;;  %v9281_v3 = vld [vmem:[#allocation2 + $0x1b0] ss:$36 sps:$4 sm:$0xff]  }
 0xbf5   : > { %7104 = vmatpush3.bf16.msra.mxu0 %v4249_v8  ;;  %7105 = vmatprep.mubr.msk.bf16.mxu0 %vm7878_vm0, %v10031_v55  ;;  %v9284_v8 = vld [vmem:[#allocation2 + $0x16c] ss:$36 sps:$4 sm:$0xff]  }
 0xbf6   : > { %7115 = vmatprep.subr.bf16.mxu0 %v10031_v55 }
 0xbfc   : > { %7106 = vmatmul.mubr.msk.bf16.vlgmr.msra.gmra.mxu0 %vm1410_vm3, %v6498_v36  ;;  %v9287_v36 = vld [vmem:[#allocation2 + $0x168] ss:$36 sps:$4 sm:$0xff]  }
 0xbfd   : > { %7117 = vmatprep.mubr.msk.bf16.mxu0 %vm7878_vm0, %v10031_v55 }
 0xc6e   : > { %v3903_v40 = vpop.f32.mrf.mxu1 }
 0xc70   : > { %v7059_v6 = vpop.f32.mrf.mxu1 }
 0xc71   : > { %v9293_v6 = vld [vmem:[#allocation2 + $0x120] ss:$36 sps:$4 sm:$0xff]  }
 0xc72   : > { %v3906_v20 = vpop.f32.mrf.mxu1 }
 0xc73   : > { %v9296_v20 = vld [vmem:[#allocation2 + $0xdc] ss:$36 sps:$4 sm:$0xff]  }
 0xc74   : > { %v7060_v54 = vpop.f32.mrf.mxu1 }
 0xc75   : > { %v9299_v54 = vld [vmem:[#allocation2 + $0xd8] ss:$36 sps:$4 sm:$0xff]  }
 0xc76   : > { %v3953_v60 = vpop.f32.mrf.mxu1 }
 0xc78   : > { %v7065_v9 = vpop.f32.mrf.mxu1 }
 0xc79   : > { %v9305_v9 = vld [vmem:[#allocation2 + $0x90] ss:$36 sps:$4 sm:$0xff]  }
 0xc7a   : > { %v3956_v13 = vpop.f32.mrf.mxu1 }
 0xc7b   : > { %v9308_v13 = vld [vmem:[#allocation2 + $0x4c] ss:$36 sps:$4 sm:$0xff]  }
 0xc7c   : > { %v7066_v44 = vpop.f32.mrf.mxu1 }
 0xc7d   : > { %v9311_v44 = vld [vmem:[#allocation2 + $0x48] ss:$36 sps:$4 sm:$0xff]  }
 0xc8e   : > { %v4003_v18 = vpop.f32.mrf.mxu1 }
 0xc90   : > { %v7071_v7 = vpop.f32.mrf.mxu1 }
 0xc91   : > { %v9317_v7 = vld [vmem:[#allocation2] ss:$36 sps:$4 sm:$0xff]  }
 0xc92   : > { %v4006_v5 = vpop.f32.mrf.mxu1 }
 0xc93   : > { %v9320_v5 = vld [vmem:[#allocation2 + $0x20c] ss:$36 sps:$4 sm:$0xff]  }
 0xc94   : > { %v7072_v24 = vpop.f32.mrf.mxu1 }
 0xc95   : > { %v4377_v24 = vpop.permute.xlu0 %4376 }
 0xc96   : > { %v4053_v25 = vpop.f32.mrf.mxu1 }
 0xc98   : > { %v7077_v26 = vpop.f32.mrf.mxu1 }
 0xc9a   : > { %v4056_v29 = vpop.f32.mrf.mxu1 }
 0xc9b   : > { %v4382_v29 = vpop.permute.xlu1 %4381 }
 0xc9c   : > { %v7078_v30 = vpop.f32.mrf.mxu1 }
 0xc9e   : > { %v4147_v32 = vpop.f32.mrf.mxu1 }
 0xc9f   : > { %v4148_v34 = vadd.f32 %v4147_v32, %v3903_v40  ;;  %v9290_v40 = vld [vmem:[#allocation2 + $0x124] ss:$36 sps:$4 sm:$0xff]  }
 0xca0   : > { %v7089_v33 = vpop.f32.mrf.mxu1 }
 0xca2   : > { %v4150_v35 = vpop.f32.mrf.mxu1 }
 0xca4   : > { %v7090_v39 = vpop.f32.mrf.mxu1 }
 0xca5   : > { %v4389_v39 = vpop.permute.xlu0 %4388 }
 0xca6   : > { %v4239_v12 = vpop.f32.mrf.mxu1 }
 0xca7   : > { %v4240_v10 = vadd.f32 %v4239_v12, %v4003_v18  ;;  %v9314_v18 = vld [vmem:[#allocation2 + $0x4] ss:$36 sps:$4 sm:$0xff]  }
 0xca8   : > { %v7101_v41 = vpop.f32.mrf.mxu1 }
 0xcaa   : > { %v4242_v43 = vpop.f32.mrf.mxu1 }
 0xcac   : > { %v4101_v56 = vpop.f32.mrf.mxu0  ;;  %v7102_v53 = vpop.f32.mrf.mxu1 }
 0xcae   : > { %v7083_v38 = vpop.f32.mrf.mxu0 }
 0xcb0   : > { %v4104_v61 = vpop.f32.mrf.mxu0 }
 0xcb2   : > { %v7084_v23 = vpop.f32.mrf.mxu0 }
 0xcb4   : > { %v4193_v27 = vpop.f32.mrf.mxu0 }
 0xcb5   : > { %v4194_v46 = vadd.f32 %v4193_v27, %v3953_v60  ;;  %v9302_v60 = vld [vmem:[#allocation2 + $0x94] ss:$36 sps:$4 sm:$0xff]   ;;  %v9331_v27 = vld [vmem:[#allocation2 + $0x204] ss:$36 sps:$4 sm:$0xff]  }
 0xcb6   : > { %v7095_v57 = vpop.f32.mrf.mxu0 }
 0xcb7   : > { %v4291_v49 = vadd.f32 %v4194_v46, %v4148_v34  ;;  %v9339_v34 = vld [vmem:[#allocation2 + $0x1bc] ss:$36 sps:$4 sm:$0xff]   ;;  %v9345_v57 = vld [vmem:[#allocation2 + $0x174] ss:$36 sps:$4 sm:$0xff]  }
 0xcb8   : > { %v4196_v1 = vpop.f32.mrf.mxu0  ;;  %v9342_v46 = vld [vmem:[#allocation2 + $0x1b8] ss:$36 sps:$4 sm:$0xff]  }
 0xcb9   : > { %v9351_v1 = vld [vmem:[#allocation2 + $0x12c] ss:$36 sps:$4 sm:$0xff]  }
 0xcba   : > { %v7096_v31 = vpop.f32.mrf.mxu0 }
 0xcbb   : > { %v9354_v31 = vld [vmem:[#allocation2 + $0x128] ss:$36 sps:$4 sm:$0xff]  }
 0xcbc   : > { %v4285_v37 = vpop.f32.mrf.mxu0 }
 0xcbd   : > { %v4286_v62 = vadd.f32 %v4285_v37, %v4053_v25  ;;  %v9357_v37 = vld [vmem:[#allocation2 + $0xe4] ss:$36 sps:$4 sm:$0xff]  }
 0xcbe   : > { %v7107_v22 = vpop.f32.mrf.mxu0 }
 0xcbf   : > { %v4292_v42 = vadd.f32 %v4286_v62, %v4240_v10  ;;  %v9360_v10 = vld [vmem:[#allocation2 + $0xe0] ss:$36 sps:$4 sm:$0xff]   ;;  %v9366_v22 = vld [vmem:[#allocation2 + $0x98] ss:$36 sps:$4 sm:$0xff]  }
 0xcc0   : > { %v4288_v19 = vpop.f32.mrf.mxu0  ;;  %v9363_v62 = vld [vmem:[#allocation2 + $0x9c] ss:$36 sps:$4 sm:$0xff]  }
 0xcc1   : > { %v4293_v45 = vadd.f32 %v4292_v42, %v4291_v49  ;;  %v9348_v49 = vld [vmem:[#allocation2 + $0x170] ss:$36 sps:$4 sm:$0xff]  }
 0xcc2   : > { %v7108_v51 = vpop.f32.mrf.mxu0  ;;  %v9369_v42 = vld [vmem:[#allocation2 + $0x54] ss:$36 sps:$4 sm:$0xff]  }
 0xcc3   : > { %v4294_v47 = vadd.f32 %v4293_v45, %v4101_v56  ;;  %v4394_v56 = vpop.permute.xlu1 %4393  ;;  %v9372_v19 = vld [vmem:[#allocation2 + $0x50] ss:$36 sps:$4 sm:$0xff]   ;;  %v9378_v51 = vld [vmem:[#allocation2 + $0x8] ss:$36 sps:$4 sm:$0xff]  }
 0xcc4   : > { %10096 = vst [vmem:[#allocation46_spill] sm:$0xff] %v9372_v19  ;;  %v9375_v45 = vld [vmem:[#allocation2 + $0xc] ss:$36 sps:$4 sm:$0xff]   ;;  %10098 = vst [vmem:[#allocation48_spill] sm:$0xff] %v9378_v51 }
 0xcc5   : > { %v4304_v16 = vmul.f32 %v4302_v17, %v4294_v47  ;;  %10097 = vst [vmem:[#allocation47_spill] sm:$0xff] %v9375_v45  ;;  %v9381_v47 = vld [vmem:[#allocation2 + $0x214] ss:$36 sps:$4 sm:$0xff]   ;;  %v4453_v17 = vpop.permute.xlu0 %4452 }
 0xcc6   : > { %10099 = vst [vmem:[#allocation49_spill] sm:$0xff] %v9381_v47 }
 0xcc7   : > { %v4310_v14 = vadd.f32 %v4308_v15, %v4304_v16 }
 0xcc9   : > { %v4311_v50 = vmax.f32 %v4310_v14, 0.0  ;;  %v4459_v14 = vpop.permute.xlu1 %4458 }
 0xccb   : > { %v4315_v21 = vpack.c.bf16 %v4311_v50, %v4311_v50 }
 0xccd   : > { %v4325_v48 = vsel %vm1414_vm2, %v4315_v21, 0 }
 0xcce   : > { %7110 = vmatpush3.bf16.msra.mxu1 %v4325_v48 }
 0xccf   : > { %4464 = vmatprep.subr.bf16.mxu1 %v9270_v52 }
 0xcd1   : > { %7112 = vmatmul.mubr.msk.bf16.vlgmr.msra.gmra.mxu1 %vm1410_vm3, %v7498_v11 }
 0xcd2   : > { %4465 = vmatpush1.bf16.msra.mxu1 %v9274_v4  ;;  %4496 = vmatprep.mubr.bf16.mxu1 %v10000_v59 }
 0xcd3   : > { %4466 = vmatprep.subr.bf16.mxu1 %v9278_v63 }
 0xcd6   : > { %4467 = vmatpush1.bf16.msra.mxu1 %v9281_v3 }
 0xcd7   : > { %4468 = vmatprep.subr.bf16.mxu1 %v9284_v8 }
 0xcda   : > { %4469 = vmatpush1.bf16.msra.mxu1 %v9287_v36 }
 0xcdb   : > { %4470 = vmatprep.subr.bf16.mxu1 %v9290_v40 }
 0xcde   : > { %4471 = vmatpush1.bf16.msra.mxu1 %v9293_v6 }
 0xcdf   : > { %4472 = vmatprep.subr.bf16.mxu1 %v9296_v20 }
 0xce2   : > { %4473 = vmatpush1.bf16.msra.mxu1 %v9299_v54 }
 0xce3   : > { %4474 = vmatprep.subr.bf16.mxu1 %v9302_v60 }
 0xce6   : > { %4475 = vmatpush1.bf16.msra.mxu1 %v9305_v9 }
 0xce7   : > { %4476 = vmatprep.subr.bf16.mxu1 %v9308_v13 }
 0xcea   : > { %4477 = vmatpush1.bf16.msra.mxu1 %v9311_v44 }
 0xceb   : > { %4478 = vmatprep.subr.bf16.mxu1 %v9314_v18 }
 0xcee   : > { %4479 = vmatpush1.bf16.msra.mxu1 %v9317_v7 }
 0xcef   : > { %4546 = vmatprep.subr.bf16.mxu1 %v9320_v5 }
 0xd91   : > { %v4361_v25 = vpop.f32.mrf.mxu1 }
 0xd92   : > { %v9324_v26 = vadd.f32 %v4361_v25, %v8584_v58  ;;  %v4401_v58 = vld [vmem:[#allocation4 + $0x8] sm:$0x3] }
 0xd93   : > { %v7113_v30 = vpop.f32.mrf.mxu1 }
 0xd94   : > { %v4384_v32 = vmul.f32 %v4377_v24, %v9324_v26  ;;  %v9391_v30 = vld [vmem:[#allocation2 + $0x210] ss:$36 sps:$4 sm:$0xff]  }
 0xd95   : > { %v4364_v33 = vpop.f32.mrf.mxu1  ;;  %10101 = vst [vmem:[#allocation51_spill] sm:$0xff] %v9391_v30 }
 0xd96   : > { %v9328_v35 = vadd.f32 %v4364_v33, %v8588_v2  ;;  %v4396_v41 = vadd.f32 %v4389_v39, %v4384_v32  ;;  %v9335_v2 = vld [vmem:[#allocation2 + $0x200] ss:$36 sps:$4 sm:$0xff]   ;;  %v9397_v33 = vld [vmem:[#allocation2 + $0x1cc] ss:$36 sps:$4 sm:$0xff]  }
 0xd97   : > { %v7114_v12 = vpop.f32.mrf.mxu1  ;;  %v9394_v32 = vld [vmem:[#allocation2 + $0x1c4] ss:$36 sps:$4 sm:$0xff]   ;;  %10103 = vst [vmem:[#allocation53_spill] sm:$0xff] %v9397_v33 }
 0xd98   : > { %v4385_v43 = vmul.f32 %v4382_v29, %v9328_v35  ;;  %v4398_v38 = vmax.f32 %v4396_v41, 0.0  ;;  %v9388_v29 = vld [vmem:[#allocation2 + $0x208] ss:$36 sps:$4 sm:$0xff]   ;;  %10102 = vst [vmem:[#allocation52_spill] sm:$0xff] %v9394_v32  ;;  %v9402_v39 = vld [vmem:[#allocation2 + $0x1c0] ss:$36 sps:$4 sm:$0xff]  }
 0xd99   : > { %10100 = vst [vmem:[#allocation50_spill] sm:$0xff] %v9388_v29  ;;  %10104 = vst [vmem:[#allocation54_spill] sm:$0xff] %v9402_v39  ;;  %v9405_v12 = vld [vmem:[#allocation2 + $0x1c8] ss:$36 sps:$4 sm:$0xff]   ;;  %v9408_v41 = vld [vmem:[#allocation2 + $0x17c] ss:$36 sps:$4 sm:$0xff]  }
 0xd9a   : > { %v4397_v53 = vadd.f32 %v4394_v56, %v4385_v43  ;;  %10105 = vst [vmem:[#allocation17_spill] sm:$0xff] %v9405_v12  ;;  %10106 = vst [vmem:[#allocation18_spill] sm:$0xff] %v9408_v41  ;;  %v9411_v43 = vld [vmem:[#allocation2 + $0x184] ss:$36 sps:$4 sm:$0xff]   ;;  %v9414_v56 = vld [vmem:[#allocation2 + $0x178] ss:$36 sps:$4 sm:$0xff]  }
 0xd9b   : > { %10107 = vst [vmem:[#allocation19_spill] sm:$0xff] %v9411_v43  ;;  %10108 = vst [vmem:[#allocation20_spill] sm:$0xff] %v9414_v56 }
 0xd9c   : > { %v4399_v61 = vmax.f32 %v4397_v53, 0.0  ;;  %v9417_v53 = vld [vmem:[#allocation2 + $0x180] ss:$36 sps:$4 sm:$0xff]  }
 0xd9d   : > { %10109 = vst [vmem:[#allocation23_spill] sm:$0xff] %v9417_v53 }
 0xd9e   : > { %v4402_v23 = vpack.c.bf16 %v4399_v61, %v4398_v38  ;;  %v9420_v38 = vld [vmem:[#allocation2 + $0x134] ss:$36 sps:$4 sm:$0xff]   ;;  %v9423_v61 = vld [vmem:[#allocation2 + $0x13c] ss:$36 sps:$4 sm:$0xff]  }
 0xd9f   : > { %10110 = vst [vmem:[#allocation24_spill] sm:$0xff] %v9420_v38  ;;  %10111 = vst [vmem:[#allocation25_spill] sm:$0xff] %v9423_v61 }
 0xda0   : > { %7116 = vmatpush3.bf16.msra.mxu0 %v4402_v23  ;;  %v9426_v23 = vld [vmem:[#allocation2 + $0x130] ss:$36 sps:$4 sm:$0xff]  }
 0xda1   : > { %4505 = vmatprep.subr.bf16.mxu0 %v9331_v27  ;;  %10112 = vst [vmem:[#allocation26_spill] sm:$0xff] %v9426_v23 }
 0xda3   : > { %7118 = vmatmul.mubr.msk.bf16.vlgmr.msra.gmra.mxu0 %vm686_vm1, %v4401_v58  ;;  %v9429_v58 = vld [vmem:[#allocation2 + $0x138] ss:$36 sps:$4 sm:$0xff]  }
 0xda4   : > { %4506 = vmatpush1.bf16.msra.mxu0 %v9335_v2  ;;  %4537 = vmatprep.mubr.bf16.mxu0 %v10000_v59  ;;  %10113 = vst [vmem:[#allocation27_spill] sm:$0xff] %v9429_v58 }
 0xda5   : > { %4507 = vmatprep.subr.bf16.mxu0 %v9339_v34 }
 0xda8   : > { %4508 = vmatpush1.bf16.msra.mxu0 %v9342_v46 }
 0xda9   : > { %4509 = vmatprep.subr.bf16.mxu0 %v9345_v57 }
 0xdac   : > { %4510 = vmatpush1.bf16.msra.mxu0 %v9348_v49 }
 0xdad   : > { %4511 = vmatprep.subr.bf16.mxu0 %v9351_v1 }
 0xdb0   : > { %4512 = vmatpush1.bf16.msra.mxu0 %v9354_v31 }
 0xdb1   : > { %4513 = vmatprep.subr.bf16.mxu0 %v9357_v37 }
 0xdb4   : > { %4514 = vmatpush1.bf16.msra.mxu0 %v9360_v10 }
 0xdb5   : > { %4515 = vmatprep.subr.bf16.mxu0 %v9363_v62 }
 0xdb8   : > { %4516 = vmatpush1.bf16.msra.mxu0 %v9366_v22 }
 0xdb9   : > { %4517 = vmatprep.subr.bf16.mxu0 %v9369_v42 }
 0xdbc   : > { %4518 = vmatpush1.bf16.msra.mxu0 %v9372_v19 }
 0xdbd   : > { %4519 = vmatprep.subr.bf16.mxu0 %v9375_v45 }
 0xdc0   : > { %4520 = vmatpush1.bf16.msra.mxu0 %v9378_v51 }
 0xdc1   : > { %4587 = vmatprep.subr.bf16.mxu0 %v9381_v47 }
 0xe63   : > { %v4440_v16 = vpop.f32.mrf.mxu0 }
 0xe64   : > { %v4455_v15 = vmul.f32 %v4453_v17, %v4440_v16  ;;  %v9432_v17 = vld [vmem:[#allocation2 + $0xec] ss:$36 sps:$4 sm:$0xff]   ;;  %v9435_v16 = vld [vmem:[#allocation2 + $0xf4] ss:$36 sps:$4 sm:$0xff]  }
 0xe65   : > { %v7119_v50 = vpop.f32.mrf.mxu0  ;;  %10114 = vst [vmem:[#allocation28_spill] sm:$0xff] %v9432_v17  ;;  %10115 = vst [vmem:[#allocation29_spill] sm:$0xff] %v9435_v16 }
 0xe66   : > { %v4461_v21 = vadd.f32 %v4459_v14, %v4455_v15  ;;  %v9438_v15 = vld [vmem:[#allocation2 + $0xe8] ss:$36 sps:$4 sm:$0xff]   ;;  %v9441_v14 = vld [vmem:[#allocation2 + $0xf0] ss:$36 sps:$4 sm:$0xff]  }
 0xe67   : > { %v4443_v48 = vpop.f32.mrf.mxu0  ;;  %10116 = vst [vmem:[#allocation30_spill] sm:$0xff] %v9438_v15  ;;  %10117 = vst [vmem:[#allocation31_spill] sm:$0xff] %v9441_v14  ;;  %v9444_v50 = vld [vmem:[#allocation2 + $0xa4] ss:$36 sps:$4 sm:$0xff]  }
 0xe68   : > { %v4462_v11 = vmax.f32 %v4461_v21, 0.0  ;;  %10118 = vst [vmem:[#allocation32_spill] sm:$0xff] %v9444_v50  ;;  %v9447_v21 = vld [vmem:[#allocation2 + $0xac] ss:$36 sps:$4 sm:$0xff]   ;;  %v9450_v48 = vld [vmem:[#allocation2 + $0xa0] ss:$36 sps:$4 sm:$0xff]  }
 0xe69   : > { %v7120_v24 = vpop.f32.mrf.mxu0  ;;  %10119 = vst [vmem:[#allocation33_spill] sm:$0xff] %v9447_v21  ;;  %10120 = vst [vmem:[#allocation34_spill] sm:$0xff] %v9450_v48 }
 0xe6a   : > { %v9384_v25 = vpack.c.bf16 %v4462_v11, %v4462_v11  ;;  %v9453_v11 = vld [vmem:[#allocation2 + $0xa8] ss:$36 sps:$4 sm:$0xff]   ;;  %v9456_v24 = vld [vmem:[#allocation2 + $0x5c] ss:$36 sps:$4 sm:$0xff]  }
 0xe6b   : > { %10121 = vst [vmem:[#allocation35_spill] sm:$0xff] %v9453_v11  ;;  %10122 = vst [vmem:[#allocation36_spill] sm:$0xff] %v9456_v24 }
 0xe6c   : > { %4497 = vmatmul.mubr.bf16.vlgmr.msra.gmra.mxu1 %v9384_v25  ;;  %4538 = vmatmul.mubr.bf16.vlgmr.msra.gmra.mxu0 %v9384_v25 }
 0xe6d   : > { %4547 = vmatpush1.bf16.msra.mxu1 %v9388_v29  ;;  %4588 = vmatpush1.bf16.msra.mxu0 %v9391_v30 }
 0xe6e   : > { %4548 = vmatprep.subr.bf16.mxu1 %v9394_v32  ;;  %4589 = vmatprep.subr.bf16.mxu0 %v9397_v33 }
 0xe6f   : > { %4578 = vmatprep.mubr.bf16.mxu1 %v10000_v59  ;;  %4619 = vmatprep.mubr.bf16.mxu0 %v10000_v59 }
 0xe71   : > { %4549 = vmatpush1.bf16.msra.mxu1 %v9402_v39  ;;  %4590 = vmatpush1.bf16.msra.mxu0 %v9405_v12 }
 0xe72   : > { %4550 = vmatprep.subr.bf16.mxu1 %v9408_v41  ;;  %4591 = vmatprep.subr.bf16.mxu0 %v9411_v43 }
 0xe75   : > { %4551 = vmatpush1.bf16.msra.mxu1 %v9414_v56  ;;  %4592 = vmatpush1.bf16.msra.mxu0 %v9417_v53 }
 0xe76   : > { %4552 = vmatprep.subr.bf16.mxu1 %v9420_v38  ;;  %4593 = vmatprep.subr.bf16.mxu0 %v9423_v61 }
 0xe79   : > { %4553 = vmatpush1.bf16.msra.mxu1 %v9426_v23  ;;  %4594 = vmatpush1.bf16.msra.mxu0 %v9429_v58 }
 0xe7a   : > { %4554 = vmatprep.subr.bf16.mxu1 %v9432_v17  ;;  %4595 = vmatprep.subr.bf16.mxu0 %v9435_v16 }
 0xe7d   : > { %4555 = vmatpush1.bf16.msra.mxu1 %v9438_v15  ;;  %4596 = vmatpush1.bf16.msra.mxu0 %v9441_v14  ;;  %v9459_v14 = vld [vmem:[#allocation2 + $0x64] ss:$36 sps:$4 sm:$0xff]  }
 0xe7e   : > { %4556 = vmatprep.subr.bf16.mxu1 %v9444_v50  ;;  %4597 = vmatprep.subr.bf16.mxu0 %v9447_v21  ;;  %10123 = vst [vmem:[#allocation37_spill] sm:$0xff] %v9459_v14  ;;  %v9462_v50 = vld [vmem:[#allocation2 + $0x58] ss:$36 sps:$4 sm:$0xff]   ;;  %v9465_v21 = vld [vmem:[#allocation2 + $0x60] ss:$36 sps:$4 sm:$0xff]  }
 0xe7f   : > { %10124 = vst [vmem:[#allocation38_spill] sm:$0xff] %v9462_v50  ;;  %10125 = vst [vmem:[#allocation39_spill] sm:$0xff] %v9465_v21 }
 0xe81   : > { %4557 = vmatpush1.bf16.msra.mxu1 %v9450_v48  ;;  %4598 = vmatpush1.bf16.msra.mxu0 %v9453_v11  ;;  %v9468_v48 = vld [vmem:[#allocation2 + $0x14] ss:$36 sps:$4 sm:$0xff]   ;;  %v9471_v11 = vld [vmem:[#allocation2 + $0x1c] ss:$36 sps:$4 sm:$0xff]  }
 0xe82   : > { %4558 = vmatprep.subr.bf16.mxu1 %v9456_v24  ;;  %4599 = vmatprep.subr.bf16.mxu0 %v9459_v14  ;;  %10126 = vst [vmem:[#allocation40_spill] sm:$0xff] %v9468_v48  ;;  %10127 = vst [vmem:[#allocation41_spill] sm:$0xff] %v9471_v11  ;;  %v9474_v24 = vld [vmem:[#allocation2 + $0x10] ss:$36 sps:$4 sm:$0xff]   ;;  %v9477_v14 = vld [vmem:[#allocation2 + $0x18] ss:$36 sps:$4 sm:$0xff]  }
 0xe83   : > { %10128 = vst [vmem:[#allocation42_spill] sm:$0xff] %v9474_v24  ;;  %10129 = vst [vmem:[#allocation43_spill] sm:$0xff] %v9477_v14 }
 0xe85   : > { %4559 = vmatpush1.bf16.msra.mxu1 %v9462_v50  ;;  %4600 = vmatpush1.bf16.msra.mxu0 %v9465_v21 }
 0xe86   : > { %4560 = vmatprep.subr.bf16.mxu1 %v9468_v48  ;;  %4601 = vmatprep.subr.bf16.mxu0 %v9471_v11  ;;  %v9484_v48 = vld [vmem:[#allocation2 + $0x218] ss:$36 sps:$4 sm:$0xff]  }
 0xe87   : > { %10130 = vst [vmem:[#allocation44_spill] sm:$0xff] %v9484_v48  ;;  %v9504_v11 = vld [vmem:[#allocation2 + $0xf8] ss:$36 sps:$4 sm:$0xff]  }
 0xe88   : > { %10134 = vst [vmem:[#allocation57_spill] sm:$0xff] %v9504_v11 }
 0xe89   : > { %4561 = vmatpush1.bf16.msra.mxu1 %v9474_v24  ;;  %4602 = vmatpush1.bf16.msra.mxu0 %v9477_v14  ;;  %v9492_v14 = vld [vmem:[#allocation2 + $0x1d0] ss:$36 sps:$4 sm:$0xff]   ;;  %v9496_v24 = vld [vmem:[#allocation2 + $0x188] ss:$36 sps:$4 sm:$0xff]  }
 0xe8a   : > { %7121 = vmatprep.subr.bf16.mxu1 %v10031_v55  ;;  %7141 = vmatprep.subr.bf16.mxu0 %v10031_v55  ;;  %10131 = vst [vmem:[#allocation45_spill] sm:$0xff] %v9492_v14  ;;  %10132 = vst [vmem:[#allocation55_spill] sm:$0xff] %v9496_v24 }
 0xe8c   : > { %4579 = vmatmul.mubr.bf16.vlgmr.msra.gmra.mxu1 %v9384_v25  ;;  %4620 = vmatmul.mubr.bf16.vlgmr.msra.gmra.mxu0 %v9384_v25 }
 0xe8d   : > { %7122 = vmatpush3.bf16.msra.mxu1 %v9484_v48  ;;  %7137 = vmatprep.mubr.msk.bf16.mxu1 %vm7878_vm0, %v10031_v55  ;;  %v9500_v48 = vld [vmem:[#allocation2 + $0x140] ss:$36 sps:$4 sm:$0xff]  }
 0xe8e   : > { %7123 = vmatprep.subr.bf16.mxu1 %v10031_v55  ;;  %7143 = vmatprep.mubr.msk.bf16.mxu0 %vm7878_vm0, %v10031_v55  ;;  %10133 = vst [vmem:[#allocation56_spill] sm:$0xff] %v9500_v48 }
 0xe91   : > { %7124 = vmatpush3.bf16.msra.mxu1 %v9492_v14  ;;  %v9508_v14 = vld [vmem:[#allocation2 + $0xb0] ss:$36 sps:$4 sm:$0xff]  }
 0xe92   : > { %7125 = vmatprep.subr.bf16.mxu1 %v10031_v55  ;;  %10135 = vst [vmem:[#allocation58_spill] sm:$0xff] %v9508_v14 }
 0xe95   : > { %7126 = vmatpush3.bf16.msra.mxu1 %v9496_v24  ;;  %v9512_v24 = vld [vmem:[#allocation2 + $0x68] ss:$36 sps:$4 sm:$0xff]  }
 0xe96   : > { %7127 = vmatprep.subr.bf16.mxu1 %v10031_v55  ;;  %10136 = vst [vmem:[#allocation59_spill] sm:$0xff] %v9512_v24 }
 0xe99   : > { %7128 = vmatpush3.bf16.msra.mxu1 %v9500_v48  ;;  %v9516_v48 = vld [vmem:[#allocation2 + $0x20] ss:$36 sps:$4 sm:$0xff]  }
 0xe9a   : > { %7129 = vmatprep.subr.bf16.mxu1 %v10031_v55  ;;  %10137 = vst [vmem:[#allocation60_spill] sm:$0xff] %v9516_v48 }
 0xe9d   : > { %7130 = vmatpush3.bf16.msra.mxu1 %v9504_v11 }
 0xe9e   : > { %7131 = vmatprep.subr.bf16.mxu1 %v10031_v55 }
 0xea1   : > { %7132 = vmatpush3.bf16.msra.mxu1 %v9508_v14 }
 0xea2   : > { %7133 = vmatprep.subr.bf16.mxu1 %v10031_v55 }
 0xea5   : > { %7134 = vmatpush3.bf16.msra.mxu1 %v9512_v24 }
 0xea6   : > { %7135 = vmatprep.subr.bf16.mxu1 %v10031_v55 }
 0xea9   : > { %7136 = vmatpush3.bf16.msra.mxu1 %v9516_v48 }
 0xeaa   : > { %7165 = vmatprep.subr.bf16.mxu1 %v10031_v55 }
 0xeac   : > { %7138 = vmatmul.mubr.bf16.vlgmr.msra.gmra.mxu1 %v9384_v25  ;;  %v6520_v25 = vld [vmem:[%s9815_s7 + $0x4a] sm:$0x3] }
 0xead   : > { %7167 = vmatprep.mubr.msk.bf16.mxu1 %vm7878_vm0, %v10031_v55 }
 0xf2c   : > { %v4498_v14 = vpop.f32.mrf.mxu1  ;;  %v9523_v11 = vpop.f32.mrf.mxu0 }
 0xf2e   : > { %v4500_v21 = vpop.f32.mrf.mxu1  ;;  %v4541_v50 = vpop.f32.mrf.mxu0 }
 0xf2f   : > { %v4669_v15 = vpack.c.bf16 %v4500_v21, %v4500_v21  ;;  %v4671_v58 = vpack.c.bf16 %v4541_v50, %v4541_v50 }
 0xf30   : > { %v4502_v24 = vpop.f32.mrf.mxu1  ;;  %v4543_v16 = vpop.f32.mrf.mxu0 }
 0xf31   : > { %v4685_v17 = vsel %vm1414_vm2, %v4669_v15, 0  ;;  %v4735_v61 = vsel %vm1414_vm2, %v4671_v58, 0 }
 0xf32   : > { %v4503_v23 = vpop.f32.mrf.mxu1  ;;  %v4544_v48 = vpop.f32.mrf.mxu0  ;;  %7142 = vmatpush3.bf16.msra.mxu0 %v4685_v17 }
 0xf33   : > { %7147 = vmatprep.subr.bf16.mxu0 %v10031_v55  ;;  %v6523_v23 = vld [vmem:[%s9815_s7 + $0x4e] sm:$0x3] }
 0xf35   : > { %7144 = vmatmul.mubr.msk.bf16.vlgmr.msra.gmra.mxu0 %vm1410_vm3, %v6520_v25 }
 0xf36   : > { %7148 = vmatpush3.bf16.msra.mxu0 %v4735_v61  ;;  %7149 = vmatprep.mubr.msk.bf16.mxu0 %vm7878_vm0, %v10031_v55 }
 0xf37   : > { %7153 = vmatprep.subr.bf16.mxu0 %v10031_v55 }
 0xf3d   : > { %7150 = vmatmul.mubr.msk.bf16.vlgmr.msra.gmra.mxu0 %vm1410_vm3, %v6523_v23  ;;  %v6526_v23 = vld [vmem:[%s9815_s7 + $0x52] sm:$0x3] }
 0xf3e   : > { %7155 = vmatprep.mubr.msk.bf16.mxu0 %vm7878_vm0, %v10031_v55 }
 0xf4c   : > { %v4580_v17 = vpop.f32.mrf.mxu1  ;;  %v4621_v16 = vpop.f32.mrf.mxu0 }
 0xf4e   : > { %v4582_v58 = vpop.f32.mrf.mxu1  ;;  %v4623_v15 = vpop.f32.mrf.mxu0 }
 0xf4f   : > { %v4673_v50 = vpack.c.bf16 %v4582_v58, %v4582_v58  ;;  %v4675_v24 = vpack.c.bf16 %v4623_v15, %v4623_v15  ;;  %v4668_v58 = vpack.c.bf16 %v4498_v14, %v4498_v14 }
 0xf50   : > { %v4584_v61 = vpop.f32.mrf.mxu1  ;;  %v4625_v21 = vpop.f32.mrf.mxu0 }
 0xf51   : > { %v4785_v48 = vsel %vm1414_vm2, %v4673_v50, 0  ;;  %v4835_v53 = vsel %vm1414_vm2, %v4675_v24, 0  ;;  %v4929_v15 = vsel %vm1414_vm2, %v4668_v58, 0  ;;  %v6519_v50 = vld [vmem:[%s9815_s7 + $0x48] sm:$0x3]  ;;  %v4670_v24 = vpack.c.bf16 %v9523_v11, %v9523_v11 }
 0xf52   : > { %v4585_v25 = vpop.f32.mrf.mxu1  ;;  %v4626_v38 = vpop.f32.mrf.mxu0  ;;  %7154 = vmatpush3.bf16.msra.mxu0 %v4785_v48  ;;  %v6525_v61 = vld [vmem:[%s9815_s7 + $0x50] sm:$0x3]  ;;  %v6531_v58 = vld [vmem:[%s9815_s7 + $0x58] sm:$0x3]  ;;  %v4674_v11 = vpack.c.bf16 %v4621_v16, %v4621_v16 }
 0xf53   : > { %7159 = vmatprep.subr.bf16.mxu0 %v10031_v55  ;;  %v6529_v38 = vld [vmem:[%s9815_s7 + $0x56] sm:$0x3] }
 0xf55   : > { %7156 = vmatmul.mubr.msk.bf16.vlgmr.msra.gmra.mxu0 %vm1410_vm3, %v6526_v23 }
 0xf56   : > { %7160 = vmatpush3.bf16.msra.mxu0 %v4835_v53  ;;  %7161 = vmatprep.mubr.msk.bf16.mxu0 %vm7878_vm0, %v10031_v55  ;;  %v4672_v53 = vpack.c.bf16 %v4580_v17, %v4580_v17 }
 0xf57   : > { %7171 = vmatprep.subr.bf16.mxu0 %v10031_v55 }
 0xf58   : > { %v5021_v14 = vsel %vm1414_vm2, %v4672_v53, 0  ;;  %v6522_v53 = vld [vmem:[%s9815_s7 + $0x4c] sm:$0x3] }
 0xf5d   : > { %7162 = vmatmul.mubr.msk.bf16.vlgmr.msra.gmra.mxu0 %vm1410_vm3, %v6529_v38 }
 0xf5e   : > { %7172 = vmatpush3.bf16.msra.mxu0 %v4929_v15  ;;  %7173 = vmatprep.mubr.msk.bf16.mxu0 %vm7878_vm0, %v10031_v55  ;;  %v4975_v15 = vsel %vm1414_vm2, %v4670_v24, 0 }
 0xf5f   : > { %7183 = vmatprep.subr.bf16.mxu0 %v10031_v55 }
 0xf65   : > { %7174 = vmatmul.mubr.msk.bf16.vlgmr.msra.gmra.mxu0 %vm1410_vm3, %v6519_v50  ;;  %v5067_v50 = vsel %vm1414_vm2, %v4674_v11, 0 }
 0xf66   : > { %7184 = vmatpush3.bf16.msra.mxu0 %v5021_v14  ;;  %7185 = vmatprep.mubr.msk.bf16.mxu0 %vm7878_vm0, %v10031_v55  ;;  %v6528_v14 = vld [vmem:[%s9815_s7 + $0x54] sm:$0x3] }
 0xf67   : > { %7195 = vmatprep.subr.bf16.mxu0 %v10031_v55 }
 0xf6c   : > { %v4662_v21 = vpop.f32.mrf.mxu1 }
 0xf6d   : > { %v4676_v17 = vpack.c.bf16 %v4662_v21, %v4662_v21  ;;  %7186 = vmatmul.mubr.msk.bf16.vlgmr.msra.gmra.mxu0 %vm1410_vm3, %v6525_v61 }
 0xf6e   : > { %v7139_v48 = vpop.f32.mrf.mxu1  ;;  %7197 = vmatprep.mubr.msk.bf16.mxu0 %vm7878_vm0, %v10031_v55 }
 0xf6f   : > { %v4883_v25 = vsel %vm1414_vm2, %v4676_v17, 0 }
 0xf70   : > { %v4665_v23 = vpop.f32.mrf.mxu1  ;;  %7166 = vmatpush3.bf16.msra.mxu1 %v4883_v25 }
 0xf71   : > { %7177 = vmatprep.subr.bf16.mxu1 %v10031_v55 }
 0xf72   : > { %v7140_v38 = vpop.f32.mrf.mxu1 }
 0xf73   : > { %7168 = vmatmul.mubr.msk.bf16.vlgmr.msra.gmra.mxu1 %vm1410_vm3, %v6531_v58 }
 0xf74   : > { %7178 = vmatpush3.bf16.msra.mxu1 %v4975_v15  ;;  %7179 = vmatprep.mubr.msk.bf16.mxu1 %vm7878_vm0, %v10031_v55 }
 0xf75   : > { %7189 = vmatprep.subr.bf16.mxu1 %v10031_v55 }
 0xf7b   : > { %7180 = vmatmul.mubr.msk.bf16.vlgmr.msra.gmra.mxu1 %vm1410_vm3, %v6522_v53 }
 0xf7c   : > { %7190 = vmatpush3.bf16.msra.mxu1 %v5067_v50  ;;  %7191 = vmatprep.mubr.msk.bf16.mxu1 %vm7878_vm0, %v10031_v55 }
 0xf7d   : > { %7201 = vmatprep.subr.bf16.mxu1 %v10031_v55 }
 0xf83   : > { %7192 = vmatmul.mubr.msk.bf16.vlgmr.msra.gmra.mxu1 %vm1410_vm3, %v6528_v14 }
 0xf84   : > { %7203 = vmatprep.mubr.msk.bf16.mxu1 %vm7878_vm0, %v10031_v55 }
 0xff5   : > { %v4721_v16 = vpop.f32.mrf.mxu0 }
 0xff7   : > { %v7145_v61 = vpop.f32.mrf.mxu0 }
 0xff9   : > { %v4724_v21 = vpop.f32.mrf.mxu0 }
 0xffb   : > { %v7146_v17 = vpop.f32.mrf.mxu0 }
 0xffd   : > { %v4771_v48 = vpop.f32.mrf.mxu0 }
 0xfff   : > { %v7151_v24 = vpop.f32.mrf.mxu0 }
0x1001   : > { %v4774_v25 = vpop.f32.mrf.mxu0 }
0x1003   : > { %v7152_v23 = vpop.f32.mrf.mxu0 }
0x1015   : > { %v4821_v58 = vpop.f32.mrf.mxu0 }
0x1017   : > { %v7157_v38 = vpop.f32.mrf.mxu0 }
0x1019   : > { %v4824_v15 = vpop.f32.mrf.mxu0 }
0x101b   : > { %v7158_v11 = vpop.f32.mrf.mxu0 }
0x101d   : > { %v4871_v53 = vpop.f32.mrf.mxu0 }
0x101f   : > { %v7163_v50 = vpop.f32.mrf.mxu0 }
0x1021   : > { %v4874_v56 = vpop.f32.mrf.mxu0 }
0x1023   : > { %v7164_v43 = vpop.f32.mrf.mxu0 }
0x1025   : > { %v4965_v14 = vpop.f32.mrf.mxu0 }
0x1026   : > { %v4966_v38 = vadd.f32 %v4965_v14, %v4721_v16 }
0x1027   : > { %v7175_v41 = vpop.f32.mrf.mxu0 }
0x1029   : > { %v4968_v12 = vpop.f32.mrf.mxu0 }
0x102b   : > { %v7176_v39 = vpop.f32.mrf.mxu0 }
0x102d   : > { %v5057_v33 = vpop.f32.mrf.mxu0 }
0x102e   : > { %v5058_v47 = vadd.f32 %v5057_v33, %v4821_v58 }
0x102f   : > { %v7187_v61 = vpop.f32.mrf.mxu0 }
0x1031   : > { %v5060_v21 = vpop.f32.mrf.mxu0 }
0x1033   : > { %v4919_v17 = vpop.f32.mrf.mxu1  ;;  %v7188_v32 = vpop.f32.mrf.mxu0 }
0x1034   : > { %v5120_v32 = vpop.permute.xlu0 %5119 }
0x1035   : > { %v7169_v24 = vpop.f32.mrf.mxu1 }
0x1037   : > { %v4922_v25 = vpop.f32.mrf.mxu1 }
0x1038   : > { %v5126_v25 = vpop.permute.xlu1 %5125 }
0x1039   : > { %v7170_v23 = vpop.f32.mrf.mxu1 }
0x103b   : > { %v5011_v30 = vpop.f32.mrf.mxu1 }
0x103c   : > { %v5012_v15 = vadd.f32 %v5011_v30, %v4771_v48  ;;  %v7499_v48 = vld [vmem:[%s9818_s10 + $0x20] sm:$0xff]  }
0x103d   : > { %v7181_v11 = vpop.f32.mrf.mxu1 }
0x103e   : > { %v5109_v29 = vadd.f32 %v5012_v15, %v4966_v38 }
0x103f   : > { %v5014_v50 = vpop.f32.mrf.mxu1 }
0x1041   : > { %v7182_v56 = vpop.f32.mrf.mxu1 }
0x1043   : > { %v5103_v43 = vpop.f32.mrf.mxu1 }
0x1044   : > { %v5104_v41 = vadd.f32 %v5103_v43, %v4871_v53 }
0x1045   : > { %v7193_v12 = vpop.f32.mrf.mxu1 }
0x1046   : > { %v5110_v39 = vadd.f32 %v5104_v41, %v5058_v47  ;;  %v7500_v12 = vld [vmem:[#allocation10] sm:$0xff]  }
0x1047   : > { %v5106_v51 = vpop.f32.mrf.mxu1 }
0x1048   : > { %v5111_v61 = vadd.f32 %v5110_v39, %v5109_v29  ;;  %v5193_v51 = vpop.permute.xlu0 %5192  ;;  %v5198_v29 = vpop.permute.xlu1 %5197 }
0x1049   : > { %v7194_v21 = vpop.f32.mrf.mxu1 }
0x104a   : > { %v5112_v45 = vadd.f32 %v5111_v61, %v4919_v17 }
0x104c   : > { %v5122_v24 = vmul.f32 %v5120_v32, %v5112_v45  ;;  %v5205_v14 = vpop.permute.xlu0 %5204  ;;  %v5210_v11 = vpop.permute.xlu1 %5209 }
0x104e   : > { %v5128_v23 = vadd.f32 %v5126_v25, %v5122_v24 }
0x1050   : > { %v5129_v19 = vmax.f32 %v5128_v23, 0.0 }
0x1052   : > { %v5133_v16 = vpack.c.bf16 %v5129_v19, %v5129_v19 }
0x1054   : > { %v5143_v30 = vsel %vm1414_vm2, %v5133_v16, 0 }
0x1055   : > { %7196 = vmatpush3.bf16.msra.mxu0 %v5143_v30 }
0x1056   : > { %7207 = vmatprep.subr.bf16.mxu0 %v10031_v55 }
0x1058   : > { %7198 = vmatmul.mubr.msk.bf16.vlgmr.msra.gmra.mxu0 %vm1410_vm3, %v7499_v48 }
0x1059   : > { %7209 = vmatprep.mubr.msk.bf16.mxu0 %vm7878_vm0, %v10031_v55 }
0x1118   : > { %v5179_v45 = vpop.f32.mrf.mxu0 }
0x1119   : > { %v5180_v47 = vadd.f32 %v5179_v45, %v9324_v26  ;;  %v5275_v26 = vpop.permute.xlu0 %5274 }
0x111a   : > { %v7199_v19 = vpop.f32.mrf.mxu0 }
0x111b   : > { %v5200_v33 = vmul.f32 %v5193_v51, %v5180_v47 }
0x111c   : > { %v5182_v58 = vpop.f32.mrf.mxu0 }
0x111d   : > { %v5183_v53 = vadd.f32 %v5182_v58, %v9328_v35  ;;  %v5212_v38 = vadd.f32 %v5205_v14, %v5200_v33  ;;  %v5280_v35 = vpop.permute.xlu1 %5279  ;;  %v5287_v32 = vpop.permute.xlu0 %5286 }
0x111e   : > { %v7200_v17 = vpop.f32.mrf.mxu0 }
0x111f   : > { %v5201_v15 = vmul.f32 %v5198_v29, %v5183_v53  ;;  %v5214_v56 = vmax.f32 %v5212_v38, 0.0  ;;  %v7501_v29 = vld [vmem:[%s9824_s16] sm:$0xff]  }
0x1120   : > { %v10139_v53 = vld [vmem:[#allocation22_spill] sm:$0xff] }
0x1121   : > { %v5213_v50 = vadd.f32 %v5210_v11, %v5201_v15  ;;  %v5292_v16 = vpop.permute.xlu1 %5291  ;;  %v3547_v14 = vadd.f32 %v9186_v28, %v10139_v53  ;;  %v10140_v28 = vld [vmem:[#allocation46_spill] sm:$0xff]  ;;  %v10178_v53 = vld [vmem:[#allocation57_spill] sm:$0xff] }
0x1123   : > { %v5215_v43 = vmax.f32 %v5213_v50, 0.0 }
0x1125   : > { %v5218_v41 = vpack.c.bf16 %v5215_v43, %v5214_v56  ;;  %v5378_v58 = vpop.permute.xlu1 %5377 }
0x1127   : > { %7202 = vmatpush3.bf16.msra.mxu1 %v5218_v41 }
0x1128   : > { %7213 = vmatprep.subr.bf16.mxu1 %v10031_v55 }
0x1129   : > { %v5390_v43 = vpop.permute.xlu1 %5389 }
0x112a   : > { %7204 = vmatmul.mubr.msk.bf16.vlgmr.msra.gmra.mxu1 %vm686_vm1, %v7500_v12 }
0x112b   : > { %7215 = vmatprep.mubr.msk.bf16.mxu1 %vm7878_vm0, %v10031_v55 }
0x11ea   : > { %v5261_v39 = vpop.f32.mrf.mxu1 }
0x11eb   : > { %v5282_v61 = vmul.f32 %v5275_v26, %v5261_v39 }
0x11ec   : > { %v7205_v21 = vpop.f32.mrf.mxu1 }
0x11ed   : > { %v5294_v25 = vadd.f32 %v5287_v32, %v5282_v61  ;;  %v10145_v61 = vld [vmem:[#allocation51_spill] sm:$0xff]  ;;  %v10146_v21 = vld [vmem:[#allocation52_spill] sm:$0xff]  ;;  %v10147_v32 = vld [vmem:[#allocation53_spill] sm:$0xff] }
0x11ee   : > { %v5264_v24 = vpop.f32.mrf.mxu1 }
0x11ef   : > { %v5283_v23 = vmul.f32 %v5280_v35, %v5264_v24  ;;  %v5296_v51 = vmax.f32 %v5294_v25, 0.0  ;;  %v5397_v35 = vld [vmem:[#allocation4 + $0xa] sm:$0x3]  ;;  %v10149_v25 = vld [vmem:[#allocation17_spill] sm:$0xff] }
0x11f0   : > { %v7206_v30 = vpop.f32.mrf.mxu1  ;;  %v10148_v24 = vld [vmem:[#allocation54_spill] sm:$0xff] }
0x11f1   : > { %v5295_v48 = vadd.f32 %v5292_v16, %v5283_v23  ;;  %v10150_v23 = vld [vmem:[#allocation18_spill] sm:$0xff]  ;;  %v10151_v16 = vld [vmem:[#allocation19_spill] sm:$0xff]  ;;  %v10152_v30 = vld [vmem:[#allocation20_spill] sm:$0xff] }
0x11f3   : > { %v5297_v45 = vmax.f32 %v5295_v48, 0.0  ;;  %v10153_v48 = vld [vmem:[#allocation23_spill] sm:$0xff] }
0x11f5   : > { %v5300_v47 = vpack.c.bf16 %v5297_v45, %v5296_v51  ;;  %v10154_v51 = vld [vmem:[#allocation24_spill] sm:$0xff]  ;;  %v10155_v45 = vld [vmem:[#allocation25_spill] sm:$0xff] }
0x11f7   : > { %7208 = vmatpush3.bf16.msra.mxu0 %v5300_v47  ;;  %v10156_v47 = vld [vmem:[#allocation26_spill] sm:$0xff] }
0x11f8   : > { %5460 = vmatprep.subr.bf16.mxu0 %v9270_v52 }
0x11fa   : > { %7210 = vmatmul.mubr.msk.bf16.vlgmr.msra.gmra.mxu0 %vm686_vm1, %v7501_v29  ;;  %v10157_v29 = vld [vmem:[#allocation27_spill] sm:$0xff] }
0x11fb   : > { %5461 = vmatpush1.bf16.msra.mxu0 %v9274_v4  ;;  %5492 = vmatprep.mubr.bf16.mxu0 %v10000_v59 }
0x11fc   : > { %5462 = vmatprep.subr.bf16.mxu0 %v9278_v63 }
0x11ff   : > { %5463 = vmatpush1.bf16.msra.mxu0 %v9281_v3 }
0x1200   : > { %5464 = vmatprep.subr.bf16.mxu0 %v9284_v8 }
0x1203   : > { %5465 = vmatpush1.bf16.msra.mxu0 %v9287_v36 }
0x1204   : > { %5466 = vmatprep.subr.bf16.mxu0 %v9290_v40 }
0x1207   : > { %5467 = vmatpush1.bf16.msra.mxu0 %v9293_v6 }
0x1208   : > { %5468 = vmatprep.subr.bf16.mxu0 %v9296_v20 }
0x120b   : > { %5469 = vmatpush1.bf16.msra.mxu0 %v9299_v54 }
0x120c   : > { %5470 = vmatprep.subr.bf16.mxu0 %v9302_v60 }
0x120f   : > { %5471 = vmatpush1.bf16.msra.mxu0 %v9305_v9 }
0x1210   : > { %5472 = vmatprep.subr.bf16.mxu0 %v9308_v13 }
0x1213   : > { %5473 = vmatpush1.bf16.msra.mxu0 %v9311_v44  ;;  %v10138_v44 = vld [vmem:[#allocation21_spill] sm:$0xff] }
0x1214   : > { %5474 = vmatprep.subr.bf16.mxu0 %v9314_v18  ;;  %v3544_v18 = vadd.f32 %v9184_v0, %v10138_v44  ;;  %v10172_v44 = vld [vmem:[#allocation42_spill] sm:$0xff] }
0x1217   : > { %5475 = vmatpush1.bf16.msra.mxu0 %v9317_v7 }
0x1218   : > { %5542 = vmatprep.subr.bf16.mxu0 %v9320_v5  ;;  %v5373_v5 = vpop.permute.xlu0 %5372 }
0x121c   : > { %v5385_v11 = vpop.permute.xlu0 %5384 }
0x12ba   : > { %v5343_v52 = vpop.f32.mrf.mxu0 }
0x12bb   : > { %v5350_v4 = vsub.f32 0.0, %v5343_v52  ;;  %v10159_v52 = vld [vmem:[#allocation29_spill] sm:$0xff] }
0x12bc   : > { %v7211_v63 = vpop.f32.mrf.mxu0 }
0x12bd   : > { %v5352_v3 = vmul.f32 1.442695, %v5350_v4  ;;  %v10160_v4 = vld [vmem:[#allocation30_spill] sm:$0xff]  ;;  %v10161_v63 = vld [vmem:[#allocation31_spill] sm:$0xff] }
0x12be   : > { %v5346_v8 = vpop.f32.mrf.mxu0 }
0x12bf   : > { %7503 = vpow2.f32 %v5352_v3  ;;  %v5351_v36 = vsub.f32 0.0, %v5346_v8  ;;  %v10162_v3 = vld [vmem:[#allocation32_spill] sm:$0xff]  ;;  %v10163_v8 = vld [vmem:[#allocation33_spill] sm:$0xff] }
0x12c0   : > { %v7212_v40 = vpop.f32.mrf.mxu0 }
0x12c1   : > { %v5354_v6 = vmul.f32 1.442695, %v5351_v36  ;;  %v10164_v36 = vld [vmem:[#allocation34_spill] sm:$0xff]  ;;  %v10165_v40 = vld [vmem:[#allocation35_spill] sm:$0xff] }
0x12c3   : > { %7505 = vpow2.f32 %v5354_v6  ;;  %v10166_v6 = vld [vmem:[#allocation36_spill] sm:$0xff] }
0x12cc   : > { %v7504_v20 = vpop.eup %7503 }
0x12cd   : > { %v5356_v54 = vadd.f32 1.0, %v7504_v20  ;;  %v10167_v20 = vld [vmem:[#allocation37_spill] sm:$0xff] }
0x12cf   : > { %7507 = vrcp.f32 %v5356_v54  ;;  %v10168_v54 = vld [vmem:[#allocation38_spill] sm:$0xff] }
0x12d0   : > { %v7506_v60 = vpop.eup %7505 }
0x12d1   : > { %v5357_v9 = vadd.f32 1.0, %v7506_v60  ;;  %v10169_v60 = vld [vmem:[#allocation39_spill] sm:$0xff] }
0x12d3   : > { %7509 = vrcp.f32 %v5357_v9  ;;  %v10170_v9 = vld [vmem:[#allocation40_spill] sm:$0xff] }
0x12dc   : > { %v7508_v13 = vpop.eup %7507 }
0x12dd   : > { %v5360_v7 = vadd.f32 1.0, %v7508_v13  ;;  %v10171_v13 = vld [vmem:[#allocation41_spill] sm:$0xff] }
0x12df   : > { %v9637_v19 = vmul.f32 %v5360_v7, %v3544_v18  ;;  %v10173_v18 = vld [vmem:[#allocation43_spill] sm:$0xff]  ;;  %v10174_v7 = vld [vmem:[#allocation44_spill] sm:$0xff] }
0x12e0   : > { %v7510_v33 = vpop.eup %7509 }
0x12e1   : > { %v5361_v17 = vadd.f32 1.0, %v7510_v33  ;;  %v5380_v38 = vmul.f32 %v5373_v5, %v9637_v19  ;;  %v10175_v5 = vld [vmem:[#allocation45_spill] sm:$0xff]  ;;  %v10176_v33 = vld [vmem:[#allocation55_spill] sm:$0xff] }
0x12e3   : > { %v9642_v15 = vmul.f32 %v5361_v17, %v3547_v14  ;;  %v5392_v56 = vadd.f32 %v5385_v11, %v5380_v38  ;;  %v10179_v14 = vld [vmem:[#allocation58_spill] sm:$0xff]  ;;  %v10180_v17 = vld [vmem:[#allocation59_spill] sm:$0xff]  ;;  %v10181_v38 = vld [vmem:[#allocation60_spill] sm:$0xff] }
0x12e5   : > { %v5381_v50 = vmul.f32 %v5378_v58, %v9642_v15  ;;  %v5394_v41 = vmax.f32 %v5392_v56, 0.0  ;;  %v10177_v58 = vld [vmem:[#allocation56_spill] sm:$0xff] }
0x12e7   : > { %v5393_v0 = vadd.f32 %v5390_v43, %v5381_v50 }
0x12e9   : > { %v5395_v12 = vmax.f32 %v5393_v0, 0.0 }
0x12eb   : > { %v5398_v26 = vpack.c.bf16 %v5395_v12, %v5394_v41 }
0x12ed   : > { %7214 = vmatpush3.bf16.msra.mxu1 %v5398_v26 }
0x12ee   : > { %5501 = vmatprep.subr.bf16.mxu1 %v9331_v27  ;;  %v10141_v27 = vld [vmem:[#allocation47_spill] sm:$0xff] }
0x12f0   : > { %7216 = vmatmul.mubr.msk.bf16.vlgmr.msra.gmra.mxu1 %vm686_vm1, %v5397_v35 }
0x12f1   : > { %5502 = vmatpush1.bf16.msra.mxu1 %v9335_v2  ;;  %5533 = vmatprep.mubr.bf16.mxu1 %v10000_v59  ;;  %v10142_v2 = vld [vmem:[#allocation48_spill] sm:$0xff] }
0x12f2   : > { %5503 = vmatprep.subr.bf16.mxu1 %v9339_v34  ;;  %v10143_v34 = vld [vmem:[#allocation49_spill] sm:$0xff] }
0x12f5   : > { %5504 = vmatpush1.bf16.msra.mxu1 %v9342_v46  ;;  %v5449_v46 = vpop.permute.xlu0 %5448 }
0x12f6   : > { %5505 = vmatprep.subr.bf16.mxu1 %v9345_v57 }
0x12f9   : > { %5506 = vmatpush1.bf16.msra.mxu1 %v9348_v49 }
0x12fa   : > { %5507 = vmatprep.subr.bf16.mxu1 %v9351_v1  ;;  %v5455_v1 = vpop.permute.xlu1 %5454 }
0x12fd   : > { %5508 = vmatpush1.bf16.msra.mxu1 %v9354_v31 }
0x12fe   : > { %5509 = vmatprep.subr.bf16.mxu1 %v9357_v37 }
0x1301   : > { %5510 = vmatpush1.bf16.msra.mxu1 %v9360_v10 }
0x1302   : > { %5511 = vmatprep.subr.bf16.mxu1 %v9363_v62 }
0x1305   : > { %5512 = vmatpush1.bf16.msra.mxu1 %v9366_v22 }
0x1306   : > { %5513 = vmatprep.subr.bf16.mxu1 %v9369_v42  ;;  %v10144_v42 = vld [vmem:[#allocation50_spill] sm:$0xff] }
0x1309   : > { %5514 = vmatpush1.bf16.msra.mxu1 %v10140_v28 }
0x130a   : > { %5515 = vmatprep.subr.bf16.mxu1 %v10141_v27 }
0x130d   : > { %5516 = vmatpush1.bf16.msra.mxu1 %v10142_v2  ;;  %v6554_v2 = vld [vmem:[%s9815_s7 + $0x5c] sm:$0x3] }
0x130e   : > { %5583 = vmatprep.subr.bf16.mxu1 %v10143_v34 }
0x13b0   : > { %v5436_v57 = vpop.f32.mrf.mxu1 }
0x13b1   : > { %v5451_v49 = vmul.f32 %v5449_v46, %v5436_v57  ;;  %v6557_v46 = vld [vmem:[%s9815_s7 + $0x60] sm:$0x3] }
0x13b2   : > { %v7217_v31 = vpop.f32.mrf.mxu1 }
0x13b3   : > { %v5457_v37 = vadd.f32 %v5455_v1, %v5451_v49 }
0x13b4   : > { %v5439_v10 = vpop.f32.mrf.mxu1 }
0x13b5   : > { %v5458_v62 = vmax.f32 %v5457_v37, 0.0 }
0x13b6   : > { %v7218_v39 = vpop.f32.mrf.mxu1 }
0x13b7   : > { %v5459_v22 = vpack.c.bf16 %v5458_v62, %v5458_v62 }
0x13b9   : > { %5493 = vmatmul.mubr.bf16.vlgmr.msra.gmra.mxu0 %v5459_v22  ;;  %5534 = vmatmul.mubr.bf16.vlgmr.msra.gmra.mxu1 %v5459_v22 }
0x13ba   : > { %5543 = vmatpush1.bf16.msra.mxu0 %v10144_v42  ;;  %5584 = vmatpush1.bf16.msra.mxu1 %v10145_v61 }
0x13bb   : > { %5544 = vmatprep.subr.bf16.mxu0 %v10146_v21  ;;  %5585 = vmatprep.subr.bf16.mxu1 %v10147_v32  ;;  %v6560_v21 = vld [vmem:[%s9815_s7 + $0x64] sm:$0x3] }
0x13bc   : > { %5574 = vmatprep.mubr.bf16.mxu0 %v10000_v59  ;;  %5615 = vmatprep.mubr.bf16.mxu1 %v10000_v59  ;;  %v10158_v59 = vld [vmem:[#allocation28_spill] sm:$0xff] }
0x13be   : > { %5545 = vmatpush1.bf16.msra.mxu0 %v10148_v24  ;;  %5586 = vmatpush1.bf16.msra.mxu1 %v10149_v25  ;;  %v6563_v25 = vld [vmem:[%s9815_s7 + $0x68] sm:$0x3] }
0x13bf   : > { %5546 = vmatprep.subr.bf16.mxu0 %v10150_v23  ;;  %5587 = vmatprep.subr.bf16.mxu1 %v10151_v16 }
0x13c2   : > { %5547 = vmatpush1.bf16.msra.mxu0 %v10152_v30  ;;  %5588 = vmatpush1.bf16.msra.mxu1 %v10153_v48  ;;  %v6553_v30 = vld [vmem:[%s9815_s7 + $0x5a] sm:$0x3] }
0x13c3   : > { %5548 = vmatprep.subr.bf16.mxu0 %v10154_v51  ;;  %5589 = vmatprep.subr.bf16.mxu1 %v10155_v45  ;;  %v6559_v51 = vld [vmem:[%s9815_s7 + $0x62] sm:$0x3] }
0x13c6   : > { %5549 = vmatpush1.bf16.msra.mxu0 %v10156_v47  ;;  %5590 = vmatpush1.bf16.msra.mxu1 %v10157_v29 }
0x13c7   : > { %5550 = vmatprep.subr.bf16.mxu0 %v10158_v59  ;;  %5591 = vmatprep.subr.bf16.mxu1 %v10159_v52 }
0x13ca   : > { %5551 = vmatpush1.bf16.msra.mxu0 %v10160_v4  ;;  %5592 = vmatpush1.bf16.msra.mxu1 %v10161_v63  ;;  %v6565_v63 = vld [vmem:[%s9815_s7 + $0x6a] sm:$0x3] }
0x13cb   : > { %5552 = vmatprep.subr.bf16.mxu0 %v10162_v3  ;;  %5593 = vmatprep.subr.bf16.mxu1 %v10163_v8 }
0x13ce   : > { %5553 = vmatpush1.bf16.msra.mxu0 %v10164_v36  ;;  %5594 = vmatpush1.bf16.msra.mxu1 %v10165_v40  ;;  %v6556_v40 = vld [vmem:[%s9815_s7 + $0x5e] sm:$0x3] }
0x13cf   : > { %5554 = vmatprep.subr.bf16.mxu0 %v10166_v6  ;;  %5595 = vmatprep.subr.bf16.mxu1 %v10167_v20  ;;  %v6562_v20 = vld [vmem:[%s9815_s7 + $0x66] sm:$0x3] }
0x13d2   : > { %5555 = vmatpush1.bf16.msra.mxu0 %v10168_v54  ;;  %5596 = vmatpush1.bf16.msra.mxu1 %v10169_v60 }
0x13d3   : > { %5556 = vmatprep.subr.bf16.mxu0 %v10170_v9  ;;  %5597 = vmatprep.subr.bf16.mxu1 %v10171_v13 }
0x13d6   : > { %5557 = vmatpush1.bf16.msra.mxu0 %v10172_v44  ;;  %5598 = vmatpush1.bf16.msra.mxu1 %v10173_v18 }
0x13d7   : > { %7219 = vmatprep.subr.bf16.mxu0 %v10031_v55  ;;  %7239 = vmatprep.subr.bf16.mxu1 %v10031_v55 }
0x13d9   : > { %5575 = vmatmul.mubr.bf16.vlgmr.msra.gmra.mxu0 %v5459_v22  ;;  %5616 = vmatmul.mubr.bf16.vlgmr.msra.gmra.mxu1 %v5459_v22 }
0x13da   : > { %7220 = vmatpush3.bf16.msra.mxu0 %v10174_v7  ;;  %7235 = vmatprep.mubr.msk.bf16.mxu0 %vm7878_vm0, %v10031_v55 }
0x13db   : > { %7221 = vmatprep.subr.bf16.mxu0 %v10031_v55  ;;  %7241 = vmatprep.mubr.msk.bf16.mxu1 %vm7878_vm0, %v10031_v55 }
0x13de   : > { %7222 = vmatpush3.bf16.msra.mxu0 %v10175_v5 }
0x13df   : > { %7223 = vmatprep.subr.bf16.mxu0 %v10031_v55 }
0x13e2   : > { %7224 = vmatpush3.bf16.msra.mxu0 %v10176_v33 }
0x13e3   : > { %7225 = vmatprep.subr.bf16.mxu0 %v10031_v55 }
0x13e6   : > { %7226 = vmatpush3.bf16.msra.mxu0 %v10177_v58 }
0x13e7   : > { %7227 = vmatprep.subr.bf16.mxu0 %v10031_v55 }
0x13ea   : > { %7228 = vmatpush3.bf16.msra.mxu0 %v10178_v53 }
0x13eb   : > { %7229 = vmatprep.subr.bf16.mxu0 %v10031_v55 }
0x13ee   : > { %7230 = vmatpush3.bf16.msra.mxu0 %v10179_v14 }
0x13ef   : > { %7231 = vmatprep.subr.bf16.mxu0 %v10031_v55 }
0x13f2   : > { %7232 = vmatpush3.bf16.msra.mxu0 %v10180_v17 }
0x13f3   : > { %7233 = vmatprep.subr.bf16.mxu0 %v10031_v55 }
0x13f6   : > { %7234 = vmatpush3.bf16.msra.mxu0 %v10181_v38 }
0x13f7   : > { %7263 = vmatprep.subr.bf16.mxu0 %v10031_v55 }
0x13f9   : > { %7236 = vmatmul.mubr.bf16.vlgmr.msra.gmra.mxu0 %v5459_v22 }
0x13fa   : > { %7265 = vmatprep.mubr.msk.bf16.mxu0 %vm7878_vm0, %v10031_v55 }
0x1479   : > { %v5494_v11 = vpop.f32.mrf.mxu0  ;;  %v9720_v50 = vpop.f32.mrf.mxu1 }
0x147a   : > { %v5664_v24 = vpack.c.bf16 %v5494_v11, %v5494_v11  ;;  %v5666_v59 = vpack.c.bf16 %v9720_v50, %v9720_v50 }
0x147b   : > { %v5496_v56 = vpop.f32.mrf.mxu0  ;;  %v5537_v43 = vpop.f32.mrf.mxu1 }
0x147c   : > { %v5665_v0 = vpack.c.bf16 %v5496_v56, %v5496_v56  ;;  %v5667_v35 = vpack.c.bf16 %v5537_v43, %v5537_v43  ;;  %v5925_v23 = vsel %vm1414_vm2, %v5664_v24, 0  ;;  %v5971_v8 = vsel %vm1414_vm2, %v5666_v59, 0 }
0x147d   : > { %v5498_v41 = vpop.f32.mrf.mxu0  ;;  %v5539_v12 = vpop.f32.mrf.mxu1 }
0x147e   : > { %v5681_v26 = vsel %vm1414_vm2, %v5665_v0, 0  ;;  %v5731_v34 = vsel %vm1414_vm2, %v5667_v35, 0 }
0x147f   : > { %v5499_v28 = vpop.f32.mrf.mxu0  ;;  %v5540_v27 = vpop.f32.mrf.mxu1  ;;  %7240 = vmatpush3.bf16.msra.mxu1 %v5681_v26 }
0x1480   : > { %7245 = vmatprep.subr.bf16.mxu1 %v10031_v55 }
0x1482   : > { %7242 = vmatmul.mubr.msk.bf16.vlgmr.msra.gmra.mxu1 %vm1410_vm3, %v6554_v2 }
0x1483   : > { %7246 = vmatpush3.bf16.msra.mxu1 %v5731_v34  ;;  %7247 = vmatprep.mubr.msk.bf16.mxu1 %vm7878_vm0, %v10031_v55 }
0x1484   : > { %7251 = vmatprep.subr.bf16.mxu1 %v10031_v55 }
0x148a   : > { %7248 = vmatmul.mubr.msk.bf16.vlgmr.msra.gmra.mxu1 %vm1410_vm3, %v6557_v46 }
0x148b   : > { %7253 = vmatprep.mubr.msk.bf16.mxu1 %vm7878_vm0, %v10031_v55 }
0x1499   : > { %v5576_v57 = vpop.f32.mrf.mxu0  ;;  %v5617_v49 = vpop.f32.mrf.mxu1 }
0x149a   : > { %v5668_v16 = vpack.c.bf16 %v5576_v57, %v5576_v57  ;;  %v5670_v36 = vpack.c.bf16 %v5617_v49, %v5617_v49 }
0x149b   : > { %v5578_v1 = vpop.f32.mrf.mxu0  ;;  %v5619_v31 = vpop.f32.mrf.mxu1 }
0x149c   : > { %v5669_v37 = vpack.c.bf16 %v5578_v1, %v5578_v1  ;;  %v5671_v22 = vpack.c.bf16 %v5619_v31, %v5619_v31  ;;  %v6017_v48 = vsel %vm1414_vm2, %v5668_v16, 0  ;;  %v6063_v6 = vsel %vm1414_vm2, %v5670_v36, 0 }
0x149d   : > { %v5580_v10 = vpop.f32.mrf.mxu0  ;;  %v5621_v62 = vpop.f32.mrf.mxu1 }
0x149e   : > { %v5781_v39 = vsel %vm1414_vm2, %v5669_v37, 0  ;;  %v5831_v32 = vsel %vm1414_vm2, %v5671_v22, 0 }
0x149f   : > { %v5581_v42 = vpop.f32.mrf.mxu0  ;;  %v5622_v61 = vpop.f32.mrf.mxu1  ;;  %7252 = vmatpush3.bf16.msra.mxu1 %v5781_v39 }
0x14a0   : > { %7257 = vmatprep.subr.bf16.mxu1 %v10031_v55 }
0x14a2   : > { %7254 = vmatmul.mubr.msk.bf16.vlgmr.msra.gmra.mxu1 %vm1410_vm3, %v6560_v21 }
0x14a3   : > { %7258 = vmatpush3.bf16.msra.mxu1 %v5831_v32  ;;  %7259 = vmatprep.mubr.msk.bf16.mxu1 %vm7878_vm0, %v10031_v55 }
0x14a4   : > { %7269 = vmatprep.subr.bf16.mxu1 %v10031_v55 }
0x14aa   : > { %7260 = vmatmul.mubr.msk.bf16.vlgmr.msra.gmra.mxu1 %vm1410_vm3, %v6563_v25 }
0x14ab   : > { %7270 = vmatpush3.bf16.msra.mxu1 %v5925_v23  ;;  %7271 = vmatprep.mubr.msk.bf16.mxu1 %vm7878_vm0, %v10031_v55  ;;  %v6116_v23 = vpop.permute.xlu0 %6115 }
0x14ac   : > { %7281 = vmatprep.subr.bf16.mxu1 %v10031_v55 }
0x14b2   : > { %7272 = vmatmul.mubr.msk.bf16.vlgmr.msra.gmra.mxu1 %vm1410_vm3, %v6553_v30  ;;  %v6122_v30 = vpop.permute.xlu1 %6121 }
0x14b3   : > { %7282 = vmatpush3.bf16.msra.mxu1 %v6017_v48  ;;  %7283 = vmatprep.mubr.msk.bf16.mxu1 %vm7878_vm0, %v10031_v55 }
0x14b4   : > { %7293 = vmatprep.subr.bf16.mxu1 %v10031_v55 }
0x14b9   : > { %v5658_v45 = vpop.f32.mrf.mxu0 }
0x14ba   : > { %v5672_v47 = vpack.c.bf16 %v5658_v45, %v5658_v45  ;;  %7284 = vmatmul.mubr.msk.bf16.vlgmr.msra.gmra.mxu1 %vm1410_vm3, %v6559_v51 }
0x14bb   : > { %v7237_v29 = vpop.f32.mrf.mxu0  ;;  %7295 = vmatprep.mubr.msk.bf16.mxu1 %vm7878_vm0, %v10031_v55 }
0x14bc   : > { %v5879_v52 = vsel %vm1414_vm2, %v5672_v47, 0  ;;  %v7502_v29 = vld [vmem:[%s9818_s10 + $0x28] sm:$0xff]  }
0x14bd   : > { %v5661_v4 = vpop.f32.mrf.mxu0  ;;  %7264 = vmatpush3.bf16.msra.mxu0 %v5879_v52 }
0x14be   : > { %7275 = vmatprep.subr.bf16.mxu0 %v10031_v55 }
0x14bf   : > { %v7238_v3 = vpop.f32.mrf.mxu0 }
0x14c0   : > { %7266 = vmatmul.mubr.msk.bf16.vlgmr.msra.gmra.mxu0 %vm1410_vm3, %v6565_v63 }
0x14c1   : > { %7276 = vmatpush3.bf16.msra.mxu0 %v5971_v8  ;;  %7277 = vmatprep.mubr.msk.bf16.mxu0 %vm7878_vm0, %v10031_v55 }
0x14c2   : > { %7287 = vmatprep.subr.bf16.mxu0 %v10031_v55 }
0x14c8   : > { %7278 = vmatmul.mubr.msk.bf16.vlgmr.msra.gmra.mxu0 %vm1410_vm3, %v6556_v40 }
0x14c9   : > { %7288 = vmatpush3.bf16.msra.mxu0 %v6063_v6  ;;  %7289 = vmatprep.mubr.msk.bf16.mxu0 %vm7878_vm0, %v10031_v55 }
0x14d0   : > { %7290 = vmatmul.mubr.msk.bf16.vlgmr.msra.gmra.mxu0 %vm1410_vm3, %v6562_v20 }
0x1542   : > { %v5717_v54 = vpop.f32.mrf.mxu1 }
0x1544   : > { %v7243_v60 = vpop.f32.mrf.mxu1 }
0x1546   : > { %v5720_v9 = vpop.f32.mrf.mxu1 }
0x1548   : > { %v7244_v13 = vpop.f32.mrf.mxu1 }
0x154a   : > { %v5767_v44 = vpop.f32.mrf.mxu1 }
0x154c   : > { %v7249_v18 = vpop.f32.mrf.mxu1 }
0x154e   : > { %v5770_v7 = vpop.f32.mrf.mxu1 }
0x1550   : > { %v7250_v5 = vpop.f32.mrf.mxu1 }
0x1562   : > { %v5817_v33 = vpop.f32.mrf.mxu1 }
0x1564   : > { %v7255_v58 = vpop.f32.mrf.mxu1 }
0x1566   : > { %v5820_v53 = vpop.f32.mrf.mxu1 }
0x1568   : > { %v7256_v14 = vpop.f32.mrf.mxu1 }
0x156a   : > { %v5867_v17 = vpop.f32.mrf.mxu1 }
0x156c   : > { %v7261_v55 = vpop.f32.mrf.mxu1 }
0x156e   : > { %v5870_v38 = vpop.f32.mrf.mxu1 }
0x1570   : > { %v7262_v11 = vpop.f32.mrf.mxu1 }
0x1572   : > { %v5961_v50 = vpop.f32.mrf.mxu1 }
0x1573   : > { %v5962_v57 = vadd.f32 %v5961_v50, %v5717_v54 }
0x1574   : > { %v7273_v56 = vpop.f32.mrf.mxu1 }
0x1576   : > { %v5964_v43 = vpop.f32.mrf.mxu1 }
0x1578   : > { %v7274_v0 = vpop.f32.mrf.mxu1 }
0x157a   : > { %v6053_v41 = vpop.f32.mrf.mxu1 }
0x157b   : > { %v6054_v39 = vadd.f32 %v6053_v41, %v5817_v33 }
0x157c   : > { %v7285_v12 = vpop.f32.mrf.mxu1 }
0x157e   : > { %v6056_v26 = vpop.f32.mrf.mxu1 }
0x1580   : > { %v5915_v35 = vpop.f32.mrf.mxu0  ;;  %v7286_v28 = vpop.f32.mrf.mxu1 }
0x1582   : > { %v7267_v27 = vpop.f32.mrf.mxu0 }
0x1584   : > { %v5918_v2 = vpop.f32.mrf.mxu0 }
0x1586   : > { %v7268_v34 = vpop.f32.mrf.mxu0 }
0x1588   : > { %v6007_v46 = vpop.f32.mrf.mxu0 }
0x1589   : > { %v6008_v49 = vadd.f32 %v6007_v46, %v5767_v44 }
0x158a   : > { %v7279_v1 = vpop.f32.mrf.mxu0 }
0x158b   : > { %v6105_v31 = vadd.f32 %v6008_v49, %v5962_v57 }
0x158c   : > { %v6010_v37 = vpop.f32.mrf.mxu0 }
0x158e   : > { %v7280_v10 = vpop.f32.mrf.mxu0 }
0x1590   : > { %v6099_v62 = vpop.f32.mrf.mxu0 }
0x1591   : > { %v6100_v22 = vadd.f32 %v6099_v62, %v5867_v17 }
0x1592   : > { %v7291_v42 = vpop.f32.mrf.mxu0 }
0x1593   : > { %v6106_v61 = vadd.f32 %v6100_v22, %v6054_v39 }
0x1594   : > { %v6102_v21 = vpop.f32.mrf.mxu0 }
0x1595   : > { %v6107_v32 = vadd.f32 %v6106_v61, %v6105_v31 }
0x1596   : > { %v7292_v24 = vpop.f32.mrf.mxu0 }
0x1597   : > { %v6108_v25 = vadd.f32 %v6107_v32, %v5915_v35 }
0x1599   : > { %v6118_v16 = vmul.f32 %v6116_v23, %v6108_v25 }
0x159b   : > { %v6124_v48 = vadd.f32 %v6122_v30, %v6118_v16 }
0x159d   : > { %v6125_v51 = vmax.f32 %v6124_v48, 0.0 }
0x159f   : > { %v6129_v45 = vpack.c.bf16 %v6125_v51, %v6125_v51 }
0x15a1   : > { %v6139_v47 = vsel %vm1414_vm2, %v6129_v45, 0 }
0x15a2   : > { %7294 = vmatpush3.bf16.msra.mxu1 %v6139_v47 }
0x15a5   : > { %7296 = vmatmul.mubr.msk.bf16.vlgmr.msra.gmra.mxu1 %vm1410_vm3, %v7502_v29 }
0x1665   : > { %v6175_v59 = vpop.f32.mrf.mxu1 }
0x1666   : > { %v6176_v52 = vadd.f32 %v6175_v59, %v9637_v19 }
0x1667   : > { %v7297_v4 = vpop.f32.mrf.mxu1 }
0x1668   : > { %6182 = vst [vmem:[%s650_s30] sm:$0xff] %v6176_v52 }
0x1669   : > { %v6178_v63 = vpop.f32.mrf.mxu1 }
0x166a   : > { %v6179_v3 = vadd.f32 %v6178_v63, %v9642_v15 }
0x166b   : > { %v7298_v8 = vpop.f32.mrf.mxu1 }
0x166c   : > { %6183 = vst [vmem:[%s650_s30 + $0x8] sm:$0xff] %v6179_v3 }
0x166d PF: > { %s31_s24 = sadd.s32 1, %s7859_s24  }
0x166e   : > { %p28_p3 = scmp.ge.s32.totalorder %s31_s24, 4  }
0x1670   :  { %30 = sbr.rel (!%p28_p3) target bundleno = 9 (0x9), region = 240 }
0x1675   :  { %6205 = vsyncpa [#allocation3], 1 }
0x1676   :  { %6207 = vsyncpa [#allocation3 + $0x1], 1 }
0x1677   :  { %6208 = vsyncpa [#allocation5], 1 }
0x1678   :  { %6209 = vsyncpa [#allocation8], 1 }
0x1679   :  { %6210 = vsyncpa [#allocation11], 1 }

</bundles_post_ra>
